<compile_context>
chip_gen: v7x
topology: tpu7x:2x2x1
jax: 0.10.0
libtpu: 0.0.40
codegen_flags: <defaults>
</compile_context>

<pallas_src>
import numpy as np
import jax
import jax.numpy as jnp
from jax.experimental import pallas as pl
from jax.experimental.pallas import tpu as pltpu

# --------------------------- problem configuration ---------------------------
B = 2            # batch
CI = 8           # in_channels (channels of x before upsample)
CS = 8           # skip_channels (skip / tup_out channels)
CO = 16          # out_channels
H = W = 8        # spatial size of x
H2, W2 = 2 * H, 2 * W          # after UpsamplingBilinear2d(scale_factor=2)
HW = H * W                     # 64
N2 = H2 * W2                   # 256 (flat pixel axis -> lanes)
KH = KW = 7                    # SpatialAttention kernel size
PAD7 = 3
EPS_BN = 1e-5
EPS_IN = 1e-5


# ------------------------------ kernel helpers --------------------------------
def _sigmoid(x):
    # exp and the approximate reciprocal both run on the EUP slot (hidden under MXU work),
    # avoiding a VALU divide.
    return pl.reciprocal(1.0 + jnp.exp(-x), approx=True)


# --------------------------------- kernel -------------------------------------
def decoder_block_kernel(
    saw_ref, ingb_ref,                                    # SMEM: (2,49) 7x7 taps, (1,2) IN gamma/beta
    x_ref, ti_ref, ci_ref, u_ref, mask_ref,               # activations + upsample op + shift-mask table
    wc1_ref, bc1_ref, wc2_ref, bc2_ref, wc3_ref, bc3_ref,  # TripleConv (1x1 convs)
    wf_ref, bf_ref,                                       # MultimodalFusion 3x3
    wr_ref, rs_ref, rt_ref,                               # BiFusion residual 1x1 (+folded BN)
    w1_ref, s1_ref, t1_ref,                               # conv1 3x3 (+folded BN)
    w2_ref, s2_ref, t2_ref,                               # conv2 3x3 (+folded BN)
    o_ref,
    slab_ref,                                             # VMEM (144, N2) im2col slab, shared by all convs
):
    f32 = jnp.float32

    def shifted(act, dy, dx):
        # act: (C, N2) channel-major.  Spatial shift by (dy, dx) with zero padding =
        # flat-pixel lane roll + precomputed validity mask (row of mask_ref).
        off = dy * W2 + dx
        rolled = act if off == 0 else pltpu.roll(act, (-off) % N2, axis=1)
        t7 = (dy + PAD7) * KW + (dx + PAD7)
        return rolled * mask_ref[t7:t7 + 1, :]

    def conv3x3(act, w_ref, c_in):
        # im2col: stack the 9 shifted taps on the sublane axis (aligned, c_in multiple of 8),
        # then one MXU matmul (C_out, 9*c_in) @ (9*c_in, N2) with a 256-lane dense output.
        for di in range(3):
            for dj in range(3):
                t = di * 3 + dj
                slab_ref[t * c_in:(t + 1) * c_in, :] = shifted(act, di - 1, dj - 1)
        return jnp.dot(w_ref[...], slab_ref[0:9 * c_in, :], preferred_element_type=f32)

    x2d = x_ref[0]             # (CI, HW)  channel-major (channels on sublanes, pixels on lanes)
    ti = ti_ref[0]             # (CS, N2)  skip
    ci = ci_ref[0]             # (CS, N2)  tup_out

    # ---- UpsamplingBilinear2d(scale=2, align_corners=True) as one matmul ----
    xu = jnp.dot(x2d, u_ref[...], preferred_element_type=f32)                   # (CI, N2)

    # ===================== BiFusion_block(skip, tup_out) =====================
    # -- ConvChannelAttention(skip): global avg pool + TripleConv (spatial 1x1 -> no BN) --
    pooled = jnp.broadcast_to(jnp.mean(ti, axis=1, keepdims=True), (CS, N2))    # lane-dense identity
    o1 = jnp.maximum(jnp.dot(wc1_ref[...], pooled, preferred_element_type=f32) + bc1_ref[...], 0.0) + pooled
    o2 = jnp.maximum(jnp.dot(wc2_ref[...], o1, preferred_element_type=f32) + bc2_ref[...], 0.0) + pooled
    o3 = jnp.maximum(jnp.dot(wc3_ref[...], o2, preferred_element_type=f32) + bc3_ref[...], 0.0)
    t3 = ti * _sigmoid(o3)                                                      # (CS, N2)

    # -- SpatialAttention(tup_out): 7x7 conv over [channel-mean, channel-max] + InstanceNorm --
    avg_c = jnp.mean(ci, axis=0, keepdims=True)                                 # (1, N2)
    max_c = jnp.max(ci, axis=0, keepdims=True)                                  # (1, N2)
    sacc = jnp.zeros((1, N2), f32)
    for di in range(KH):
        for dj in range(KW):
            t = di * KW + dj
            # tap weights are position-independent -> combine the two stats BEFORE shifting
            comb = saw_ref[0, t] * avg_c + saw_ref[1, t] * max_c                # (1, N2)
            off = (di - PAD7) * W2 + (dj - PAD7)
            sh = comb if off == 0 else pltpu.roll(comb, (-off) % N2, axis=1)
            sacc = sacc + sh * mask_ref[t:t + 1, :]
    # InstanceNorm2d(1, affine=True): per-sample statistics, biased variance
    mu = jnp.mean(sacc, axis=1, keepdims=True)
    var = jnp.mean(jnp.square(sacc - mu), axis=1, keepdims=True)
    sn = (sacc - mu) * jax.lax.rsqrt(var + EPS_IN) * ingb_ref[0, 0] + ingb_ref[0, 1]
    c5 = ci * _sigmoid(sn)                                                      # (CS, N2)

    # -- MultimodalFusion(skip, tup_out): 3x3 conv on the Hadamard product --
    fi = conv3x3(ti * ci, wf_ref, CS) + bf_ref[...]                             # (CS, N2)

    # -- residual head: 1x1 conv(3*CS -> CS) + BN(eval, folded) + ReLU --
    cat3 = jnp.concatenate([t3, c5, fi], axis=0)                                # (3*CS, N2), aligned
    sff = jnp.maximum(jnp.dot(wr_ref[...], cat3, preferred_element_type=f32)
                      * rs_ref[...] + rt_ref[...], 0.0)                         # fused skip (CS, N2)

    # ============= cat([up(x), skip]) + Conv2dReLU x2 (3x3, folded BN) =============
    catx = jnp.concatenate([xu, sff], axis=0)                                   # (CI+CS, N2), aligned
    y1 = jnp.maximum(conv3x3(catx, w1_ref, CI + CS) * s1_ref[...] + t1_ref[...], 0.0)   # (CO, N2)
    y2 = jnp.maximum(conv3x3(y1, w2_ref, CO) * s2_ref[...] + t2_ref[...], 0.0)          # (CO, N2)

    o_ref[0] = y2                                                               # lane-dense (CO, 256) store


# ------------------------------ host-side helpers ------------------------------
def _bilinear_matrix(n_in, n_out):
    # nn.UpsamplingBilinear2d == Upsample(mode='bilinear', align_corners=True)
    A = np.zeros((n_out, n_in), np.float32)
    for o in range(n_out):
        src = o * (n_in - 1) / (n_out - 1) if n_out > 1 else 0.0
        i0 = int(np.floor(src))
        i1 = min(i0 + 1, n_in - 1)
        frac = src - i0
        A[o, i0] += 1.0 - frac
        A[o, i1] += frac
    return A


# channel-major upsample operator: xu (C, N2) = x (C, HW) @ _U_OP
_U_OP = jnp.asarray(np.kron(_bilinear_matrix(H, H2), _bilinear_matrix(W, W2)).T)   # (HW, N2)


def _make_shift_masks():
    # mask[(dy+3)*7 + (dx+3), y*W2 + x] = 1 iff pixel (y+dy, x+dx) lies inside the H2 x W2 map;
    # combined with a flat-pixel lane roll this reproduces conv zero padding exactly.
    m = np.zeros((KH * KW, N2), np.float32)
    y, x = np.divmod(np.arange(N2), W2)
    for dy in range(-PAD7, PAD7 + 1):
        for dx in range(-PAD7, PAD7 + 1):
            ok = (y + dy >= 0) & (y + dy < H2) & (x + dx >= 0) & (x + dx < W2)
            m[(dy + PAD7) * KW + (dx + PAD7)] = ok.astype(np.float32)
    return m


_MASK49 = jnp.asarray(_make_shift_masks())   # (49, N2)


def _fold_bn(gamma, beta, mean, var, conv_bias=None):
    # eval-mode BatchNorm (and optional preceding conv bias) -> per-channel scale/shift, (C, 1)
    s = gamma / jnp.sqrt(var + EPS_BN)
    t = beta - mean * s
    if conv_bias is not None:
        t = t + conv_bias * s
    return s, t


# ------------------------------ pallas wrapper ---------------------------------
@jax.jit
def decoder_block_forward(x, skip, tup_out, params):
    """x: (B, CI, H, W); skip, tup_out: (B, CS, 2H, 2W) -- NCHW like PyTorch."""
    # NCHW is already channel-major: only flatten the spatial dims (no transposes needed).
    x_cm = x.reshape(B, CI, HW)
    ti = skip.reshape(B, CS, N2)
    ci = tup_out.reshape(B, CS, N2)

    rs, rt = _fold_bn(params['r_g'], params['r_b'], params['r_m'], params['r_v'],
                      conv_bias=params['br'])
    s1, t1 = _fold_bn(params['g1'], params['b1'], params['m1'], params['v1'])
    s2, t2 = _fold_bn(params['g2'], params['b2'], params['m2'], params['v2'])

    smem = pl.BlockSpec(memory_space=pltpu.MemorySpace.SMEM)

    def const(*shape):
        return pl.BlockSpec(shape, lambda b: (0,) * len(shape))

    # NOTE: grid=(B,) "parallel" shards the two samples across the two TensorCores on v7x;
    # on v5e/v6e it is a 2-step serial loop (~0.35us/step) of this single fused kernel.
    out = pl.pallas_call(
        decoder_block_kernel,
        out_shape=jax.ShapeDtypeStruct((B, CO, N2), jnp.float32),
        grid=(B,),
        in_specs=[
            smem, smem,
            pl.BlockSpec((1, CI, HW), lambda b: (b, 0, 0)),
            pl.BlockSpec((1, CS, N2), lambda b: (b, 0, 0)),
            pl.BlockSpec((1, CS, N2), lambda b: (b, 0, 0)),
            const(HW, N2), const(KH * KW, N2),
            const(CS, CS), const(CS, 1), const(CS, CS), const(CS, 1), const(CS, CS), const(CS, 1),
            const(CS, 9 * CS), const(CS, 1),
            const(CS, 3 * CS), const(CS, 1), const(CS, 1),
            const(CO, 9 * (CI + CS)), const(CO, 1), const(CO, 1),
            const(CO, 9 * CO), const(CO, 1), const(CO, 1),
        ],
        out_specs=pl.BlockSpec((1, CO, N2), lambda b: (b, 0, 0)),
        scratch_shapes=[pltpu.VMEM((9 * (CI + CS), N2), jnp.float32)],   # shared im2col slab
        compiler_params=pltpu.CompilerParams(dimension_semantics=("parallel",)),
    )(params['saw'], params['in_gb'],
      x_cm, ti, ci, _U_OP, _MASK49,
      params['wc1'], params['bc1'], params['wc2'], params['bc2'], params['wc3'], params['bc3'],
      params['wf'], params['bf'],
      params['wr'], rs, rt,
      params['w1'], s1, t1,
      params['w2'], s2, t2)

    # lane-dense (B, CO, 256) -> NCHW (free reshape, no transpose)
    return out.reshape(B, CO, H2, W2)


# ------------------------------ parameter init ---------------------------------
def init_params(key):
    ks = iter(jax.random.split(key, 40))

    def nrm(shape, s=0.1):
        return s * jax.random.normal(next(ks), shape, dtype=jnp.float32)

    params = {
        # ConvChannelAttention / TripleConv: 1x1 convs as (out, in) + bias (out, 1)
        'wc1': nrm((CS, CS)), 'bc1': nrm((CS, 1)),
        'wc2': nrm((CS, CS)), 'bc2': nrm((CS, 1)),
        'wc3': nrm((CS, CS)), 'bc3': nrm((CS, 1)),
        # SpatialAttention 7x7 conv (no bias): (2, 49) = [channel-mean taps; channel-max taps]
        'saw': nrm((2, KH * KW)),
        # InstanceNorm2d(1, affine=True) gamma, beta (shape (1, 2))
        'in_gb': jnp.concatenate([1.0 + nrm((1, 1), 0.05), nrm((1, 1), 0.05)], axis=-1),
        # MultimodalFusion 3x3 conv (CS->CS): (out, 9*in) tap-major + bias
        'wf': nrm((CS, 9 * CS)), 'bf': nrm((CS, 1)),
        # BiFusion residual: 1x1 conv (3*CS -> CS) + bias + BatchNorm(eval) raw params
        'wr': nrm((CS, 3 * CS)), 'br': nrm((CS, 1)),
        'r_g': 1.0 + nrm((CS, 1), 0.05), 'r_b': nrm((CS, 1), 0.05),
        'r_m': nrm((CS, 1), 0.05), 'r_v': 1.0 + jnp.abs(nrm((CS, 1), 0.05)),
        # conv1: 3x3 (CI+CS -> CO), bias=False, + BatchNorm(eval)
        'w1': nrm((CO, 9 * (CI + CS))),
        'g1': 1.0 + nrm((CO, 1), 0.05), 'b1': nrm((CO, 1), 0.05),
        'm1': nrm((CO, 1), 0.05), 'v1': 1.0 + jnp.abs(nrm((CO, 1), 0.05)),
        # conv2: 3x3 (CO -> CO), bias=False, + BatchNorm(eval)
        'w2': nrm((CO, 9 * CO)),
        'g2': 1.0 + nrm((CO, 1), 0.05), 'b2': nrm((CO, 1), 0.05),
        'm2': nrm((CO, 1), 0.05), 'v2': 1.0 + jnp.abs(nrm((CO, 1), 0.05)),
    }
    return params


if __name__ == "__main__":
    key = jax.random.PRNGKey(0)
    kx, ksk, ktp, kpar = jax.random.split(key, 4)
    x = jax.random.normal(kx, (B, CI, H, W), dtype=jnp.float32)          # NCHW like PyTorch
    skip = jax.random.normal(ksk, (B, CS, H2, W2), dtype=jnp.float32)
    tup_out = jax.random.normal(ktp, (B, CS, H2, W2), dtype=jnp.float32)
    params = init_params(kpar)

    out = decoder_block_forward(x, skip, tup_out, params)
    jax.block_until_ready(out)

    assert out.shape == (B, CO, H2, W2)
    assert bool(jnp.all(jnp.isfinite(out)))
    print("KERNEL_OK")
</pallas_src>

<mosaic_0001>
module attributes {stable_mosaic.version = 11 : i64} {
  func.func @decoder_block_kernel(%arg0: i32, %arg1: memref<2x49xf32, #tpu.memory_space<smem>>, %arg2: memref<1x2xf32, #tpu.memory_space<smem>>, %arg3: memref<1x8x64xf32, #tpu.memory_space<vmem>>, %arg4: memref<1x8x256xf32, #tpu.memory_space<vmem>>, %arg5: memref<1x8x256xf32, #tpu.memory_space<vmem>>, %arg6: memref<64x256xf32, #tpu.memory_space<vmem>>, %arg7: memref<49x256xf32, #tpu.memory_space<vmem>>, %arg8: memref<8x8xf32, #tpu.memory_space<vmem>>, %arg9: memref<8x1xf32, #tpu.memory_space<vmem>>, %arg10: memref<8x8xf32, #tpu.memory_space<vmem>>, %arg11: memref<8x1xf32, #tpu.memory_space<vmem>>, %arg12: memref<8x8xf32, #tpu.memory_space<vmem>>, %arg13: memref<8x1xf32, #tpu.memory_space<vmem>>, %arg14: memref<8x72xf32, #tpu.memory_space<vmem>>, %arg15: memref<8x1xf32, #tpu.memory_space<vmem>>, %arg16: memref<8x24xf32, #tpu.memory_space<vmem>>, %arg17: memref<8x1xf32, #tpu.memory_space<vmem>>, %arg18: memref<8x1xf32, #tpu.memory_space<vmem>>, %arg19: memref<16x144xf32, #tpu.memory_space<vmem>>, %arg20: memref<16x1xf32, #tpu.memory_space<vmem>>, %arg21: memref<16x1xf32, #tpu.memory_space<vmem>>, %arg22: memref<16x144xf32, #tpu.memory_space<vmem>>, %arg23: memref<16x1xf32, #tpu.memory_space<vmem>>, %arg24: memref<16x1xf32, #tpu.memory_space<vmem>>, %arg25: memref<1x16x256xf32, #tpu.memory_space<vmem>>, %arg26: memref<144x256xf32, #tpu.memory_space<vmem>>) attributes {dimension_semantics = [#tpu.dimension_semantics<parallel>], iteration_bounds = array<i64: 2>, scalar_prefetch = 0 : i64, scratch_operands = 1 : i64, tpu.core_type = #tpu.core_type<tc>, window_params = [{transform_indices = @transform_0, window_bounds = array<i64: 2, 49>}, {transform_indices = @transform_1, window_bounds = array<i64: 1, 2>}, {transform_indices = @transform_2, window_bounds = array<i64: 1, 8, 64>}, {transform_indices = @transform_3, window_bounds = array<i64: 1, 8, 256>}, {transform_indices = @transform_4, window_bounds = array<i64: 1, 8, 256>}, {pipeline_mode = #tpu.pipeline_mode<synchronous>, transform_indices = @transform_5, window_bounds = array<i64: 64, 256>}, {pipeline_mode = #tpu.pipeline_mode<synchronous>, transform_indices = @transform_6, window_bounds = array<i64: 49, 256>}, {pipeline_mode = #tpu.pipeline_mode<synchronous>, transform_indices = @transform_7, window_bounds = array<i64: 8, 8>}, {pipeline_mode = #tpu.pipeline_mode<synchronous>, transform_indices = @transform_8, window_bounds = array<i64: 8, 1>}, {pipeline_mode = #tpu.pipeline_mode<synchronous>, transform_indices = @transform_9, window_bounds = array<i64: 8, 8>}, {pipeline_mode = #tpu.pipeline_mode<synchronous>, transform_indices = @transform_10, window_bounds = array<i64: 8, 1>}, {pipeline_mode = #tpu.pipeline_mode<synchronous>, transform_indices = @transform_11, window_bounds = array<i64: 8, 8>}, {pipeline_mode = #tpu.pipeline_mode<synchronous>, transform_indices = @transform_12, window_bounds = array<i64: 8, 1>}, {pipeline_mode = #tpu.pipeline_mode<synchronous>, transform_indices = @transform_13, window_bounds = array<i64: 8, 72>}, {pipeline_mode = #tpu.pipeline_mode<synchronous>, transform_indices = @transform_14, window_bounds = array<i64: 8, 1>}, {pipeline_mode = #tpu.pipeline_mode<synchronous>, transform_indices = @transform_15, window_bounds = array<i64: 8, 24>}, {pipeline_mode = #tpu.pipeline_mode<synchronous>, transform_indices = @transform_16, window_bounds = array<i64: 8, 1>}, {pipeline_mode = #tpu.pipeline_mode<synchronous>, transform_indices = @transform_17, window_bounds = array<i64: 8, 1>}, {pipeline_mode = #tpu.pipeline_mode<synchronous>, transform_indices = @transform_18, window_bounds = array<i64: 16, 144>}, {pipeline_mode = #tpu.pipeline_mode<synchronous>, transform_indices = @transform_19, window_bounds = array<i64: 16, 1>}, {pipeline_mode = #tpu.pipeline_mode<synchronous>, transform_indices = @transform_20, window_bounds = array<i64: 16, 1>}, {pipeline_mode = #tpu.pipeline_mode<synchronous>, transform_indices = @transform_21, window_bounds = array<i64: 16, 144>}, {pipeline_mode = #tpu.pipeline_mode<synchronous>, transform_indices = @transform_22, window_bounds = array<i64: 16, 1>}, {pipeline_mode = #tpu.pipeline_mode<synchronous>, transform_indices = @transform_23, window_bounds = array<i64: 16, 1>}, {transform_indices = @transform_24, window_bounds = array<i64: 1, 16, 256>}]} {
    %c0 = arith.constant 0 : index
    %c0_0 = arith.constant 0 : index
    %c0_1 = arith.constant 0 : index
    %0 = vector.load %arg3[%c0, %c0_0, %c0_1] : memref<1x8x64xf32, #tpu.memory_space<vmem>>, vector<1x8x64xf32>
    %1 = vector.shape_cast %0 : vector<1x8x64xf32> to vector<8x64xf32>
    %c0_2 = arith.constant 0 : index
    %c0_3 = arith.constant 0 : index
    %c0_4 = arith.constant 0 : index
    %2 = vector.load %arg4[%c0_2, %c0_3, %c0_4] : memref<1x8x256xf32, #tpu.memory_space<vmem>>, vector<1x8x256xf32>
    %3 = vector.shape_cast %2 : vector<1x8x256xf32> to vector<8x256xf32>
    %c0_5 = arith.constant 0 : index
    %c0_6 = arith.constant 0 : index
    %c0_7 = arith.constant 0 : index
    %4 = vector.load %arg5[%c0_5, %c0_6, %c0_7] : memref<1x8x256xf32, #tpu.memory_space<vmem>>, vector<1x8x256xf32>
    %5 = vector.shape_cast %4 : vector<1x8x256xf32> to vector<8x256xf32>
    %c0_8 = arith.constant 0 : index
    %c0_9 = arith.constant 0 : index
    %6 = vector.load %arg6[%c0_8, %c0_9] : memref<64x256xf32, #tpu.memory_space<vmem>>, vector<64x256xf32>
    %cst = arith.constant dense<0.000000e+00> : vector<8x256xf32>
    %7 = tpu.matmul %1, %6, %cst {dimension_numbers = #tpu.dot_dimension_numbers<[1], [0], [0], [1], [0, 0, 1, 1], [], []>} : vector<8x64xf32>, vector<64x256xf32>, vector<8x256xf32> -> vector<8x256xf32>
    %cst_10 = arith.constant dense<0.000000e+00> : vector<8xf32>
    %8 = vector.multi_reduction <add>, %3, %cst_10 [1] : vector<8x256xf32> to vector<8xf32>
    %9 = vector.shape_cast %8 : vector<8xf32> to vector<8x1xf32>
    %cst_11 = arith.constant 2.560000e+02 : f32
    %10 = vector.broadcast %cst_11 : f32 to vector<8x1xf32>
    %11 = arith.divf %9, %10 : vector<8x1xf32>
    %12 = vector.shape_cast %11 : vector<8x1xf32> to vector<8x1xf32>
    %13 = vector.broadcast %12 : vector<8x1xf32> to vector<8x256xf32>
    %c0_12 = arith.constant 0 : index
    %c0_13 = arith.constant 0 : index
    %14 = vector.load %arg8[%c0_12, %c0_13] : memref<8x8xf32, #tpu.memory_space<vmem>>, vector<8x8xf32>
    %cst_14 = arith.constant dense<0.000000e+00> : vector<8x256xf32>
    %15 = tpu.matmul %14, %13, %cst_14 {dimension_numbers = #tpu.dot_dimension_numbers<[1], [0], [0], [1], [0, 0, 1, 1], [], []>} : vector<8x8xf32>, vector<8x256xf32>, vector<8x256xf32> -> vector<8x256xf32>
    %c0_15 = arith.constant 0 : index
    %c0_16 = arith.constant 0 : index
    %16 = vector.load %arg9[%c0_15, %c0_16] : memref<8x1xf32, #tpu.memory_space<vmem>>, vector<8x1xf32>
    %17 = vector.broadcast %16 : vector<8x1xf32> to vector<8x256xf32>
    %18 = arith.addf %15, %17 : vector<8x256xf32>
    %cst_17 = arith.constant 0.000000e+00 : f32
    %19 = vector.broadcast %cst_17 : f32 to vector<8x256xf32>
    %20 = arith.maximumf %18, %19 : vector<8x256xf32>
    %21 = arith.addf %20, %13 : vector<8x256xf32>
    %c0_18 = arith.constant 0 : index
    %c0_19 = arith.constant 0 : index
    %22 = vector.load %arg10[%c0_18, %c0_19] : memref<8x8xf32, #tpu.memory_space<vmem>>, vector<8x8xf32>
    %cst_20 = arith.constant dense<0.000000e+00> : vector<8x256xf32>
    %23 = tpu.matmul %22, %21, %cst_20 {dimension_numbers = #tpu.dot_dimension_numbers<[1], [0], [0], [1], [0, 0, 1, 1], [], []>} : vector<8x8xf32>, vector<8x256xf32>, vector<8x256xf32> -> vector<8x256xf32>
    %c0_21 = arith.constant 0 : index
    %c0_22 = arith.constant 0 : index
    %24 = vector.load %arg11[%c0_21, %c0_22] : memref<8x1xf32, #tpu.memory_space<vmem>>, vector<8x1xf32>
    %25 = vector.broadcast %24 : vector<8x1xf32> to vector<8x256xf32>
    %26 = arith.addf %23, %25 : vector<8x256xf32>
    %cst_23 = arith.constant 0.000000e+00 : f32
    %27 = vector.broadcast %cst_23 : f32 to vector<8x256xf32>
    %28 = arith.maximumf %26, %27 : vector<8x256xf32>
    %29 = arith.addf %28, %13 : vector<8x256xf32>
    %c0_24 = arith.constant 0 : index
    %c0_25 = arith.constant 0 : index
    %30 = vector.load %arg12[%c0_24, %c0_25] : memref<8x8xf32, #tpu.memory_space<vmem>>, vector<8x8xf32>
    %cst_26 = arith.constant dense<0.000000e+00> : vector<8x256xf32>
    %31 = tpu.matmul %30, %29, %cst_26 {dimension_numbers = #tpu.dot_dimension_numbers<[1], [0], [0], [1], [0, 0, 1, 1], [], []>} : vector<8x8xf32>, vector<8x256xf32>, vector<8x256xf32> -> vector<8x256xf32>
    %c0_27 = arith.constant 0 : index
    %c0_28 = arith.constant 0 : index
    %32 = vector.load %arg13[%c0_27, %c0_28] : memref<8x1xf32, #tpu.memory_space<vmem>>, vector<8x1xf32>
    %33 = vector.broadcast %32 : vector<8x1xf32> to vector<8x256xf32>
    %34 = arith.addf %31, %33 : vector<8x256xf32>
    %cst_29 = arith.constant 0.000000e+00 : f32
    %35 = vector.broadcast %cst_29 : f32 to vector<8x256xf32>
    %36 = arith.maximumf %34, %35 : vector<8x256xf32>
    %cst_30 = arith.constant 0.000000e+00 : f32
    %37 = vector.broadcast %cst_30 : f32 to vector<8x256xf32>
    %38 = arith.subf %37, %36 : vector<8x256xf32>
    %39 = math.exp %38 : vector<8x256xf32>
    %cst_31 = arith.constant 1.000000e+00 : f32
    %40 = vector.broadcast %cst_31 : f32 to vector<8x256xf32>
    %41 = arith.addf %40, %39 : vector<8x256xf32>
    %42 = tpu.reciprocal %41 {approx = true} : vector<8x256xf32> -> vector<8x256xf32>
    %43 = arith.mulf %3, %42 : vector<8x256xf32>
    %cst_32 = arith.constant dense<0.000000e+00> : vector<256xf32>
    %44 = vector.multi_reduction <add>, %5, %cst_32 [0] : vector<8x256xf32> to vector<256xf32>
    %45 = vector.shape_cast %44 : vector<256xf32> to vector<1x256xf32>
    %cst_33 = arith.constant 8.000000e+00 : f32
    %46 = vector.broadcast %cst_33 : f32 to vector<1x256xf32>
    %47 = arith.divf %45, %46 : vector<1x256xf32>
    %cst_34 = arith.constant dense<0xFF800000> : vector<256xf32>
    %48 = vector.multi_reduction <maximumf>, %5, %cst_34 [0] : vector<8x256xf32> to vector<256xf32>
    %49 = vector.shape_cast %48 : vector<256xf32> to vector<1x256xf32>
    %cst_35 = arith.constant 0.000000e+00 : f32
    %50 = vector.broadcast %cst_35 : f32 to vector<1x256xf32>
    %c0_36 = arith.constant 0 : index
    %c0_37 = arith.constant 0 : index
    %51 = memref.load %arg1[%c0_36, %c0_37] : memref<2x49xf32, #tpu.memory_space<smem>>
    %52 = vector.broadcast %51 : f32 to vector<1x256xf32>
    %53 = arith.mulf %52, %47 : vector<1x256xf32>
    %c1 = arith.constant 1 : index
    %c0_38 = arith.constant 0 : index
    %54 = memref.load %arg1[%c1, %c0_38] : memref<2x49xf32, #tpu.memory_space<smem>>
    %55 = vector.broadcast %54 : f32 to vector<1x256xf32>
    %56 = arith.mulf %55, %49 : vector<1x256xf32>
    %57 = arith.addf %53, %56 : vector<1x256xf32>
    %c51_i32 = arith.constant 51 : i32
    %58 = tpu.dynamic_rotate %57 by %c51_i32 dim 1 : vector<1x256xf32>, i32 -> vector<1x256xf32>
    %c0_39 = arith.constant 0 : index
    %c0_40 = arith.constant 0 : index
    %59 = vector.load %arg7[%c0_39, %c0_40] : memref<49x256xf32, #tpu.memory_space<vmem>>, vector<1x256xf32>
    %60 = arith.mulf %58, %59 : vector<1x256xf32>
    %61 = arith.addf %50, %60 : vector<1x256xf32>
    %c0_41 = arith.constant 0 : index
    %c1_42 = arith.constant 1 : index
    %62 = memref.load %arg1[%c0_41, %c1_42] : memref<2x49xf32, #tpu.memory_space<smem>>
    %63 = vector.broadcast %62 : f32 to vector<1x256xf32>
    %64 = arith.mulf %63, %47 : vector<1x256xf32>
    %c1_43 = arith.constant 1 : index
    %c1_44 = arith.constant 1 : index
    %65 = memref.load %arg1[%c1_43, %c1_44] : memref<2x49xf32, #tpu.memory_space<smem>>
    %66 = vector.broadcast %65 : f32 to vector<1x256xf32>
    %67 = arith.mulf %66, %49 : vector<1x256xf32>
    %68 = arith.addf %64, %67 : vector<1x256xf32>
    %c50_i32 = arith.constant 50 : i32
    %69 = tpu.dynamic_rotate %68 by %c50_i32 dim 1 : vector<1x256xf32>, i32 -> vector<1x256xf32>
    %c1_45 = arith.constant 1 : index
    %c0_46 = arith.constant 0 : index
    %70 = vector.load %arg7[%c1_45, %c0_46] : memref<49x256xf32, #tpu.memory_space<vmem>>, vector<1x256xf32>
    %71 = arith.mulf %69, %70 : vector<1x256xf32>
    %72 = arith.addf %61, %71 : vector<1x256xf32>
    %c0_47 = arith.constant 0 : index
    %c2 = arith.constant 2 : index
    %73 = memref.load %arg1[%c0_47, %c2] : memref<2x49xf32, #tpu.memory_space<smem>>
    %74 = vector.broadcast %73 : f32 to vector<1x256xf32>
    %75 = arith.mulf %74, %47 : vector<1x256xf32>
    %c1_48 = arith.constant 1 : index
    %c2_49 = arith.constant 2 : index
    %76 = memref.load %arg1[%c1_48, %c2_49] : memref<2x49xf32, #tpu.memory_space<smem>>
    %77 = vector.broadcast %76 : f32 to vector<1x256xf32>
    %78 = arith.mulf %77, %49 : vector<1x256xf32>
    %79 = arith.addf %75, %78 : vector<1x256xf32>
    %c49_i32 = arith.constant 49 : i32
    %80 = tpu.dynamic_rotate %79 by %c49_i32 dim 1 : vector<1x256xf32>, i32 -> vector<1x256xf32>
    %c2_50 = arith.constant 2 : index
    %c0_51 = arith.constant 0 : index
    %81 = vector.load %arg7[%c2_50, %c0_51] : memref<49x256xf32, #tpu.memory_space<vmem>>, vector<1x256xf32>
    %82 = arith.mulf %80, %81 : vector<1x256xf32>
    %83 = arith.addf %72, %82 : vector<1x256xf32>
    %c0_52 = arith.constant 0 : index
    %c3 = arith.constant 3 : index
    %84 = memref.load %arg1[%c0_52, %c3] : memref<2x49xf32, #tpu.memory_space<smem>>
    %85 = vector.broadcast %84 : f32 to vector<1x256xf32>
    %86 = arith.mulf %85, %47 : vector<1x256xf32>
    %c1_53 = arith.constant 1 : index
    %c3_54 = arith.constant 3 : index
    %87 = memref.load %arg1[%c1_53, %c3_54] : memref<2x49xf32, #tpu.memory_space<smem>>
    %88 = vector.broadcast %87 : f32 to vector<1x256xf32>
    %89 = arith.mulf %88, %49 : vector<1x256xf32>
    %90 = arith.addf %86, %89 : vector<1x256xf32>
    %c48_i32 = arith.constant 48 : i32
    %91 = tpu.dynamic_rotate %90 by %c48_i32 dim 1 : vector<1x256xf32>, i32 -> vector<1x256xf32>
    %c3_55 = arith.constant 3 : index
    %c0_56 = arith.constant 0 : index
    %92 = vector.load %arg7[%c3_55, %c0_56] : memref<49x256xf32, #tpu.memory_space<vmem>>, vector<1x256xf32>
    %93 = arith.mulf %91, %92 : vector<1x256xf32>
    %94 = arith.addf %83, %93 : vector<1x256xf32>
    %c0_57 = arith.constant 0 : index
    %c4 = arith.constant 4 : index
    %95 = memref.load %arg1[%c0_57, %c4] : memref<2x49xf32, #tpu.memory_space<smem>>
    %96 = vector.broadcast %95 : f32 to vector<1x256xf32>
    %97 = arith.mulf %96, %47 : vector<1x256xf32>
    %c1_58 = arith.constant 1 : index
    %c4_59 = arith.constant 4 : index
    %98 = memref.load %arg1[%c1_58, %c4_59] : memref<2x49xf32, #tpu.memory_space<smem>>
    %99 = vector.broadcast %98 : f32 to vector<1x256xf32>
    %100 = arith.mulf %99, %49 : vector<1x256xf32>
    %101 = arith.addf %97, %100 : vector<1x256xf32>
    %c47_i32 = arith.constant 47 : i32
    %102 = tpu.dynamic_rotate %101 by %c47_i32 dim 1 : vector<1x256xf32>, i32 -> vector<1x256xf32>
    %c4_60 = arith.constant 4 : index
    %c0_61 = arith.constant 0 : index
    %103 = vector.load %arg7[%c4_60, %c0_61] : memref<49x256xf32, #tpu.memory_space<vmem>>, vector<1x256xf32>
    %104 = arith.mulf %102, %103 : vector<1x256xf32>
    %105 = arith.addf %94, %104 : vector<1x256xf32>
    %c0_62 = arith.constant 0 : index
    %c5 = arith.constant 5 : index
    %106 = memref.load %arg1[%c0_62, %c5] : memref<2x49xf32, #tpu.memory_space<smem>>
    %107 = vector.broadcast %106 : f32 to vector<1x256xf32>
    %108 = arith.mulf %107, %47 : vector<1x256xf32>
    %c1_63 = arith.constant 1 : index
    %c5_64 = arith.constant 5 : index
    %109 = memref.load %arg1[%c1_63, %c5_64] : memref<2x49xf32, #tpu.memory_space<smem>>
    %110 = vector.broadcast %109 : f32 to vector<1x256xf32>
    %111 = arith.mulf %110, %49 : vector<1x256xf32>
    %112 = arith.addf %108, %111 : vector<1x256xf32>
    %c46_i32 = arith.constant 46 : i32
    %113 = tpu.dynamic_rotate %112 by %c46_i32 dim 1 : vector<1x256xf32>, i32 -> vector<1x256xf32>
    %c5_65 = arith.constant 5 : index
    %c0_66 = arith.constant 0 : index
    %114 = vector.load %arg7[%c5_65, %c0_66] : memref<49x256xf32, #tpu.memory_space<vmem>>, vector<1x256xf32>
    %115 = arith.mulf %113, %114 : vector<1x256xf32>
    %116 = arith.addf %105, %115 : vector<1x256xf32>
    %c0_67 = arith.constant 0 : index
    %c6 = arith.constant 6 : index
    %117 = memref.load %arg1[%c0_67, %c6] : memref<2x49xf32, #tpu.memory_space<smem>>
    %118 = vector.broadcast %117 : f32 to vector<1x256xf32>
    %119 = arith.mulf %118, %47 : vector<1x256xf32>
    %c1_68 = arith.constant 1 : index
    %c6_69 = arith.constant 6 : index
    %120 = memref.load %arg1[%c1_68, %c6_69] : memref<2x49xf32, #tpu.memory_space<smem>>
    %121 = vector.broadcast %120 : f32 to vector<1x256xf32>
    %122 = arith.mulf %121, %49 : vector<1x256xf32>
    %123 = arith.addf %119, %122 : vector<1x256xf32>
    %c45_i32 = arith.constant 45 : i32
    %124 = tpu.dynamic_rotate %123 by %c45_i32 dim 1 : vector<1x256xf32>, i32 -> vector<1x256xf32>
    %c6_70 = arith.constant 6 : index
    %c0_71 = arith.constant 0 : index
    %125 = vector.load %arg7[%c6_70, %c0_71] : memref<49x256xf32, #tpu.memory_space<vmem>>, vector<1x256xf32>
    %126 = arith.mulf %124, %125 : vector<1x256xf32>
    %127 = arith.addf %116, %126 : vector<1x256xf32>
    %c0_72 = arith.constant 0 : index
    %c7 = arith.constant 7 : index
    %128 = memref.load %arg1[%c0_72, %c7] : memref<2x49xf32, #tpu.memory_space<smem>>
    %129 = vector.broadcast %128 : f32 to vector<1x256xf32>
    %130 = arith.mulf %129, %47 : vector<1x256xf32>
    %c1_73 = arith.constant 1 : index
    %c7_74 = arith.constant 7 : index
    %131 = memref.load %arg1[%c1_73, %c7_74] : memref<2x49xf32, #tpu.memory_space<smem>>
    %132 = vector.broadcast %131 : f32 to vector<1x256xf32>
    %133 = arith.mulf %132, %49 : vector<1x256xf32>
    %134 = arith.addf %130, %133 : vector<1x256xf32>
    %c35_i32 = arith.constant 35 : i32
    %135 = tpu.dynamic_rotate %134 by %c35_i32 dim 1 : vector<1x256xf32>, i32 -> vector<1x256xf32>
    %c7_75 = arith.constant 7 : index
    %c0_76 = arith.constant 0 : index
    %136 = vector.load %arg7[%c7_75, %c0_76] : memref<49x256xf32, #tpu.memory_space<vmem>>, vector<1x256xf32>
    %137 = arith.mulf %135, %136 : vector<1x256xf32>
    %138 = arith.addf %127, %137 : vector<1x256xf32>
    %c0_77 = arith.constant 0 : index
    %c8 = arith.constant 8 : index
    %139 = memref.load %arg1[%c0_77, %c8] : memref<2x49xf32, #tpu.memory_space<smem>>
    %140 = vector.broadcast %139 : f32 to vector<1x256xf32>
    %141 = arith.mulf %140, %47 : vector<1x256xf32>
    %c1_78 = arith.constant 1 : index
    %c8_79 = arith.constant 8 : index
    %142 = memref.load %arg1[%c1_78, %c8_79] : memref<2x49xf32, #tpu.memory_space<smem>>
    %143 = vector.broadcast %142 : f32 to vector<1x256xf32>
    %144 = arith.mulf %143, %49 : vector<1x256xf32>
    %145 = arith.addf %141, %144 : vector<1x256xf32>
    %c34_i32 = arith.constant 34 : i32
    %146 = tpu.dynamic_rotate %145 by %c34_i32 dim 1 : vector<1x256xf32>, i32 -> vector<1x256xf32>
    %c8_80 = arith.constant 8 : index
    %c0_81 = arith.constant 0 : index
    %147 = vector.load %arg7[%c8_80, %c0_81] : memref<49x256xf32, #tpu.memory_space<vmem>>, vector<1x256xf32>
    %148 = arith.mulf %146, %147 : vector<1x256xf32>
    %149 = arith.addf %138, %148 : vector<1x256xf32>
    %c0_82 = arith.constant 0 : index
    %c9 = arith.constant 9 : index
    %150 = memref.load %arg1[%c0_82, %c9] : memref<2x49xf32, #tpu.memory_space<smem>>
    %151 = vector.broadcast %150 : f32 to vector<1x256xf32>
    %152 = arith.mulf %151, %47 : vector<1x256xf32>
    %c1_83 = arith.constant 1 : index
    %c9_84 = arith.constant 9 : index
    %153 = memref.load %arg1[%c1_83, %c9_84] : memref<2x49xf32, #tpu.memory_space<smem>>
    %154 = vector.broadcast %153 : f32 to vector<1x256xf32>
    %155 = arith.mulf %154, %49 : vector<1x256xf32>
    %156 = arith.addf %152, %155 : vector<1x256xf32>
    %c33_i32 = arith.constant 33 : i32
    %157 = tpu.dynamic_rotate %156 by %c33_i32 dim 1 : vector<1x256xf32>, i32 -> vector<1x256xf32>
    %c9_85 = arith.constant 9 : index
    %c0_86 = arith.constant 0 : index
    %158 = vector.load %arg7[%c9_85, %c0_86] : memref<49x256xf32, #tpu.memory_space<vmem>>, vector<1x256xf32>
    %159 = arith.mulf %157, %158 : vector<1x256xf32>
    %160 = arith.addf %149, %159 : vector<1x256xf32>
    %c0_87 = arith.constant 0 : index
    %c10 = arith.constant 10 : index
    %161 = memref.load %arg1[%c0_87, %c10] : memref<2x49xf32, #tpu.memory_space<smem>>
    %162 = vector.broadcast %161 : f32 to vector<1x256xf32>
    %163 = arith.mulf %162, %47 : vector<1x256xf32>
    %c1_88 = arith.constant 1 : index
    %c10_89 = arith.constant 10 : index
    %164 = memref.load %arg1[%c1_88, %c10_89] : memref<2x49xf32, #tpu.memory_space<smem>>
    %165 = vector.broadcast %164 : f32 to vector<1x256xf32>
    %166 = arith.mulf %165, %49 : vector<1x256xf32>
    %167 = arith.addf %163, %166 : vector<1x256xf32>
    %c32_i32 = arith.constant 32 : i32
    %168 = tpu.dynamic_rotate %167 by %c32_i32 dim 1 : vector<1x256xf32>, i32 -> vector<1x256xf32>
    %c10_90 = arith.constant 10 : index
    %c0_91 = arith.constant 0 : index
    %169 = vector.load %arg7[%c10_90, %c0_91] : memref<49x256xf32, #tpu.memory_space<vmem>>, vector<1x256xf32>
    %170 = arith.mulf %168, %169 : vector<1x256xf32>
    %171 = arith.addf %160, %170 : vector<1x256xf32>
    %c0_92 = arith.constant 0 : index
    %c11 = arith.constant 11 : index
    %172 = memref.load %arg1[%c0_92, %c11] : memref<2x49xf32, #tpu.memory_space<smem>>
    %173 = vector.broadcast %172 : f32 to vector<1x256xf32>
    %174 = arith.mulf %173, %47 : vector<1x256xf32>
    %c1_93 = arith.constant 1 : index
    %c11_94 = arith.constant 11 : index
    %175 = memref.load %arg1[%c1_93, %c11_94] : memref<2x49xf32, #tpu.memory_space<smem>>
    %176 = vector.broadcast %175 : f32 to vector<1x256xf32>
    %177 = arith.mulf %176, %49 : vector<1x256xf32>
    %178 = arith.addf %174, %177 : vector<1x256xf32>
    %c31_i32 = arith.constant 31 : i32
    %179 = tpu.dynamic_rotate %178 by %c31_i32 dim 1 : vector<1x256xf32>, i32 -> vector<1x256xf32>
    %c11_95 = arith.constant 11 : index
    %c0_96 = arith.constant 0 : index
    %180 = vector.load %arg7[%c11_95, %c0_96] : memref<49x256xf32, #tpu.memory_space<vmem>>, vector<1x256xf32>
    %181 = arith.mulf %179, %180 : vector<1x256xf32>
    %182 = arith.addf %171, %181 : vector<1x256xf32>
    %c0_97 = arith.constant 0 : index
    %c12 = arith.constant 12 : index
    %183 = memref.load %arg1[%c0_97, %c12] : memref<2x49xf32, #tpu.memory_space<smem>>
    %184 = vector.broadcast %183 : f32 to vector<1x256xf32>
    %185 = arith.mulf %184, %47 : vector<1x256xf32>
    %c1_98 = arith.constant 1 : index
    %c12_99 = arith.constant 12 : index
    %186 = memref.load %arg1[%c1_98, %c12_99] : memref<2x49xf32, #tpu.memory_space<smem>>
    %187 = vector.broadcast %186 : f32 to vector<1x256xf32>
    %188 = arith.mulf %187, %49 : vector<1x256xf32>
    %189 = arith.addf %185, %188 : vector<1x256xf32>
    %c30_i32 = arith.constant 30 : i32
    %190 = tpu.dynamic_rotate %189 by %c30_i32 dim 1 : vector<1x256xf32>, i32 -> vector<1x256xf32>
    %c12_100 = arith.constant 12 : index
    %c0_101 = arith.constant 0 : index
    %191 = vector.load %arg7[%c12_100, %c0_101] : memref<49x256xf32, #tpu.memory_space<vmem>>, vector<1x256xf32>
    %192 = arith.mulf %190, %191 : vector<1x256xf32>
    %193 = arith.addf %182, %192 : vector<1x256xf32>
    %c0_102 = arith.constant 0 : index
    %c13 = arith.constant 13 : index
    %194 = memref.load %arg1[%c0_102, %c13] : memref<2x49xf32, #tpu.memory_space<smem>>
    %195 = vector.broadcast %194 : f32 to vector<1x256xf32>
    %196 = arith.mulf %195, %47 : vector<1x256xf32>
    %c1_103 = arith.constant 1 : index
    %c13_104 = arith.constant 13 : index
    %197 = memref.load %arg1[%c1_103, %c13_104] : memref<2x49xf32, #tpu.memory_space<smem>>
    %198 = vector.broadcast %197 : f32 to vector<1x256xf32>
    %199 = arith.mulf %198, %49 : vector<1x256xf32>
    %200 = arith.addf %196, %199 : vector<1x256xf32>
    %c29_i32 = arith.constant 29 : i32
    %201 = tpu.dynamic_rotate %200 by %c29_i32 dim 1 : vector<1x256xf32>, i32 -> vector<1x256xf32>
    %c13_105 = arith.constant 13 : index
    %c0_106 = arith.constant 0 : index
    %202 = vector.load %arg7[%c13_105, %c0_106] : memref<49x256xf32, #tpu.memory_space<vmem>>, vector<1x256xf32>
    %203 = arith.mulf %201, %202 : vector<1x256xf32>
    %204 = arith.addf %193, %203 : vector<1x256xf32>
    %c0_107 = arith.constant 0 : index
    %c14 = arith.constant 14 : index
    %205 = memref.load %arg1[%c0_107, %c14] : memref<2x49xf32, #tpu.memory_space<smem>>
    %206 = vector.broadcast %205 : f32 to vector<1x256xf32>
    %207 = arith.mulf %206, %47 : vector<1x256xf32>
    %c1_108 = arith.constant 1 : index
    %c14_109 = arith.constant 14 : index
    %208 = memref.load %arg1[%c1_108, %c14_109] : memref<2x49xf32, #tpu.memory_space<smem>>
    %209 = vector.broadcast %208 : f32 to vector<1x256xf32>
    %210 = arith.mulf %209, %49 : vector<1x256xf32>
    %211 = arith.addf %207, %210 : vector<1x256xf32>
    %c19_i32 = arith.constant 19 : i32
    %212 = tpu.dynamic_rotate %211 by %c19_i32 dim 1 : vector<1x256xf32>, i32 -> vector<1x256xf32>
    %c14_110 = arith.constant 14 : index
    %c0_111 = arith.constant 0 : index
    %213 = vector.load %arg7[%c14_110, %c0_111] : memref<49x256xf32, #tpu.memory_space<vmem>>, vector<1x256xf32>
    %214 = arith.mulf %212, %213 : vector<1x256xf32>
    %215 = arith.addf %204, %214 : vector<1x256xf32>
    %c0_112 = arith.constant 0 : index
    %c15 = arith.constant 15 : index
    %216 = memref.load %arg1[%c0_112, %c15] : memref<2x49xf32, #tpu.memory_space<smem>>
    %217 = vector.broadcast %216 : f32 to vector<1x256xf32>
    %218 = arith.mulf %217, %47 : vector<1x256xf32>
    %c1_113 = arith.constant 1 : index
    %c15_114 = arith.constant 15 : index
    %219 = memref.load %arg1[%c1_113, %c15_114] : memref<2x49xf32, #tpu.memory_space<smem>>
    %220 = vector.broadcast %219 : f32 to vector<1x256xf32>
    %221 = arith.mulf %220, %49 : vector<1x256xf32>
    %222 = arith.addf %218, %221 : vector<1x256xf32>
    %c18_i32 = arith.constant 18 : i32
    %223 = tpu.dynamic_rotate %222 by %c18_i32 dim 1 : vector<1x256xf32>, i32 -> vector<1x256xf32>
    %c15_115 = arith.constant 15 : index
    %c0_116 = arith.constant 0 : index
    %224 = vector.load %arg7[%c15_115, %c0_116] : memref<49x256xf32, #tpu.memory_space<vmem>>, vector<1x256xf32>
    %225 = arith.mulf %223, %224 : vector<1x256xf32>
    %226 = arith.addf %215, %225 : vector<1x256xf32>
    %c0_117 = arith.constant 0 : index
    %c16 = arith.constant 16 : index
    %227 = memref.load %arg1[%c0_117, %c16] : memref<2x49xf32, #tpu.memory_space<smem>>
    %228 = vector.broadcast %227 : f32 to vector<1x256xf32>
    %229 = arith.mulf %228, %47 : vector<1x256xf32>
    %c1_118 = arith.constant 1 : index
    %c16_119 = arith.constant 16 : index
    %230 = memref.load %arg1[%c1_118, %c16_119] : memref<2x49xf32, #tpu.memory_space<smem>>
    %231 = vector.broadcast %230 : f32 to vector<1x256xf32>
    %232 = arith.mulf %231, %49 : vector<1x256xf32>
    %233 = arith.addf %229, %232 : vector<1x256xf32>
    %c17_i32 = arith.constant 17 : i32
    %234 = tpu.dynamic_rotate %233 by %c17_i32 dim 1 : vector<1x256xf32>, i32 -> vector<1x256xf32>
    %c16_120 = arith.constant 16 : index
    %c0_121 = arith.constant 0 : index
    %235 = vector.load %arg7[%c16_120, %c0_121] : memref<49x256xf32, #tpu.memory_space<vmem>>, vector<1x256xf32>
    %236 = arith.mulf %234, %235 : vector<1x256xf32>
    %237 = arith.addf %226, %236 : vector<1x256xf32>
    %c0_122 = arith.constant 0 : index
    %c17 = arith.constant 17 : index
    %238 = memref.load %arg1[%c0_122, %c17] : memref<2x49xf32, #tpu.memory_space<smem>>
    %239 = vector.broadcast %238 : f32 to vector<1x256xf32>
    %240 = arith.mulf %239, %47 : vector<1x256xf32>
    %c1_123 = arith.constant 1 : index
    %c17_124 = arith.constant 17 : index
    %241 = memref.load %arg1[%c1_123, %c17_124] : memref<2x49xf32, #tpu.memory_space<smem>>
    %242 = vector.broadcast %241 : f32 to vector<1x256xf32>
    %243 = arith.mulf %242, %49 : vector<1x256xf32>
    %244 = arith.addf %240, %243 : vector<1x256xf32>
    %c16_i32 = arith.constant 16 : i32
    %245 = tpu.dynamic_rotate %244 by %c16_i32 dim 1 : vector<1x256xf32>, i32 -> vector<1x256xf32>
    %c17_125 = arith.constant 17 : index
    %c0_126 = arith.constant 0 : index
    %246 = vector.load %arg7[%c17_125, %c0_126] : memref<49x256xf32, #tpu.memory_space<vmem>>, vector<1x256xf32>
    %247 = arith.mulf %245, %246 : vector<1x256xf32>
    %248 = arith.addf %237, %247 : vector<1x256xf32>
    %c0_127 = arith.constant 0 : index
    %c18 = arith.constant 18 : index
    %249 = memref.load %arg1[%c0_127, %c18] : memref<2x49xf32, #tpu.memory_space<smem>>
    %250 = vector.broadcast %249 : f32 to vector<1x256xf32>
    %251 = arith.mulf %250, %47 : vector<1x256xf32>
    %c1_128 = arith.constant 1 : index
    %c18_129 = arith.constant 18 : index
    %252 = memref.load %arg1[%c1_128, %c18_129] : memref<2x49xf32, #tpu.memory_space<smem>>
    %253 = vector.broadcast %252 : f32 to vector<1x256xf32>
    %254 = arith.mulf %253, %49 : vector<1x256xf32>
    %255 = arith.addf %251, %254 : vector<1x256xf32>
    %c15_i32 = arith.constant 15 : i32
    %256 = tpu.dynamic_rotate %255 by %c15_i32 dim 1 : vector<1x256xf32>, i32 -> vector<1x256xf32>
    %c18_130 = arith.constant 18 : index
    %c0_131 = arith.constant 0 : index
    %257 = vector.load %arg7[%c18_130, %c0_131] : memref<49x256xf32, #tpu.memory_space<vmem>>, vector<1x256xf32>
    %258 = arith.mulf %256, %257 : vector<1x256xf32>
    %259 = arith.addf %248, %258 : vector<1x256xf32>
    %c0_132 = arith.constant 0 : index
    %c19 = arith.constant 19 : index
    %260 = memref.load %arg1[%c0_132, %c19] : memref<2x49xf32, #tpu.memory_space<smem>>
    %261 = vector.broadcast %260 : f32 to vector<1x256xf32>
    %262 = arith.mulf %261, %47 : vector<1x256xf32>
    %c1_133 = arith.constant 1 : index
    %c19_134 = arith.constant 19 : index
    %263 = memref.load %arg1[%c1_133, %c19_134] : memref<2x49xf32, #tpu.memory_space<smem>>
    %264 = vector.broadcast %263 : f32 to vector<1x256xf32>
    %265 = arith.mulf %264, %49 : vector<1x256xf32>
    %266 = arith.addf %262, %265 : vector<1x256xf32>
    %c14_i32 = arith.constant 14 : i32
    %267 = tpu.dynamic_rotate %266 by %c14_i32 dim 1 : vector<1x256xf32>, i32 -> vector<1x256xf32>
    %c19_135 = arith.constant 19 : index
    %c0_136 = arith.constant 0 : index
    %268 = vector.load %arg7[%c19_135, %c0_136] : memref<49x256xf32, #tpu.memory_space<vmem>>, vector<1x256xf32>
    %269 = arith.mulf %267, %268 : vector<1x256xf32>
    %270 = arith.addf %259, %269 : vector<1x256xf32>
    %c0_137 = arith.constant 0 : index
    %c20 = arith.constant 20 : index
    %271 = memref.load %arg1[%c0_137, %c20] : memref<2x49xf32, #tpu.memory_space<smem>>
    %272 = vector.broadcast %271 : f32 to vector<1x256xf32>
    %273 = arith.mulf %272, %47 : vector<1x256xf32>
    %c1_138 = arith.constant 1 : index
    %c20_139 = arith.constant 20 : index
    %274 = memref.load %arg1[%c1_138, %c20_139] : memref<2x49xf32, #tpu.memory_space<smem>>
    %275 = vector.broadcast %274 : f32 to vector<1x256xf32>
    %276 = arith.mulf %275, %49 : vector<1x256xf32>
    %277 = arith.addf %273, %276 : vector<1x256xf32>
    %c13_i32 = arith.constant 13 : i32
    %278 = tpu.dynamic_rotate %277 by %c13_i32 dim 1 : vector<1x256xf32>, i32 -> vector<1x256xf32>
    %c20_140 = arith.constant 20 : index
    %c0_141 = arith.constant 0 : index
    %279 = vector.load %arg7[%c20_140, %c0_141] : memref<49x256xf32, #tpu.memory_space<vmem>>, vector<1x256xf32>
    %280 = arith.mulf %278, %279 : vector<1x256xf32>
    %281 = arith.addf %270, %280 : vector<1x256xf32>
    %c0_142 = arith.constant 0 : index
    %c21 = arith.constant 21 : index
    %282 = memref.load %arg1[%c0_142, %c21] : memref<2x49xf32, #tpu.memory_space<smem>>
    %283 = vector.broadcast %282 : f32 to vector<1x256xf32>
    %284 = arith.mulf %283, %47 : vector<1x256xf32>
    %c1_143 = arith.constant 1 : index
    %c21_144 = arith.constant 21 : index
    %285 = memref.load %arg1[%c1_143, %c21_144] : memref<2x49xf32, #tpu.memory_space<smem>>
    %286 = vector.broadcast %285 : f32 to vector<1x256xf32>
    %287 = arith.mulf %286, %49 : vector<1x256xf32>
    %288 = arith.addf %284, %287 : vector<1x256xf32>
    %c3_i32 = arith.constant 3 : i32
    %289 = tpu.dynamic_rotate %288 by %c3_i32 dim 1 : vector<1x256xf32>, i32 -> vector<1x256xf32>
    %c21_145 = arith.constant 21 : index
    %c0_146 = arith.constant 0 : index
    %290 = vector.load %arg7[%c21_145, %c0_146] : memref<49x256xf32, #tpu.memory_space<vmem>>, vector<1x256xf32>
    %291 = arith.mulf %289, %290 : vector<1x256xf32>
    %292 = arith.addf %281, %291 : vector<1x256xf32>
    %c0_147 = arith.constant 0 : index
    %c22 = arith.constant 22 : index
    %293 = memref.load %arg1[%c0_147, %c22] : memref<2x49xf32, #tpu.memory_space<smem>>
    %294 = vector.broadcast %293 : f32 to vector<1x256xf32>
    %295 = arith.mulf %294, %47 : vector<1x256xf32>
    %c1_148 = arith.constant 1 : index
    %c22_149 = arith.constant 22 : index
    %296 = memref.load %arg1[%c1_148, %c22_149] : memref<2x49xf32, #tpu.memory_space<smem>>
    %297 = vector.broadcast %296 : f32 to vector<1x256xf32>
    %298 = arith.mulf %297, %49 : vector<1x256xf32>
    %299 = arith.addf %295, %298 : vector<1x256xf32>
    %c2_i32 = arith.constant 2 : i32
    %300 = tpu.dynamic_rotate %299 by %c2_i32 dim 1 : vector<1x256xf32>, i32 -> vector<1x256xf32>
    %c22_150 = arith.constant 22 : index
    %c0_151 = arith.constant 0 : index
    %301 = vector.load %arg7[%c22_150, %c0_151] : memref<49x256xf32, #tpu.memory_space<vmem>>, vector<1x256xf32>
    %302 = arith.mulf %300, %301 : vector<1x256xf32>
    %303 = arith.addf %292, %302 : vector<1x256xf32>
    %c0_152 = arith.constant 0 : index
    %c23 = arith.constant 23 : index
    %304 = memref.load %arg1[%c0_152, %c23] : memref<2x49xf32, #tpu.memory_space<smem>>
    %305 = vector.broadcast %304 : f32 to vector<1x256xf32>
    %306 = arith.mulf %305, %47 : vector<1x256xf32>
    %c1_153 = arith.constant 1 : index
    %c23_154 = arith.constant 23 : index
    %307 = memref.load %arg1[%c1_153, %c23_154] : memref<2x49xf32, #tpu.memory_space<smem>>
    %308 = vector.broadcast %307 : f32 to vector<1x256xf32>
    %309 = arith.mulf %308, %49 : vector<1x256xf32>
    %310 = arith.addf %306, %309 : vector<1x256xf32>
    %c1_i32 = arith.constant 1 : i32
    %311 = tpu.dynamic_rotate %310 by %c1_i32 dim 1 : vector<1x256xf32>, i32 -> vector<1x256xf32>
    %c23_155 = arith.constant 23 : index
    %c0_156 = arith.constant 0 : index
    %312 = vector.load %arg7[%c23_155, %c0_156] : memref<49x256xf32, #tpu.memory_space<vmem>>, vector<1x256xf32>
    %313 = arith.mulf %311, %312 : vector<1x256xf32>
    %314 = arith.addf %303, %313 : vector<1x256xf32>
    %c0_157 = arith.constant 0 : index
    %c24 = arith.constant 24 : index
    %315 = memref.load %arg1[%c0_157, %c24] : memref<2x49xf32, #tpu.memory_space<smem>>
    %316 = vector.broadcast %315 : f32 to vector<1x256xf32>
    %317 = arith.mulf %316, %47 : vector<1x256xf32>
    %c1_158 = arith.constant 1 : index
    %c24_159 = arith.constant 24 : index
    %318 = memref.load %arg1[%c1_158, %c24_159] : memref<2x49xf32, #tpu.memory_space<smem>>
    %319 = vector.broadcast %318 : f32 to vector<1x256xf32>
    %320 = arith.mulf %319, %49 : vector<1x256xf32>
    %321 = arith.addf %317, %320 : vector<1x256xf32>
    %c24_160 = arith.constant 24 : index
    %c0_161 = arith.constant 0 : index
    %322 = vector.load %arg7[%c24_160, %c0_161] : memref<49x256xf32, #tpu.memory_space<vmem>>, vector<1x256xf32>
    %323 = arith.mulf %321, %322 : vector<1x256xf32>
    %324 = arith.addf %314, %323 : vector<1x256xf32>
    %c0_162 = arith.constant 0 : index
    %c25 = arith.constant 25 : index
    %325 = memref.load %arg1[%c0_162, %c25] : memref<2x49xf32, #tpu.memory_space<smem>>
    %326 = vector.broadcast %325 : f32 to vector<1x256xf32>
    %327 = arith.mulf %326, %47 : vector<1x256xf32>
    %c1_163 = arith.constant 1 : index
    %c25_164 = arith.constant 25 : index
    %328 = memref.load %arg1[%c1_163, %c25_164] : memref<2x49xf32, #tpu.memory_space<smem>>
    %329 = vector.broadcast %328 : f32 to vector<1x256xf32>
    %330 = arith.mulf %329, %49 : vector<1x256xf32>
    %331 = arith.addf %327, %330 : vector<1x256xf32>
    %c255_i32 = arith.constant 255 : i32
    %332 = tpu.dynamic_rotate %331 by %c255_i32 dim 1 : vector<1x256xf32>, i32 -> vector<1x256xf32>
    %c25_165 = arith.constant 25 : index
    %c0_166 = arith.constant 0 : index
    %333 = vector.load %arg7[%c25_165, %c0_166] : memref<49x256xf32, #tpu.memory_space<vmem>>, vector<1x256xf32>
    %334 = arith.mulf %332, %333 : vector<1x256xf32>
    %335 = arith.addf %324, %334 : vector<1x256xf32>
    %c0_167 = arith.constant 0 : index
    %c26 = arith.constant 26 : index
    %336 = memref.load %arg1[%c0_167, %c26] : memref<2x49xf32, #tpu.memory_space<smem>>
    %337 = vector.broadcast %336 : f32 to vector<1x256xf32>
    %338 = arith.mulf %337, %47 : vector<1x256xf32>
    %c1_168 = arith.constant 1 : index
    %c26_169 = arith.constant 26 : index
    %339 = memref.load %arg1[%c1_168, %c26_169] : memref<2x49xf32, #tpu.memory_space<smem>>
    %340 = vector.broadcast %339 : f32 to vector<1x256xf32>
    %341 = arith.mulf %340, %49 : vector<1x256xf32>
    %342 = arith.addf %338, %341 : vector<1x256xf32>
    %c254_i32 = arith.constant 254 : i32
    %343 = tpu.dynamic_rotate %342 by %c254_i32 dim 1 : vector<1x256xf32>, i32 -> vector<1x256xf32>
    %c26_170 = arith.constant 26 : index
    %c0_171 = arith.constant 0 : index
    %344 = vector.load %arg7[%c26_170, %c0_171] : memref<49x256xf32, #tpu.memory_space<vmem>>, vector<1x256xf32>
    %345 = arith.mulf %343, %344 : vector<1x256xf32>
    %346 = arith.addf %335, %345 : vector<1x256xf32>
    %c0_172 = arith.constant 0 : index
    %c27 = arith.constant 27 : index
    %347 = memref.load %arg1[%c0_172, %c27] : memref<2x49xf32, #tpu.memory_space<smem>>
    %348 = vector.broadcast %347 : f32 to vector<1x256xf32>
    %349 = arith.mulf %348, %47 : vector<1x256xf32>
    %c1_173 = arith.constant 1 : index
    %c27_174 = arith.constant 27 : index
    %350 = memref.load %arg1[%c1_173, %c27_174] : memref<2x49xf32, #tpu.memory_space<smem>>
    %351 = vector.broadcast %350 : f32 to vector<1x256xf32>
    %352 = arith.mulf %351, %49 : vector<1x256xf32>
    %353 = arith.addf %349, %352 : vector<1x256xf32>
    %c253_i32 = arith.constant 253 : i32
    %354 = tpu.dynamic_rotate %353 by %c253_i32 dim 1 : vector<1x256xf32>, i32 -> vector<1x256xf32>
    %c27_175 = arith.constant 27 : index
    %c0_176 = arith.constant 0 : index
    %355 = vector.load %arg7[%c27_175, %c0_176] : memref<49x256xf32, #tpu.memory_space<vmem>>, vector<1x256xf32>
    %356 = arith.mulf %354, %355 : vector<1x256xf32>
    %357 = arith.addf %346, %356 : vector<1x256xf32>
    %c0_177 = arith.constant 0 : index
    %c28 = arith.constant 28 : index
    %358 = memref.load %arg1[%c0_177, %c28] : memref<2x49xf32, #tpu.memory_space<smem>>
    %359 = vector.broadcast %358 : f32 to vector<1x256xf32>
    %360 = arith.mulf %359, %47 : vector<1x256xf32>
    %c1_178 = arith.constant 1 : index
    %c28_179 = arith.constant 28 : index
    %361 = memref.load %arg1[%c1_178, %c28_179] : memref<2x49xf32, #tpu.memory_space<smem>>
    %362 = vector.broadcast %361 : f32 to vector<1x256xf32>
    %363 = arith.mulf %362, %49 : vector<1x256xf32>
    %364 = arith.addf %360, %363 : vector<1x256xf32>
    %c243_i32 = arith.constant 243 : i32
    %365 = tpu.dynamic_rotate %364 by %c243_i32 dim 1 : vector<1x256xf32>, i32 -> vector<1x256xf32>
    %c28_180 = arith.constant 28 : index
    %c0_181 = arith.constant 0 : index
    %366 = vector.load %arg7[%c28_180, %c0_181] : memref<49x256xf32, #tpu.memory_space<vmem>>, vector<1x256xf32>
    %367 = arith.mulf %365, %366 : vector<1x256xf32>
    %368 = arith.addf %357, %367 : vector<1x256xf32>
    %c0_182 = arith.constant 0 : index
    %c29 = arith.constant 29 : index
    %369 = memref.load %arg1[%c0_182, %c29] : memref<2x49xf32, #tpu.memory_space<smem>>
    %370 = vector.broadcast %369 : f32 to vector<1x256xf32>
    %371 = arith.mulf %370, %47 : vector<1x256xf32>
    %c1_183 = arith.constant 1 : index
    %c29_184 = arith.constant 29 : index
    %372 = memref.load %arg1[%c1_183, %c29_184] : memref<2x49xf32, #tpu.memory_space<smem>>
    %373 = vector.broadcast %372 : f32 to vector<1x256xf32>
    %374 = arith.mulf %373, %49 : vector<1x256xf32>
    %375 = arith.addf %371, %374 : vector<1x256xf32>
    %c242_i32 = arith.constant 242 : i32
    %376 = tpu.dynamic_rotate %375 by %c242_i32 dim 1 : vector<1x256xf32>, i32 -> vector<1x256xf32>
    %c29_185 = arith.constant 29 : index
    %c0_186 = arith.constant 0 : index
    %377 = vector.load %arg7[%c29_185, %c0_186] : memref<49x256xf32, #tpu.memory_space<vmem>>, vector<1x256xf32>
    %378 = arith.mulf %376, %377 : vector<1x256xf32>
    %379 = arith.addf %368, %378 : vector<1x256xf32>
    %c0_187 = arith.constant 0 : index
    %c30 = arith.constant 30 : index
    %380 = memref.load %arg1[%c0_187, %c30] : memref<2x49xf32, #tpu.memory_space<smem>>
    %381 = vector.broadcast %380 : f32 to vector<1x256xf32>
    %382 = arith.mulf %381, %47 : vector<1x256xf32>
    %c1_188 = arith.constant 1 : index
    %c30_189 = arith.constant 30 : index
    %383 = memref.load %arg1[%c1_188, %c30_189] : memref<2x49xf32, #tpu.memory_space<smem>>
    %384 = vector.broadcast %383 : f32 to vector<1x256xf32>
    %385 = arith.mulf %384, %49 : vector<1x256xf32>
    %386 = arith.addf %382, %385 : vector<1x256xf32>
    %c241_i32 = arith.constant 241 : i32
    %387 = tpu.dynamic_rotate %386 by %c241_i32 dim 1 : vector<1x256xf32>, i32 -> vector<1x256xf32>
    %c30_190 = arith.constant 30 : index
    %c0_191 = arith.constant 0 : index
    %388 = vector.load %arg7[%c30_190, %c0_191] : memref<49x256xf32, #tpu.memory_space<vmem>>, vector<1x256xf32>
    %389 = arith.mulf %387, %388 : vector<1x256xf32>
    %390 = arith.addf %379, %389 : vector<1x256xf32>
    %c0_192 = arith.constant 0 : index
    %c31 = arith.constant 31 : index
    %391 = memref.load %arg1[%c0_192, %c31] : memref<2x49xf32, #tpu.memory_space<smem>>
    %392 = vector.broadcast %391 : f32 to vector<1x256xf32>
    %393 = arith.mulf %392, %47 : vector<1x256xf32>
    %c1_193 = arith.constant 1 : index
    %c31_194 = arith.constant 31 : index
    %394 = memref.load %arg1[%c1_193, %c31_194] : memref<2x49xf32, #tpu.memory_space<smem>>
    %395 = vector.broadcast %394 : f32 to vector<1x256xf32>
    %396 = arith.mulf %395, %49 : vector<1x256xf32>
    %397 = arith.addf %393, %396 : vector<1x256xf32>
    %c240_i32 = arith.constant 240 : i32
    %398 = tpu.dynamic_rotate %397 by %c240_i32 dim 1 : vector<1x256xf32>, i32 -> vector<1x256xf32>
    %c31_195 = arith.constant 31 : index
    %c0_196 = arith.constant 0 : index
    %399 = vector.load %arg7[%c31_195, %c0_196] : memref<49x256xf32, #tpu.memory_space<vmem>>, vector<1x256xf32>
    %400 = arith.mulf %398, %399 : vector<1x256xf32>
    %401 = arith.addf %390, %400 : vector<1x256xf32>
    %c0_197 = arith.constant 0 : index
    %c32 = arith.constant 32 : index
    %402 = memref.load %arg1[%c0_197, %c32] : memref<2x49xf32, #tpu.memory_space<smem>>
    %403 = vector.broadcast %402 : f32 to vector<1x256xf32>
    %404 = arith.mulf %403, %47 : vector<1x256xf32>
    %c1_198 = arith.constant 1 : index
    %c32_199 = arith.constant 32 : index
    %405 = memref.load %arg1[%c1_198, %c32_199] : memref<2x49xf32, #tpu.memory_space<smem>>
    %406 = vector.broadcast %405 : f32 to vector<1x256xf32>
    %407 = arith.mulf %406, %49 : vector<1x256xf32>
    %408 = arith.addf %404, %407 : vector<1x256xf32>
    %c239_i32 = arith.constant 239 : i32
    %409 = tpu.dynamic_rotate %408 by %c239_i32 dim 1 : vector<1x256xf32>, i32 -> vector<1x256xf32>
    %c32_200 = arith.constant 32 : index
    %c0_201 = arith.constant 0 : index
    %410 = vector.load %arg7[%c32_200, %c0_201] : memref<49x256xf32, #tpu.memory_space<vmem>>, vector<1x256xf32>
    %411 = arith.mulf %409, %410 : vector<1x256xf32>
    %412 = arith.addf %401, %411 : vector<1x256xf32>
    %c0_202 = arith.constant 0 : index
    %c33 = arith.constant 33 : index
    %413 = memref.load %arg1[%c0_202, %c33] : memref<2x49xf32, #tpu.memory_space<smem>>
    %414 = vector.broadcast %413 : f32 to vector<1x256xf32>
    %415 = arith.mulf %414, %47 : vector<1x256xf32>
    %c1_203 = arith.constant 1 : index
    %c33_204 = arith.constant 33 : index
    %416 = memref.load %arg1[%c1_203, %c33_204] : memref<2x49xf32, #tpu.memory_space<smem>>
    %417 = vector.broadcast %416 : f32 to vector<1x256xf32>
    %418 = arith.mulf %417, %49 : vector<1x256xf32>
    %419 = arith.addf %415, %418 : vector<1x256xf32>
    %c238_i32 = arith.constant 238 : i32
    %420 = tpu.dynamic_rotate %419 by %c238_i32 dim 1 : vector<1x256xf32>, i32 -> vector<1x256xf32>
    %c33_205 = arith.constant 33 : index
    %c0_206 = arith.constant 0 : index
    %421 = vector.load %arg7[%c33_205, %c0_206] : memref<49x256xf32, #tpu.memory_space<vmem>>, vector<1x256xf32>
    %422 = arith.mulf %420, %421 : vector<1x256xf32>
    %423 = arith.addf %412, %422 : vector<1x256xf32>
    %c0_207 = arith.constant 0 : index
    %c34 = arith.constant 34 : index
    %424 = memref.load %arg1[%c0_207, %c34] : memref<2x49xf32, #tpu.memory_space<smem>>
    %425 = vector.broadcast %424 : f32 to vector<1x256xf32>
    %426 = arith.mulf %425, %47 : vector<1x256xf32>
    %c1_208 = arith.constant 1 : index
    %c34_209 = arith.constant 34 : index
    %427 = memref.load %arg1[%c1_208, %c34_209] : memref<2x49xf32, #tpu.memory_space<smem>>
    %428 = vector.broadcast %427 : f32 to vector<1x256xf32>
    %429 = arith.mulf %428, %49 : vector<1x256xf32>
    %430 = arith.addf %426, %429 : vector<1x256xf32>
    %c237_i32 = arith.constant 237 : i32
    %431 = tpu.dynamic_rotate %430 by %c237_i32 dim 1 : vector<1x256xf32>, i32 -> vector<1x256xf32>
    %c34_210 = arith.constant 34 : index
    %c0_211 = arith.constant 0 : index
    %432 = vector.load %arg7[%c34_210, %c0_211] : memref<49x256xf32, #tpu.memory_space<vmem>>, vector<1x256xf32>
    %433 = arith.mulf %431, %432 : vector<1x256xf32>
    %434 = arith.addf %423, %433 : vector<1x256xf32>
    %c0_212 = arith.constant 0 : index
    %c35 = arith.constant 35 : index
    %435 = memref.load %arg1[%c0_212, %c35] : memref<2x49xf32, #tpu.memory_space<smem>>
    %436 = vector.broadcast %435 : f32 to vector<1x256xf32>
    %437 = arith.mulf %436, %47 : vector<1x256xf32>
    %c1_213 = arith.constant 1 : index
    %c35_214 = arith.constant 35 : index
    %438 = memref.load %arg1[%c1_213, %c35_214] : memref<2x49xf32, #tpu.memory_space<smem>>
    %439 = vector.broadcast %438 : f32 to vector<1x256xf32>
    %440 = arith.mulf %439, %49 : vector<1x256xf32>
    %441 = arith.addf %437, %440 : vector<1x256xf32>
    %c227_i32 = arith.constant 227 : i32
    %442 = tpu.dynamic_rotate %441 by %c227_i32 dim 1 : vector<1x256xf32>, i32 -> vector<1x256xf32>
    %c35_215 = arith.constant 35 : index
    %c0_216 = arith.constant 0 : index
    %443 = vector.load %arg7[%c35_215, %c0_216] : memref<49x256xf32, #tpu.memory_space<vmem>>, vector<1x256xf32>
    %444 = arith.mulf %442, %443 : vector<1x256xf32>
    %445 = arith.addf %434, %444 : vector<1x256xf32>
    %c0_217 = arith.constant 0 : index
    %c36 = arith.constant 36 : index
    %446 = memref.load %arg1[%c0_217, %c36] : memref<2x49xf32, #tpu.memory_space<smem>>
    %447 = vector.broadcast %446 : f32 to vector<1x256xf32>
    %448 = arith.mulf %447, %47 : vector<1x256xf32>
    %c1_218 = arith.constant 1 : index
    %c36_219 = arith.constant 36 : index
    %449 = memref.load %arg1[%c1_218, %c36_219] : memref<2x49xf32, #tpu.memory_space<smem>>
    %450 = vector.broadcast %449 : f32 to vector<1x256xf32>
    %451 = arith.mulf %450, %49 : vector<1x256xf32>
    %452 = arith.addf %448, %451 : vector<1x256xf32>
    %c226_i32 = arith.constant 226 : i32
    %453 = tpu.dynamic_rotate %452 by %c226_i32 dim 1 : vector<1x256xf32>, i32 -> vector<1x256xf32>
    %c36_220 = arith.constant 36 : index
    %c0_221 = arith.constant 0 : index
    %454 = vector.load %arg7[%c36_220, %c0_221] : memref<49x256xf32, #tpu.memory_space<vmem>>, vector<1x256xf32>
    %455 = arith.mulf %453, %454 : vector<1x256xf32>
    %456 = arith.addf %445, %455 : vector<1x256xf32>
    %c0_222 = arith.constant 0 : index
    %c37 = arith.constant 37 : index
    %457 = memref.load %arg1[%c0_222, %c37] : memref<2x49xf32, #tpu.memory_space<smem>>
    %458 = vector.broadcast %457 : f32 to vector<1x256xf32>
    %459 = arith.mulf %458, %47 : vector<1x256xf32>
    %c1_223 = arith.constant 1 : index
    %c37_224 = arith.constant 37 : index
    %460 = memref.load %arg1[%c1_223, %c37_224] : memref<2x49xf32, #tpu.memory_space<smem>>
    %461 = vector.broadcast %460 : f32 to vector<1x256xf32>
    %462 = arith.mulf %461, %49 : vector<1x256xf32>
    %463 = arith.addf %459, %462 : vector<1x256xf32>
    %c225_i32 = arith.constant 225 : i32
    %464 = tpu.dynamic_rotate %463 by %c225_i32 dim 1 : vector<1x256xf32>, i32 -> vector<1x256xf32>
    %c37_225 = arith.constant 37 : index
    %c0_226 = arith.constant 0 : index
    %465 = vector.load %arg7[%c37_225, %c0_226] : memref<49x256xf32, #tpu.memory_space<vmem>>, vector<1x256xf32>
    %466 = arith.mulf %464, %465 : vector<1x256xf32>
    %467 = arith.addf %456, %466 : vector<1x256xf32>
    %c0_227 = arith.constant 0 : index
    %c38 = arith.constant 38 : index
    %468 = memref.load %arg1[%c0_227, %c38] : memref<2x49xf32, #tpu.memory_space<smem>>
    %469 = vector.broadcast %468 : f32 to vector<1x256xf32>
    %470 = arith.mulf %469, %47 : vector<1x256xf32>
    %c1_228 = arith.constant 1 : index
    %c38_229 = arith.constant 38 : index
    %471 = memref.load %arg1[%c1_228, %c38_229] : memref<2x49xf32, #tpu.memory_space<smem>>
    %472 = vector.broadcast %471 : f32 to vector<1x256xf32>
    %473 = arith.mulf %472, %49 : vector<1x256xf32>
    %474 = arith.addf %470, %473 : vector<1x256xf32>
    %c224_i32 = arith.constant 224 : i32
    %475 = tpu.dynamic_rotate %474 by %c224_i32 dim 1 : vector<1x256xf32>, i32 -> vector<1x256xf32>
    %c38_230 = arith.constant 38 : index
    %c0_231 = arith.constant 0 : index
    %476 = vector.load %arg7[%c38_230, %c0_231] : memref<49x256xf32, #tpu.memory_space<vmem>>, vector<1x256xf32>
    %477 = arith.mulf %475, %476 : vector<1x256xf32>
    %478 = arith.addf %467, %477 : vector<1x256xf32>
    %c0_232 = arith.constant 0 : index
    %c39 = arith.constant 39 : index
    %479 = memref.load %arg1[%c0_232, %c39] : memref<2x49xf32, #tpu.memory_space<smem>>
    %480 = vector.broadcast %479 : f32 to vector<1x256xf32>
    %481 = arith.mulf %480, %47 : vector<1x256xf32>
    %c1_233 = arith.constant 1 : index
    %c39_234 = arith.constant 39 : index
    %482 = memref.load %arg1[%c1_233, %c39_234] : memref<2x49xf32, #tpu.memory_space<smem>>
    %483 = vector.broadcast %482 : f32 to vector<1x256xf32>
    %484 = arith.mulf %483, %49 : vector<1x256xf32>
    %485 = arith.addf %481, %484 : vector<1x256xf32>
    %c223_i32 = arith.constant 223 : i32
    %486 = tpu.dynamic_rotate %485 by %c223_i32 dim 1 : vector<1x256xf32>, i32 -> vector<1x256xf32>
    %c39_235 = arith.constant 39 : index
    %c0_236 = arith.constant 0 : index
    %487 = vector.load %arg7[%c39_235, %c0_236] : memref<49x256xf32, #tpu.memory_space<vmem>>, vector<1x256xf32>
    %488 = arith.mulf %486, %487 : vector<1x256xf32>
    %489 = arith.addf %478, %488 : vector<1x256xf32>
    %c0_237 = arith.constant 0 : index
    %c40 = arith.constant 40 : index
    %490 = memref.load %arg1[%c0_237, %c40] : memref<2x49xf32, #tpu.memory_space<smem>>
    %491 = vector.broadcast %490 : f32 to vector<1x256xf32>
    %492 = arith.mulf %491, %47 : vector<1x256xf32>
    %c1_238 = arith.constant 1 : index
    %c40_239 = arith.constant 40 : index
    %493 = memref.load %arg1[%c1_238, %c40_239] : memref<2x49xf32, #tpu.memory_space<smem>>
    %494 = vector.broadcast %493 : f32 to vector<1x256xf32>
    %495 = arith.mulf %494, %49 : vector<1x256xf32>
    %496 = arith.addf %492, %495 : vector<1x256xf32>
    %c222_i32 = arith.constant 222 : i32
    %497 = tpu.dynamic_rotate %496 by %c222_i32 dim 1 : vector<1x256xf32>, i32 -> vector<1x256xf32>
    %c40_240 = arith.constant 40 : index
    %c0_241 = arith.constant 0 : index
    %498 = vector.load %arg7[%c40_240, %c0_241] : memref<49x256xf32, #tpu.memory_space<vmem>>, vector<1x256xf32>
    %499 = arith.mulf %497, %498 : vector<1x256xf32>
    %500 = arith.addf %489, %499 : vector<1x256xf32>
    %c0_242 = arith.constant 0 : index
    %c41 = arith.constant 41 : index
    %501 = memref.load %arg1[%c0_242, %c41] : memref<2x49xf32, #tpu.memory_space<smem>>
    %502 = vector.broadcast %501 : f32 to vector<1x256xf32>
    %503 = arith.mulf %502, %47 : vector<1x256xf32>
    %c1_243 = arith.constant 1 : index
    %c41_244 = arith.constant 41 : index
    %504 = memref.load %arg1[%c1_243, %c41_244] : memref<2x49xf32, #tpu.memory_space<smem>>
    %505 = vector.broadcast %504 : f32 to vector<1x256xf32>
    %506 = arith.mulf %505, %49 : vector<1x256xf32>
    %507 = arith.addf %503, %506 : vector<1x256xf32>
    %c221_i32 = arith.constant 221 : i32
    %508 = tpu.dynamic_rotate %507 by %c221_i32 dim 1 : vector<1x256xf32>, i32 -> vector<1x256xf32>
    %c41_245 = arith.constant 41 : index
    %c0_246 = arith.constant 0 : index
    %509 = vector.load %arg7[%c41_245, %c0_246] : memref<49x256xf32, #tpu.memory_space<vmem>>, vector<1x256xf32>
    %510 = arith.mulf %508, %509 : vector<1x256xf32>
    %511 = arith.addf %500, %510 : vector<1x256xf32>
    %c0_247 = arith.constant 0 : index
    %c42 = arith.constant 42 : index
    %512 = memref.load %arg1[%c0_247, %c42] : memref<2x49xf32, #tpu.memory_space<smem>>
    %513 = vector.broadcast %512 : f32 to vector<1x256xf32>
    %514 = arith.mulf %513, %47 : vector<1x256xf32>
    %c1_248 = arith.constant 1 : index
    %c42_249 = arith.constant 42 : index
    %515 = memref.load %arg1[%c1_248, %c42_249] : memref<2x49xf32, #tpu.memory_space<smem>>
    %516 = vector.broadcast %515 : f32 to vector<1x256xf32>
    %517 = arith.mulf %516, %49 : vector<1x256xf32>
    %518 = arith.addf %514, %517 : vector<1x256xf32>
    %c211_i32 = arith.constant 211 : i32
    %519 = tpu.dynamic_rotate %518 by %c211_i32 dim 1 : vector<1x256xf32>, i32 -> vector<1x256xf32>
    %c42_250 = arith.constant 42 : index
    %c0_251 = arith.constant 0 : index
    %520 = vector.load %arg7[%c42_250, %c0_251] : memref<49x256xf32, #tpu.memory_space<vmem>>, vector<1x256xf32>
    %521 = arith.mulf %519, %520 : vector<1x256xf32>
    %522 = arith.addf %511, %521 : vector<1x256xf32>
    %c0_252 = arith.constant 0 : index
    %c43 = arith.constant 43 : index
    %523 = memref.load %arg1[%c0_252, %c43] : memref<2x49xf32, #tpu.memory_space<smem>>
    %524 = vector.broadcast %523 : f32 to vector<1x256xf32>
    %525 = arith.mulf %524, %47 : vector<1x256xf32>
    %c1_253 = arith.constant 1 : index
    %c43_254 = arith.constant 43 : index
    %526 = memref.load %arg1[%c1_253, %c43_254] : memref<2x49xf32, #tpu.memory_space<smem>>
    %527 = vector.broadcast %526 : f32 to vector<1x256xf32>
    %528 = arith.mulf %527, %49 : vector<1x256xf32>
    %529 = arith.addf %525, %528 : vector<1x256xf32>
    %c210_i32 = arith.constant 210 : i32
    %530 = tpu.dynamic_rotate %529 by %c210_i32 dim 1 : vector<1x256xf32>, i32 -> vector<1x256xf32>
    %c43_255 = arith.constant 43 : index
    %c0_256 = arith.constant 0 : index
    %531 = vector.load %arg7[%c43_255, %c0_256] : memref<49x256xf32, #tpu.memory_space<vmem>>, vector<1x256xf32>
    %532 = arith.mulf %530, %531 : vector<1x256xf32>
    %533 = arith.addf %522, %532 : vector<1x256xf32>
    %c0_257 = arith.constant 0 : index
    %c44 = arith.constant 44 : index
    %534 = memref.load %arg1[%c0_257, %c44] : memref<2x49xf32, #tpu.memory_space<smem>>
    %535 = vector.broadcast %534 : f32 to vector<1x256xf32>
    %536 = arith.mulf %535, %47 : vector<1x256xf32>
    %c1_258 = arith.constant 1 : index
    %c44_259 = arith.constant 44 : index
    %537 = memref.load %arg1[%c1_258, %c44_259] : memref<2x49xf32, #tpu.memory_space<smem>>
    %538 = vector.broadcast %537 : f32 to vector<1x256xf32>
    %539 = arith.mulf %538, %49 : vector<1x256xf32>
    %540 = arith.addf %536, %539 : vector<1x256xf32>
    %c209_i32 = arith.constant 209 : i32
    %541 = tpu.dynamic_rotate %540 by %c209_i32 dim 1 : vector<1x256xf32>, i32 -> vector<1x256xf32>
    %c44_260 = arith.constant 44 : index
    %c0_261 = arith.constant 0 : index
    %542 = vector.load %arg7[%c44_260, %c0_261] : memref<49x256xf32, #tpu.memory_space<vmem>>, vector<1x256xf32>
    %543 = arith.mulf %541, %542 : vector<1x256xf32>
    %544 = arith.addf %533, %543 : vector<1x256xf32>
    %c0_262 = arith.constant 0 : index
    %c45 = arith.constant 45 : index
    %545 = memref.load %arg1[%c0_262, %c45] : memref<2x49xf32, #tpu.memory_space<smem>>
    %546 = vector.broadcast %545 : f32 to vector<1x256xf32>
    %547 = arith.mulf %546, %47 : vector<1x256xf32>
    %c1_263 = arith.constant 1 : index
    %c45_264 = arith.constant 45 : index
    %548 = memref.load %arg1[%c1_263, %c45_264] : memref<2x49xf32, #tpu.memory_space<smem>>
    %549 = vector.broadcast %548 : f32 to vector<1x256xf32>
    %550 = arith.mulf %549, %49 : vector<1x256xf32>
    %551 = arith.addf %547, %550 : vector<1x256xf32>
    %c208_i32 = arith.constant 208 : i32
    %552 = tpu.dynamic_rotate %551 by %c208_i32 dim 1 : vector<1x256xf32>, i32 -> vector<1x256xf32>
    %c45_265 = arith.constant 45 : index
    %c0_266 = arith.constant 0 : index
    %553 = vector.load %arg7[%c45_265, %c0_266] : memref<49x256xf32, #tpu.memory_space<vmem>>, vector<1x256xf32>
    %554 = arith.mulf %552, %553 : vector<1x256xf32>
    %555 = arith.addf %544, %554 : vector<1x256xf32>
    %c0_267 = arith.constant 0 : index
    %c46 = arith.constant 46 : index
    %556 = memref.load %arg1[%c0_267, %c46] : memref<2x49xf32, #tpu.memory_space<smem>>
    %557 = vector.broadcast %556 : f32 to vector<1x256xf32>
    %558 = arith.mulf %557, %47 : vector<1x256xf32>
    %c1_268 = arith.constant 1 : index
    %c46_269 = arith.constant 46 : index
    %559 = memref.load %arg1[%c1_268, %c46_269] : memref<2x49xf32, #tpu.memory_space<smem>>
    %560 = vector.broadcast %559 : f32 to vector<1x256xf32>
    %561 = arith.mulf %560, %49 : vector<1x256xf32>
    %562 = arith.addf %558, %561 : vector<1x256xf32>
    %c207_i32 = arith.constant 207 : i32
    %563 = tpu.dynamic_rotate %562 by %c207_i32 dim 1 : vector<1x256xf32>, i32 -> vector<1x256xf32>
    %c46_270 = arith.constant 46 : index
    %c0_271 = arith.constant 0 : index
    %564 = vector.load %arg7[%c46_270, %c0_271] : memref<49x256xf32, #tpu.memory_space<vmem>>, vector<1x256xf32>
    %565 = arith.mulf %563, %564 : vector<1x256xf32>
    %566 = arith.addf %555, %565 : vector<1x256xf32>
    %c0_272 = arith.constant 0 : index
    %c47 = arith.constant 47 : index
    %567 = memref.load %arg1[%c0_272, %c47] : memref<2x49xf32, #tpu.memory_space<smem>>
    %568 = vector.broadcast %567 : f32 to vector<1x256xf32>
    %569 = arith.mulf %568, %47 : vector<1x256xf32>
    %c1_273 = arith.constant 1 : index
    %c47_274 = arith.constant 47 : index
    %570 = memref.load %arg1[%c1_273, %c47_274] : memref<2x49xf32, #tpu.memory_space<smem>>
    %571 = vector.broadcast %570 : f32 to vector<1x256xf32>
    %572 = arith.mulf %571, %49 : vector<1x256xf32>
    %573 = arith.addf %569, %572 : vector<1x256xf32>
    %c206_i32 = arith.constant 206 : i32
    %574 = tpu.dynamic_rotate %573 by %c206_i32 dim 1 : vector<1x256xf32>, i32 -> vector<1x256xf32>
    %c47_275 = arith.constant 47 : index
    %c0_276 = arith.constant 0 : index
    %575 = vector.load %arg7[%c47_275, %c0_276] : memref<49x256xf32, #tpu.memory_space<vmem>>, vector<1x256xf32>
    %576 = arith.mulf %574, %575 : vector<1x256xf32>
    %577 = arith.addf %566, %576 : vector<1x256xf32>
    %c0_277 = arith.constant 0 : index
    %c48 = arith.constant 48 : index
    %578 = memref.load %arg1[%c0_277, %c48] : memref<2x49xf32, #tpu.memory_space<smem>>
    %579 = vector.broadcast %578 : f32 to vector<1x256xf32>
    %580 = arith.mulf %579, %47 : vector<1x256xf32>
    %c1_278 = arith.constant 1 : index
    %c48_279 = arith.constant 48 : index
    %581 = memref.load %arg1[%c1_278, %c48_279] : memref<2x49xf32, #tpu.memory_space<smem>>
    %582 = vector.broadcast %581 : f32 to vector<1x256xf32>
    %583 = arith.mulf %582, %49 : vector<1x256xf32>
    %584 = arith.addf %580, %583 : vector<1x256xf32>
    %c205_i32 = arith.constant 205 : i32
    %585 = tpu.dynamic_rotate %584 by %c205_i32 dim 1 : vector<1x256xf32>, i32 -> vector<1x256xf32>
    %c48_280 = arith.constant 48 : index
    %c0_281 = arith.constant 0 : index
    %586 = vector.load %arg7[%c48_280, %c0_281] : memref<49x256xf32, #tpu.memory_space<vmem>>, vector<1x256xf32>
    %587 = arith.mulf %585, %586 : vector<1x256xf32>
    %588 = arith.addf %577, %587 : vector<1x256xf32>
    %cst_282 = arith.constant dense<0.000000e+00> : vector<1xf32>
    %589 = vector.multi_reduction <add>, %588, %cst_282 [1] : vector<1x256xf32> to vector<1xf32>
    %590 = vector.shape_cast %589 : vector<1xf32> to vector<1x1xf32>
    %cst_283 = arith.constant 2.560000e+02 : f32
    %591 = vector.broadcast %cst_283 : f32 to vector<1x1xf32>
    %592 = arith.divf %590, %591 : vector<1x1xf32>
    %593 = vector.broadcast %592 : vector<1x1xf32> to vector<1x256xf32>
    %594 = arith.subf %588, %593 : vector<1x256xf32>
    %595 = arith.mulf %594, %594 : vector<1x256xf32>
    %cst_284 = arith.constant dense<0.000000e+00> : vector<1xf32>
    %596 = vector.multi_reduction <add>, %595, %cst_284 [1] : vector<1x256xf32> to vector<1xf32>
    %597 = vector.shape_cast %596 : vector<1xf32> to vector<1x1xf32>
    %cst_285 = arith.constant 2.560000e+02 : f32
    %598 = vector.broadcast %cst_285 : f32 to vector<1x1xf32>
    %599 = arith.divf %597, %598 : vector<1x1xf32>
    %600 = vector.broadcast %592 : vector<1x1xf32> to vector<1x256xf32>
    %601 = arith.subf %588, %600 : vector<1x256xf32>
    %cst_286 = arith.constant 9.99999974E-6 : f32
    %602 = vector.broadcast %cst_286 : f32 to vector<1x1xf32>
    %603 = arith.addf %599, %602 : vector<1x1xf32>
    %604 = math.rsqrt %603 : vector<1x1xf32>
    %605 = vector.broadcast %604 : vector<1x1xf32> to vector<1x256xf32>
    %606 = arith.mulf %601, %605 : vector<1x256xf32>
    %c0_287 = arith.constant 0 : index
    %c0_288 = arith.constant 0 : index
    %607 = memref.load %arg2[%c0_287, %c0_288] : memref<1x2xf32, #tpu.memory_space<smem>>
    %608 = vector.broadcast %607 : f32 to vector<1x256xf32>
    %609 = arith.mulf %606, %608 : vector<1x256xf32>
    %c0_289 = arith.constant 0 : index
    %c1_290 = arith.constant 1 : index
    %610 = memref.load %arg2[%c0_289, %c1_290] : memref<1x2xf32, #tpu.memory_space<smem>>
    %611 = vector.broadcast %610 : f32 to vector<1x256xf32>
    %612 = arith.addf %609, %611 : vector<1x256xf32>
    %cst_291 = arith.constant 0.000000e+00 : f32
    %613 = vector.broadcast %cst_291 : f32 to vector<1x256xf32>
    %614 = arith.subf %613, %612 : vector<1x256xf32>
    %615 = math.exp %614 : vector<1x256xf32>
    %cst_292 = arith.constant 1.000000e+00 : f32
    %616 = vector.broadcast %cst_292 : f32 to vector<1x256xf32>
    %617 = arith.addf %616, %615 : vector<1x256xf32>
    %618 = tpu.reciprocal %617 {approx = true} : vector<1x256xf32> -> vector<1x256xf32>
    %619 = vector.broadcast %618 : vector<1x256xf32> to vector<8x256xf32>
    %620 = arith.mulf %5, %619 : vector<8x256xf32>
    %621 = arith.mulf %3, %5 : vector<8x256xf32>
    %c17_i32_293 = arith.constant 17 : i32
    %622 = tpu.dynamic_rotate %621 by %c17_i32_293 dim 1 : vector<8x256xf32>, i32 -> vector<8x256xf32>
    %c16_294 = arith.constant 16 : index
    %c0_295 = arith.constant 0 : index
    %623 = vector.load %arg7[%c16_294, %c0_295] : memref<49x256xf32, #tpu.memory_space<vmem>>, vector<1x256xf32>
    %624 = vector.broadcast %623 : vector<1x256xf32> to vector<8x256xf32>
    %625 = arith.mulf %622, %624 : vector<8x256xf32>
    %c0_296 = arith.constant 0 : index
    %c0_297 = arith.constant 0 : index
    %626 = vector.load %arg26[%c0_296, %c0_297] : memref<144x256xf32, #tpu.memory_space<vmem>>, vector<8x256xf32>
    tpu.vector_store %arg26[%c0_296, %c0_297], %625 {strides = array<i32>} : memref<144x256xf32, #tpu.memory_space<vmem>>, vector<8x256xf32>,
    %c16_i32_298 = arith.constant 16 : i32
    %627 = tpu.dynamic_rotate %621 by %c16_i32_298 dim 1 : vector<8x256xf32>, i32 -> vector<8x256xf32>
    %c17_299 = arith.constant 17 : index
    %c0_300 = arith.constant 0 : index
    %628 = vector.load %arg7[%c17_299, %c0_300] : memref<49x256xf32, #tpu.memory_space<vmem>>, vector<1x256xf32>
    %629 = vector.broadcast %628 : vector<1x256xf32> to vector<8x256xf32>
    %630 = arith.mulf %627, %629 : vector<8x256xf32>
    %c8_301 = arith.constant 8 : index
    %c0_302 = arith.constant 0 : index
    %631 = vector.load %arg26[%c8_301, %c0_302] : memref<144x256xf32, #tpu.memory_space<vmem>>, vector<8x256xf32>
    tpu.vector_store %arg26[%c8_301, %c0_302], %630 {strides = array<i32>} : memref<144x256xf32, #tpu.memory_space<vmem>>, vector<8x256xf32>,
    %c15_i32_303 = arith.constant 15 : i32
    %632 = tpu.dynamic_rotate %621 by %c15_i32_303 dim 1 : vector<8x256xf32>, i32 -> vector<8x256xf32>
    %c18_304 = arith.constant 18 : index
    %c0_305 = arith.constant 0 : index
    %633 = vector.load %arg7[%c18_304, %c0_305] : memref<49x256xf32, #tpu.memory_space<vmem>>, vector<1x256xf32>
    %634 = vector.broadcast %633 : vector<1x256xf32> to vector<8x256xf32>
    %635 = arith.mulf %632, %634 : vector<8x256xf32>
    %c16_306 = arith.constant 16 : index
    %c0_307 = arith.constant 0 : index
    %636 = vector.load %arg26[%c16_306, %c0_307] : memref<144x256xf32, #tpu.memory_space<vmem>>, vector<8x256xf32>
    tpu.vector_store %arg26[%c16_306, %c0_307], %635 {strides = array<i32>} : memref<144x256xf32, #tpu.memory_space<vmem>>, vector<8x256xf32>,
    %c1_i32_308 = arith.constant 1 : i32
    %637 = tpu.dynamic_rotate %621 by %c1_i32_308 dim 1 : vector<8x256xf32>, i32 -> vector<8x256xf32>
    %c23_309 = arith.constant 23 : index
    %c0_310 = arith.constant 0 : index
    %638 = vector.load %arg7[%c23_309, %c0_310] : memref<49x256xf32, #tpu.memory_space<vmem>>, vector<1x256xf32>
    %639 = vector.broadcast %638 : vector<1x256xf32> to vector<8x256xf32>
    %640 = arith.mulf %637, %639 : vector<8x256xf32>
    %c24_311 = arith.constant 24 : index
    %c0_312 = arith.constant 0 : index
    %641 = vector.load %arg26[%c24_311, %c0_312] : memref<144x256xf32, #tpu.memory_space<vmem>>, vector<8x256xf32>
    tpu.vector_store %arg26[%c24_311, %c0_312], %640 {strides = array<i32>} : memref<144x256xf32, #tpu.memory_space<vmem>>, vector<8x256xf32>,
    %c24_313 = arith.constant 24 : index
    %c0_314 = arith.constant 0 : index
    %642 = vector.load %arg7[%c24_313, %c0_314] : memref<49x256xf32, #tpu.memory_space<vmem>>, vector<1x256xf32>
    %643 = vector.broadcast %642 : vector<1x256xf32> to vector<8x256xf32>
    %644 = arith.mulf %621, %643 : vector<8x256xf32>
    %c32_315 = arith.constant 32 : index
    %c0_316 = arith.constant 0 : index
    %645 = vector.load %arg26[%c32_315, %c0_316] : memref<144x256xf32, #tpu.memory_space<vmem>>, vector<8x256xf32>
    tpu.vector_store %arg26[%c32_315, %c0_316], %644 {strides = array<i32>} : memref<144x256xf32, #tpu.memory_space<vmem>>, vector<8x256xf32>,
    %c255_i32_317 = arith.constant 255 : i32
    %646 = tpu.dynamic_rotate %621 by %c255_i32_317 dim 1 : vector<8x256xf32>, i32 -> vector<8x256xf32>
    %c25_318 = arith.constant 25 : index
    %c0_319 = arith.constant 0 : index
    %647 = vector.load %arg7[%c25_318, %c0_319] : memref<49x256xf32, #tpu.memory_space<vmem>>, vector<1x256xf32>
    %648 = vector.broadcast %647 : vector<1x256xf32> to vector<8x256xf32>
    %649 = arith.mulf %646, %648 : vector<8x256xf32>
    %c40_320 = arith.constant 40 : index
    %c0_321 = arith.constant 0 : index
    %650 = vector.load %arg26[%c40_320, %c0_321] : memref<144x256xf32, #tpu.memory_space<vmem>>, vector<8x256xf32>
    tpu.vector_store %arg26[%c40_320, %c0_321], %649 {strides = array<i32>} : memref<144x256xf32, #tpu.memory_space<vmem>>, vector<8x256xf32>,
    %c241_i32_322 = arith.constant 241 : i32
    %651 = tpu.dynamic_rotate %621 by %c241_i32_322 dim 1 : vector<8x256xf32>, i32 -> vector<8x256xf32>
    %c30_323 = arith.constant 30 : index
    %c0_324 = arith.constant 0 : index
    %652 = vector.load %arg7[%c30_323, %c0_324] : memref<49x256xf32, #tpu.memory_space<vmem>>, vector<1x256xf32>
    %653 = vector.broadcast %652 : vector<1x256xf32> to vector<8x256xf32>
    %654 = arith.mulf %651, %653 : vector<8x256xf32>
    %c48_325 = arith.constant 48 : index
    %c0_326 = arith.constant 0 : index
    %655 = vector.load %arg26[%c48_325, %c0_326] : memref<144x256xf32, #tpu.memory_space<vmem>>, vector<8x256xf32>
    tpu.vector_store %arg26[%c48_325, %c0_326], %654 {strides = array<i32>} : memref<144x256xf32, #tpu.memory_space<vmem>>, vector<8x256xf32>,
    %c240_i32_327 = arith.constant 240 : i32
    %656 = tpu.dynamic_rotate %621 by %c240_i32_327 dim 1 : vector<8x256xf32>, i32 -> vector<8x256xf32>
    %c31_328 = arith.constant 31 : index
    %c0_329 = arith.constant 0 : index
    %657 = vector.load %arg7[%c31_328, %c0_329] : memref<49x256xf32, #tpu.memory_space<vmem>>, vector<1x256xf32>
    %658 = vector.broadcast %657 : vector<1x256xf32> to vector<8x256xf32>
    %659 = arith.mulf %656, %658 : vector<8x256xf32>
    %c56 = arith.constant 56 : index
    %c0_330 = arith.constant 0 : index
    %660 = vector.load %arg26[%c56, %c0_330] : memref<144x256xf32, #tpu.memory_space<vmem>>, vector<8x256xf32>
    tpu.vector_store %arg26[%c56, %c0_330], %659 {strides = array<i32>} : memref<144x256xf32, #tpu.memory_space<vmem>>, vector<8x256xf32>,
    %c239_i32_331 = arith.constant 239 : i32
    %661 = tpu.dynamic_rotate %621 by %c239_i32_331 dim 1 : vector<8x256xf32>, i32 -> vector<8x256xf32>
    %c32_332 = arith.constant 32 : index
    %c0_333 = arith.constant 0 : index
    %662 = vector.load %arg7[%c32_332, %c0_333] : memref<49x256xf32, #tpu.memory_space<vmem>>, vector<1x256xf32>
    %663 = vector.broadcast %662 : vector<1x256xf32> to vector<8x256xf32>
    %664 = arith.mulf %661, %663 : vector<8x256xf32>
    %c64 = arith.constant 64 : index
    %c0_334 = arith.constant 0 : index
    %665 = vector.load %arg26[%c64, %c0_334] : memref<144x256xf32, #tpu.memory_space<vmem>>, vector<8x256xf32>
    tpu.vector_store %arg26[%c64, %c0_334], %664 {strides = array<i32>} : memref<144x256xf32, #tpu.memory_space<vmem>>, vector<8x256xf32>,
    %c0_335 = arith.constant 0 : index
    %c0_336 = arith.constant 0 : index
    %666 = vector.load %arg14[%c0_335, %c0_336] : memref<8x72xf32, #tpu.memory_space<vmem>>, vector<8x72xf32>
    %c0_337 = arith.constant 0 : index
    %c0_338 = arith.constant 0 : index
    %667 = vector.load %arg26[%c0_337, %c0_338] : memref<144x256xf32, #tpu.memory_space<vmem>>, vector<72x256xf32>
    %cst_339 = arith.constant dense<0.000000e+00> : vector<8x256xf32>
    %668 = tpu.matmul %666, %667, %cst_339 {dimension_numbers = #tpu.dot_dimension_numbers<[1], [0], [0], [1], [0, 0, 1, 1], [], []>} : vector<8x72xf32>, vector<72x256xf32>, vector<8x256xf32> -> vector<8x256xf32>
    %c0_340 = arith.constant 0 : index
    %c0_341 = arith.constant 0 : index
    %669 = vector.load %arg15[%c0_340, %c0_341] : memref<8x1xf32, #tpu.memory_space<vmem>>, vector<8x1xf32>
    %670 = vector.broadcast %669 : vector<8x1xf32> to vector<8x256xf32>
    %671 = arith.addf %668, %670 : vector<8x256xf32>
    %672 = tpu.concatenate %43, %620, %671 in 0 : vector<8x256xf32>, vector<8x256xf32>, vector<8x256xf32> -> vector<24x256xf32>
    %c0_342 = arith.constant 0 : index
    %c0_343 = arith.constant 0 : index
    %673 = vector.load %arg16[%c0_342, %c0_343] : memref<8x24xf32, #tpu.memory_space<vmem>>, vector<8x24xf32>
    %cst_344 = arith.constant dense<0.000000e+00> : vector<8x256xf32>
    %674 = tpu.matmul %673, %672, %cst_344 {dimension_numbers = #tpu.dot_dimension_numbers<[1], [0], [0], [1], [0, 0, 1, 1], [], []>} : vector<8x24xf32>, vector<24x256xf32>, vector<8x256xf32> -> vector<8x256xf32>
    %c0_345 = arith.constant 0 : index
    %c0_346 = arith.constant 0 : index
    %675 = vector.load %arg17[%c0_345, %c0_346] : memref<8x1xf32, #tpu.memory_space<vmem>>, vector<8x1xf32>
    %676 = vector.broadcast %675 : vector<8x1xf32> to vector<8x256xf32>
    %677 = arith.mulf %674, %676 : vector<8x256xf32>
    %c0_347 = arith.constant 0 : index
    %c0_348 = arith.constant 0 : index
    %678 = vector.load %arg18[%c0_347, %c0_348] : memref<8x1xf32, #tpu.memory_space<vmem>>, vector<8x1xf32>
    %679 = vector.broadcast %678 : vector<8x1xf32> to vector<8x256xf32>
    %680 = arith.addf %677, %679 : vector<8x256xf32>
    %cst_349 = arith.constant 0.000000e+00 : f32
    %681 = vector.broadcast %cst_349 : f32 to vector<8x256xf32>
    %682 = arith.maximumf %680, %681 : vector<8x256xf32>
    %683 = tpu.concatenate %7, %682 in 0 : vector<8x256xf32>, vector<8x256xf32> -> vector<16x256xf32>
    %c17_i32_350 = arith.constant 17 : i32
    %684 = tpu.dynamic_rotate %683 by %c17_i32_350 dim 1 : vector<16x256xf32>, i32 -> vector<16x256xf32>
    %c16_351 = arith.constant 16 : index
    %c0_352 = arith.constant 0 : index
    %685 = vector.load %arg7[%c16_351, %c0_352] : memref<49x256xf32, #tpu.memory_space<vmem>>, vector<1x256xf32>
    %686 = vector.broadcast %685 : vector<1x256xf32> to vector<16x256xf32>
    %687 = arith.mulf %684, %686 : vector<16x256xf32>
    %c0_353 = arith.constant 0 : index
    %c0_354 = arith.constant 0 : index
    %688 = vector.load %arg26[%c0_353, %c0_354] : memref<144x256xf32, #tpu.memory_space<vmem>>, vector<16x256xf32>
    tpu.vector_store %arg26[%c0_353, %c0_354], %687 {strides = array<i32>} : memref<144x256xf32, #tpu.memory_space<vmem>>, vector<16x256xf32>,
    %c16_i32_355 = arith.constant 16 : i32
    %689 = tpu.dynamic_rotate %683 by %c16_i32_355 dim 1 : vector<16x256xf32>, i32 -> vector<16x256xf32>
    %c17_356 = arith.constant 17 : index
    %c0_357 = arith.constant 0 : index
    %690 = vector.load %arg7[%c17_356, %c0_357] : memref<49x256xf32, #tpu.memory_space<vmem>>, vector<1x256xf32>
    %691 = vector.broadcast %690 : vector<1x256xf32> to vector<16x256xf32>
    %692 = arith.mulf %689, %691 : vector<16x256xf32>
    %c16_358 = arith.constant 16 : index
    %c0_359 = arith.constant 0 : index
    %693 = vector.load %arg26[%c16_358, %c0_359] : memref<144x256xf32, #tpu.memory_space<vmem>>, vector<16x256xf32>
    tpu.vector_store %arg26[%c16_358, %c0_359], %692 {strides = array<i32>} : memref<144x256xf32, #tpu.memory_space<vmem>>, vector<16x256xf32>,
    %c15_i32_360 = arith.constant 15 : i32
    %694 = tpu.dynamic_rotate %683 by %c15_i32_360 dim 1 : vector<16x256xf32>, i32 -> vector<16x256xf32>
    %c18_361 = arith.constant 18 : index
    %c0_362 = arith.constant 0 : index
    %695 = vector.load %arg7[%c18_361, %c0_362] : memref<49x256xf32, #tpu.memory_space<vmem>>, vector<1x256xf32>
    %696 = vector.broadcast %695 : vector<1x256xf32> to vector<16x256xf32>
    %697 = arith.mulf %694, %696 : vector<16x256xf32>
    %c32_363 = arith.constant 32 : index
    %c0_364 = arith.constant 0 : index
    %698 = vector.load %arg26[%c32_363, %c0_364] : memref<144x256xf32, #tpu.memory_space<vmem>>, vector<16x256xf32>
    tpu.vector_store %arg26[%c32_363, %c0_364], %697 {strides = array<i32>} : memref<144x256xf32, #tpu.memory_space<vmem>>, vector<16x256xf32>,
    %c1_i32_365 = arith.constant 1 : i32
    %699 = tpu.dynamic_rotate %683 by %c1_i32_365 dim 1 : vector<16x256xf32>, i32 -> vector<16x256xf32>
    %c23_366 = arith.constant 23 : index
    %c0_367 = arith.constant 0 : index
    %700 = vector.load %arg7[%c23_366, %c0_367] : memref<49x256xf32, #tpu.memory_space<vmem>>, vector<1x256xf32>
    %701 = vector.broadcast %700 : vector<1x256xf32> to vector<16x256xf32>
    %702 = arith.mulf %699, %701 : vector<16x256xf32>
    %c48_368 = arith.constant 48 : index
    %c0_369 = arith.constant 0 : index
    %703 = vector.load %arg26[%c48_368, %c0_369] : memref<144x256xf32, #tpu.memory_space<vmem>>, vector<16x256xf32>
    tpu.vector_store %arg26[%c48_368, %c0_369], %702 {strides = array<i32>} : memref<144x256xf32, #tpu.memory_space<vmem>>, vector<16x256xf32>,
    %c24_370 = arith.constant 24 : index
    %c0_371 = arith.constant 0 : index
    %704 = vector.load %arg7[%c24_370, %c0_371] : memref<49x256xf32, #tpu.memory_space<vmem>>, vector<1x256xf32>
    %705 = vector.broadcast %704 : vector<1x256xf32> to vector<16x256xf32>
    %706 = arith.mulf %683, %705 : vector<16x256xf32>
    %c64_372 = arith.constant 64 : index
    %c0_373 = arith.constant 0 : index
    %707 = vector.load %arg26[%c64_372, %c0_373] : memref<144x256xf32, #tpu.memory_space<vmem>>, vector<16x256xf32>
    tpu.vector_store %arg26[%c64_372, %c0_373], %706 {strides = array<i32>} : memref<144x256xf32, #tpu.memory_space<vmem>>, vector<16x256xf32>,
    %c255_i32_374 = arith.constant 255 : i32
    %708 = tpu.dynamic_rotate %683 by %c255_i32_374 dim 1 : vector<16x256xf32>, i32 -> vector<16x256xf32>
    %c25_375 = arith.constant 25 : index
    %c0_376 = arith.constant 0 : index
    %709 = vector.load %arg7[%c25_375, %c0_376] : memref<49x256xf32, #tpu.memory_space<vmem>>, vector<1x256xf32>
    %710 = vector.broadcast %709 : vector<1x256xf32> to vector<16x256xf32>
    %711 = arith.mulf %708, %710 : vector<16x256xf32>
    %c80 = arith.constant 80 : index
    %c0_377 = arith.constant 0 : index
    %712 = vector.load %arg26[%c80, %c0_377] : memref<144x256xf32, #tpu.memory_space<vmem>>, vector<16x256xf32>
    tpu.vector_store %arg26[%c80, %c0_377], %711 {strides = array<i32>} : memref<144x256xf32, #tpu.memory_space<vmem>>, vector<16x256xf32>,
    %c241_i32_378 = arith.constant 241 : i32
    %713 = tpu.dynamic_rotate %683 by %c241_i32_378 dim 1 : vector<16x256xf32>, i32 -> vector<16x256xf32>
    %c30_379 = arith.constant 30 : index
    %c0_380 = arith.constant 0 : index
    %714 = vector.load %arg7[%c30_379, %c0_380] : memref<49x256xf32, #tpu.memory_space<vmem>>, vector<1x256xf32>
    %715 = vector.broadcast %714 : vector<1x256xf32> to vector<16x256xf32>
    %716 = arith.mulf %713, %715 : vector<16x256xf32>
    %c96 = arith.constant 96 : index
    %c0_381 = arith.constant 0 : index
    %717 = vector.load %arg26[%c96, %c0_381] : memref<144x256xf32, #tpu.memory_space<vmem>>, vector<16x256xf32>
    tpu.vector_store %arg26[%c96, %c0_381], %716 {strides = array<i32>} : memref<144x256xf32, #tpu.memory_space<vmem>>, vector<16x256xf32>,
    %c240_i32_382 = arith.constant 240 : i32
    %718 = tpu.dynamic_rotate %683 by %c240_i32_382 dim 1 : vector<16x256xf32>, i32 -> vector<16x256xf32>
    %c31_383 = arith.constant 31 : index
    %c0_384 = arith.constant 0 : index
    %719 = vector.load %arg7[%c31_383, %c0_384] : memref<49x256xf32, #tpu.memory_space<vmem>>, vector<1x256xf32>
    %720 = vector.broadcast %719 : vector<1x256xf32> to vector<16x256xf32>
    %721 = arith.mulf %718, %720 : vector<16x256xf32>
    %c112 = arith.constant 112 : index
    %c0_385 = arith.constant 0 : index
    %722 = vector.load %arg26[%c112, %c0_385] : memref<144x256xf32, #tpu.memory_space<vmem>>, vector<16x256xf32>
    tpu.vector_store %arg26[%c112, %c0_385], %721 {strides = array<i32>} : memref<144x256xf32, #tpu.memory_space<vmem>>, vector<16x256xf32>,
    %c239_i32_386 = arith.constant 239 : i32
    %723 = tpu.dynamic_rotate %683 by %c239_i32_386 dim 1 : vector<16x256xf32>, i32 -> vector<16x256xf32>
    %c32_387 = arith.constant 32 : index
    %c0_388 = arith.constant 0 : index
    %724 = vector.load %arg7[%c32_387, %c0_388] : memref<49x256xf32, #tpu.memory_space<vmem>>, vector<1x256xf32>
    %725 = vector.broadcast %724 : vector<1x256xf32> to vector<16x256xf32>
    %726 = arith.mulf %723, %725 : vector<16x256xf32>
    %c128 = arith.constant 128 : index
    %c0_389 = arith.constant 0 : index
    %727 = vector.load %arg26[%c128, %c0_389] : memref<144x256xf32, #tpu.memory_space<vmem>>, vector<16x256xf32>
    tpu.vector_store %arg26[%c128, %c0_389], %726 {strides = array<i32>} : memref<144x256xf32, #tpu.memory_space<vmem>>, vector<16x256xf32>,
    %c0_390 = arith.constant 0 : index
    %c0_391 = arith.constant 0 : index
    %728 = vector.load %arg19[%c0_390, %c0_391] : memref<16x144xf32, #tpu.memory_space<vmem>>, vector<16x144xf32>
    %c0_392 = arith.constant 0 : index
    %c0_393 = arith.constant 0 : index
    %729 = vector.load %arg26[%c0_392, %c0_393] : memref<144x256xf32, #tpu.memory_space<vmem>>, vector<144x256xf32>
    %cst_394 = arith.constant dense<0.000000e+00> : vector<16x256xf32>
    %730 = tpu.matmul %728, %729, %cst_394 {dimension_numbers = #tpu.dot_dimension_numbers<[1], [0], [0], [1], [0, 0, 1, 1], [], []>} : vector<16x144xf32>, vector<144x256xf32>, vector<16x256xf32> -> vector<16x256xf32>
    %c0_395 = arith.constant 0 : index
    %c0_396 = arith.constant 0 : index
    %731 = vector.load %arg20[%c0_395, %c0_396] : memref<16x1xf32, #tpu.memory_space<vmem>>, vector<16x1xf32>
    %732 = vector.broadcast %731 : vector<16x1xf32> to vector<16x256xf32>
    %733 = arith.mulf %730, %732 : vector<16x256xf32>
    %c0_397 = arith.constant 0 : index
    %c0_398 = arith.constant 0 : index
    %734 = vector.load %arg21[%c0_397, %c0_398] : memref<16x1xf32, #tpu.memory_space<vmem>>, vector<16x1xf32>
    %735 = vector.broadcast %734 : vector<16x1xf32> to vector<16x256xf32>
    %736 = arith.addf %733, %735 : vector<16x256xf32>
    %cst_399 = arith.constant 0.000000e+00 : f32
    %737 = vector.broadcast %cst_399 : f32 to vector<16x256xf32>
    %738 = arith.maximumf %736, %737 : vector<16x256xf32>
    %c17_i32_400 = arith.constant 17 : i32
    %739 = tpu.dynamic_rotate %738 by %c17_i32_400 dim 1 : vector<16x256xf32>, i32 -> vector<16x256xf32>
    %c16_401 = arith.constant 16 : index
    %c0_402 = arith.constant 0 : index
    %740 = vector.load %arg7[%c16_401, %c0_402] : memref<49x256xf32, #tpu.memory_space<vmem>>, vector<1x256xf32>
    %741 = vector.broadcast %740 : vector<1x256xf32> to vector<16x256xf32>
    %742 = arith.mulf %739, %741 : vector<16x256xf32>
    %c0_403 = arith.constant 0 : index
    %c0_404 = arith.constant 0 : index
    %743 = vector.load %arg26[%c0_403, %c0_404] : memref<144x256xf32, #tpu.memory_space<vmem>>, vector<16x256xf32>
    tpu.vector_store %arg26[%c0_403, %c0_404], %742 {strides = array<i32>} : memref<144x256xf32, #tpu.memory_space<vmem>>, vector<16x256xf32>,
    %c16_i32_405 = arith.constant 16 : i32
    %744 = tpu.dynamic_rotate %738 by %c16_i32_405 dim 1 : vector<16x256xf32>, i32 -> vector<16x256xf32>
    %c17_406 = arith.constant 17 : index
    %c0_407 = arith.constant 0 : index
    %745 = vector.load %arg7[%c17_406, %c0_407] : memref<49x256xf32, #tpu.memory_space<vmem>>, vector<1x256xf32>
    %746 = vector.broadcast %745 : vector<1x256xf32> to vector<16x256xf32>
    %747 = arith.mulf %744, %746 : vector<16x256xf32>
    %c16_408 = arith.constant 16 : index
    %c0_409 = arith.constant 0 : index
    %748 = vector.load %arg26[%c16_408, %c0_409] : memref<144x256xf32, #tpu.memory_space<vmem>>, vector<16x256xf32>
    tpu.vector_store %arg26[%c16_408, %c0_409], %747 {strides = array<i32>} : memref<144x256xf32, #tpu.memory_space<vmem>>, vector<16x256xf32>,
    %c15_i32_410 = arith.constant 15 : i32
    %749 = tpu.dynamic_rotate %738 by %c15_i32_410 dim 1 : vector<16x256xf32>, i32 -> vector<16x256xf32>
    %c18_411 = arith.constant 18 : index
    %c0_412 = arith.constant 0 : index
    %750 = vector.load %arg7[%c18_411, %c0_412] : memref<49x256xf32, #tpu.memory_space<vmem>>, vector<1x256xf32>
    %751 = vector.broadcast %750 : vector<1x256xf32> to vector<16x256xf32>
    %752 = arith.mulf %749, %751 : vector<16x256xf32>
    %c32_413 = arith.constant 32 : index
    %c0_414 = arith.constant 0 : index
    %753 = vector.load %arg26[%c32_413, %c0_414] : memref<144x256xf32, #tpu.memory_space<vmem>>, vector<16x256xf32>
    tpu.vector_store %arg26[%c32_413, %c0_414], %752 {strides = array<i32>} : memref<144x256xf32, #tpu.memory_space<vmem>>, vector<16x256xf32>,
    %c1_i32_415 = arith.constant 1 : i32
    %754 = tpu.dynamic_rotate %738 by %c1_i32_415 dim 1 : vector<16x256xf32>, i32 -> vector<16x256xf32>
    %c23_416 = arith.constant 23 : index
    %c0_417 = arith.constant 0 : index
    %755 = vector.load %arg7[%c23_416, %c0_417] : memref<49x256xf32, #tpu.memory_space<vmem>>, vector<1x256xf32>
    %756 = vector.broadcast %755 : vector<1x256xf32> to vector<16x256xf32>
    %757 = arith.mulf %754, %756 : vector<16x256xf32>
    %c48_418 = arith.constant 48 : index
    %c0_419 = arith.constant 0 : index
    %758 = vector.load %arg26[%c48_418, %c0_419] : memref<144x256xf32, #tpu.memory_space<vmem>>, vector<16x256xf32>
    tpu.vector_store %arg26[%c48_418, %c0_419], %757 {strides = array<i32>} : memref<144x256xf32, #tpu.memory_space<vmem>>, vector<16x256xf32>,
    %c24_420 = arith.constant 24 : index
    %c0_421 = arith.constant 0 : index
    %759 = vector.load %arg7[%c24_420, %c0_421] : memref<49x256xf32, #tpu.memory_space<vmem>>, vector<1x256xf32>
    %760 = vector.broadcast %759 : vector<1x256xf32> to vector<16x256xf32>
    %761 = arith.mulf %738, %760 : vector<16x256xf32>
    %c64_422 = arith.constant 64 : index
    %c0_423 = arith.constant 0 : index
    %762 = vector.load %arg26[%c64_422, %c0_423] : memref<144x256xf32, #tpu.memory_space<vmem>>, vector<16x256xf32>
    tpu.vector_store %arg26[%c64_422, %c0_423], %761 {strides = array<i32>} : memref<144x256xf32, #tpu.memory_space<vmem>>, vector<16x256xf32>,
    %c255_i32_424 = arith.constant 255 : i32
    %763 = tpu.dynamic_rotate %738 by %c255_i32_424 dim 1 : vector<16x256xf32>, i32 -> vector<16x256xf32>
    %c25_425 = arith.constant 25 : index
    %c0_426 = arith.constant 0 : index
    %764 = vector.load %arg7[%c25_425, %c0_426] : memref<49x256xf32, #tpu.memory_space<vmem>>, vector<1x256xf32>
    %765 = vector.broadcast %764 : vector<1x256xf32> to vector<16x256xf32>
    %766 = arith.mulf %763, %765 : vector<16x256xf32>
    %c80_427 = arith.constant 80 : index
    %c0_428 = arith.constant 0 : index
    %767 = vector.load %arg26[%c80_427, %c0_428] : memref<144x256xf32, #tpu.memory_space<vmem>>, vector<16x256xf32>
    tpu.vector_store %arg26[%c80_427, %c0_428], %766 {strides = array<i32>} : memref<144x256xf32, #tpu.memory_space<vmem>>, vector<16x256xf32>,
    %c241_i32_429 = arith.constant 241 : i32
    %768 = tpu.dynamic_rotate %738 by %c241_i32_429 dim 1 : vector<16x256xf32>, i32 -> vector<16x256xf32>
    %c30_430 = arith.constant 30 : index
    %c0_431 = arith.constant 0 : index
    %769 = vector.load %arg7[%c30_430, %c0_431] : memref<49x256xf32, #tpu.memory_space<vmem>>, vector<1x256xf32>
    %770 = vector.broadcast %769 : vector<1x256xf32> to vector<16x256xf32>
    %771 = arith.mulf %768, %770 : vector<16x256xf32>
    %c96_432 = arith.constant 96 : index
    %c0_433 = arith.constant 0 : index
    %772 = vector.load %arg26[%c96_432, %c0_433] : memref<144x256xf32, #tpu.memory_space<vmem>>, vector<16x256xf32>
    tpu.vector_store %arg26[%c96_432, %c0_433], %771 {strides = array<i32>} : memref<144x256xf32, #tpu.memory_space<vmem>>, vector<16x256xf32>,
    %c240_i32_434 = arith.constant 240 : i32
    %773 = tpu.dynamic_rotate %738 by %c240_i32_434 dim 1 : vector<16x256xf32>, i32 -> vector<16x256xf32>
    %c31_435 = arith.constant 31 : index
    %c0_436 = arith.constant 0 : index
    %774 = vector.load %arg7[%c31_435, %c0_436] : memref<49x256xf32, #tpu.memory_space<vmem>>, vector<1x256xf32>
    %775 = vector.broadcast %774 : vector<1x256xf32> to vector<16x256xf32>
    %776 = arith.mulf %773, %775 : vector<16x256xf32>
    %c112_437 = arith.constant 112 : index
    %c0_438 = arith.constant 0 : index
    %777 = vector.load %arg26[%c112_437, %c0_438] : memref<144x256xf32, #tpu.memory_space<vmem>>, vector<16x256xf32>
    tpu.vector_store %arg26[%c112_437, %c0_438], %776 {strides = array<i32>} : memref<144x256xf32, #tpu.memory_space<vmem>>, vector<16x256xf32>,
    %c239_i32_439 = arith.constant 239 : i32
    %778 = tpu.dynamic_rotate %738 by %c239_i32_439 dim 1 : vector<16x256xf32>, i32 -> vector<16x256xf32>
    %c32_440 = arith.constant 32 : index
    %c0_441 = arith.constant 0 : index
    %779 = vector.load %arg7[%c32_440, %c0_441] : memref<49x256xf32, #tpu.memory_space<vmem>>, vector<1x256xf32>
    %780 = vector.broadcast %779 : vector<1x256xf32> to vector<16x256xf32>
    %781 = arith.mulf %778, %780 : vector<16x256xf32>
    %c128_442 = arith.constant 128 : index
    %c0_443 = arith.constant 0 : index
    %782 = vector.load %arg26[%c128_442, %c0_443] : memref<144x256xf32, #tpu.memory_space<vmem>>, vector<16x256xf32>
    tpu.vector_store %arg26[%c128_442, %c0_443], %781 {strides = array<i32>} : memref<144x256xf32, #tpu.memory_space<vmem>>, vector<16x256xf32>,
    %c0_444 = arith.constant 0 : index
    %c0_445 = arith.constant 0 : index
    %783 = vector.load %arg22[%c0_444, %c0_445] : memref<16x144xf32, #tpu.memory_space<vmem>>, vector<16x144xf32>
    %c0_446 = arith.constant 0 : index
    %c0_447 = arith.constant 0 : index
    %784 = vector.load %arg26[%c0_446, %c0_447] : memref<144x256xf32, #tpu.memory_space<vmem>>, vector<144x256xf32>
    %cst_448 = arith.constant dense<0.000000e+00> : vector<16x256xf32>
    %785 = tpu.matmul %783, %784, %cst_448 {dimension_numbers = #tpu.dot_dimension_numbers<[1], [0], [0], [1], [0, 0, 1, 1], [], []>} : vector<16x144xf32>, vector<144x256xf32>, vector<16x256xf32> -> vector<16x256xf32>
    %c0_449 = arith.constant 0 : index
    %c0_450 = arith.constant 0 : index
    %786 = vector.load %arg23[%c0_449, %c0_450] : memref<16x1xf32, #tpu.memory_space<vmem>>, vector<16x1xf32>
    %787 = vector.broadcast %786 : vector<16x1xf32> to vector<16x256xf32>
    %788 = arith.mulf %785, %787 : vector<16x256xf32>
    %c0_451 = arith.constant 0 : index
    %c0_452 = arith.constant 0 : index
    %789 = vector.load %arg24[%c0_451, %c0_452] : memref<16x1xf32, #tpu.memory_space<vmem>>, vector<16x1xf32>
    %790 = vector.broadcast %789 : vector<16x1xf32> to vector<16x256xf32>
    %791 = arith.addf %788, %790 : vector<16x256xf32>
    %cst_453 = arith.constant 0.000000e+00 : f32
    %792 = vector.broadcast %cst_453 : f32 to vector<16x256xf32>
    %793 = arith.maximumf %791, %792 : vector<16x256xf32>
    %c0_454 = arith.constant 0 : index
    %c0_455 = arith.constant 0 : index
    %c0_456 = arith.constant 0 : index
    %794 = vector.load %arg25[%c0_454, %c0_455, %c0_456] : memref<1x16x256xf32, #tpu.memory_space<vmem>>, vector<1x16x256xf32>
    %795 = vector.shape_cast %794 : vector<1x16x256xf32> to vector<16x256xf32>
    %796 = vector.shape_cast %793 : vector<16x256xf32> to vector<1x16x256xf32>
    tpu.vector_store %arg25[%c0_454, %c0_455, %c0_456], %796 {strides = array<i32>} : memref<1x16x256xf32, #tpu.memory_space<vmem>>, vector<1x16x256xf32>,
    return
  }
  func.func @transform_0(%arg0: i32) -> (i32, i32) {
    %c0_i32 = arith.constant 0 : i32
    %c0_i32_0 = arith.constant 0 : i32
    %c0_i32_1 = arith.constant 0 : i32
    return %c0_i32, %c0_i32_0 : i32, i32
  }
  func.func @transform_1(%arg0: i32) -> (i32, i32) {
    %c0_i32 = arith.constant 0 : i32
    %c0_i32_0 = arith.constant 0 : i32
    %c0_i32_1 = arith.constant 0 : i32
    return %c0_i32, %c0_i32_0 : i32, i32
  }
  func.func @transform_2(%arg0: i32) -> (i32, i32, i32) {
    %c0_i32 = arith.constant 0 : i32
    %c0_i32_0 = arith.constant 0 : i32
    %c0_i32_1 = arith.constant 0 : i32
    return %arg0, %c0_i32, %c0_i32_0 : i32, i32, i32
  }
  func.func @transform_3(%arg0: i32) -> (i32, i32, i32) {
    %c0_i32 = arith.constant 0 : i32
    %c0_i32_0 = arith.constant 0 : i32
    %c0_i32_1 = arith.constant 0 : i32
    return %arg0, %c0_i32, %c0_i32_0 : i32, i32, i32
  }
  func.func @transform_4(%arg0: i32) -> (i32, i32, i32) {
    %c0_i32 = arith.constant 0 : i32
    %c0_i32_0 = arith.constant 0 : i32
    %c0_i32_1 = arith.constant 0 : i32
    return %arg0, %c0_i32, %c0_i32_0 : i32, i32, i32
  }
  func.func @transform_5(%arg0: i32) -> (i32, i32) {
    %c0_i32 = arith.constant 0 : i32
    %c0_i32_0 = arith.constant 0 : i32
    %c0_i32_1 = arith.constant 0 : i32
    return %c0_i32, %c0_i32_0 : i32, i32
  }
  func.func @transform_6(%arg0: i32) -> (i32, i32) {
    %c0_i32 = arith.constant 0 : i32
    %c0_i32_0 = arith.constant 0 : i32
    %c0_i32_1 = arith.constant 0 : i32
    return %c0_i32, %c0_i32_0 : i32, i32
  }
  func.func @transform_7(%arg0: i32) -> (i32, i32) {
    %c0_i32 = arith.constant 0 : i32
    %c0_i32_0 = arith.constant 0 : i32
    %c0_i32_1 = arith.constant 0 : i32
    return %c0_i32, %c0_i32_0 : i32, i32
  }
  func.func @transform_8(%arg0: i32) -> (i32, i32) {
    %c0_i32 = arith.constant 0 : i32
    %c0_i32_0 = arith.constant 0 : i32
    %c0_i32_1 = arith.constant 0 : i32
    return %c0_i32, %c0_i32_0 : i32, i32
  }
  func.func @transform_9(%arg0: i32) -> (i32, i32) {
    %c0_i32 = arith.constant 0 : i32
    %c0_i32_0 = arith.constant 0 : i32
    %c0_i32_1 = arith.constant 0 : i32
    return %c0_i32, %c0_i32_0 : i32, i32
  }
  func.func @transform_10(%arg0: i32) -> (i32, i32) {
    %c0_i32 = arith.constant 0 : i32
    %c0_i32_0 = arith.constant 0 : i32
    %c0_i32_1 = arith.constant 0 : i32
    return %c0_i32, %c0_i32_0 : i32, i32
  }
  func.func @transform_11(%arg0: i32) -> (i32, i32) {
    %c0_i32 = arith.constant 0 : i32
    %c0_i32_0 = arith.constant 0 : i32
    %c0_i32_1 = arith.constant 0 : i32
    return %c0_i32, %c0_i32_0 : i32, i32
  }
  func.func @transform_12(%arg0: i32) -> (i32, i32) {
    %c0_i32 = arith.constant 0 : i32
    %c0_i32_0 = arith.constant 0 : i32
    %c0_i32_1 = arith.constant 0 : i32
    return %c0_i32, %c0_i32_0 : i32, i32
  }
  func.func @transform_13(%arg0: i32) -> (i32, i32) {
    %c0_i32 = arith.constant 0 : i32
    %c0_i32_0 = arith.constant 0 : i32
    %c0_i32_1 = arith.constant 0 : i32
    return %c0_i32, %c0_i32_0 : i32, i32
  }
  func.func @transform_14(%arg0: i32) -> (i32, i32) {
    %c0_i32 = arith.constant 0 : i32
    %c0_i32_0 = arith.constant 0 : i32
    %c0_i32_1 = arith.constant 0 : i32
    return %c0_i32, %c0_i32_0 : i32, i32
  }
  func.func @transform_15(%arg0: i32) -> (i32, i32) {
    %c0_i32 = arith.constant 0 : i32
    %c0_i32_0 = arith.constant 0 : i32
    %c0_i32_1 = arith.constant 0 : i32
    return %c0_i32, %c0_i32_0 : i32, i32
  }
  func.func @transform_16(%arg0: i32) -> (i32, i32) {
    %c0_i32 = arith.constant 0 : i32
    %c0_i32_0 = arith.constant 0 : i32
    %c0_i32_1 = arith.constant 0 : i32
    return %c0_i32, %c0_i32_0 : i32, i32
  }
  func.func @transform_17(%arg0: i32) -> (i32, i32) {
    %c0_i32 = arith.constant 0 : i32
    %c0_i32_0 = arith.constant 0 : i32
    %c0_i32_1 = arith.constant 0 : i32
    return %c0_i32, %c0_i32_0 : i32, i32
  }
  func.func @transform_18(%arg0: i32) -> (i32, i32) {
    %c0_i32 = arith.constant 0 : i32
    %c0_i32_0 = arith.constant 0 : i32
    %c0_i32_1 = arith.constant 0 : i32
    return %c0_i32, %c0_i32_0 : i32, i32
  }
  func.func @transform_19(%arg0: i32) -> (i32, i32) {
    %c0_i32 = arith.constant 0 : i32
    %c0_i32_0 = arith.constant 0 : i32
    %c0_i32_1 = arith.constant 0 : i32
    return %c0_i32, %c0_i32_0 : i32, i32
  }
  func.func @transform_20(%arg0: i32) -> (i32, i32) {
    %c0_i32 = arith.constant 0 : i32
    %c0_i32_0 = arith.constant 0 : i32
    %c0_i32_1 = arith.constant 0 : i32
    return %c0_i32, %c0_i32_0 : i32, i32
  }
  func.func @transform_21(%arg0: i32) -> (i32, i32) {
    %c0_i32 = arith.constant 0 : i32
    %c0_i32_0 = arith.constant 0 : i32
    %c0_i32_1 = arith.constant 0 : i32
    return %c0_i32, %c0_i32_0 : i32, i32
  }
  func.func @transform_22(%arg0: i32) -> (i32, i32) {
    %c0_i32 = arith.constant 0 : i32
    %c0_i32_0 = arith.constant 0 : i32
    %c0_i32_1 = arith.constant 0 : i32
    return %c0_i32, %c0_i32_0 : i32, i32
  }
  func.func @transform_23(%arg0: i32) -> (i32, i32) {
    %c0_i32 = arith.constant 0 : i32
    %c0_i32_0 = arith.constant 0 : i32
    %c0_i32_1 = arith.constant 0 : i32
    return %c0_i32, %c0_i32_0 : i32, i32
  }
  func.func @transform_24(%arg0: i32) -> (i32, i32, i32) {
    %c0_i32 = arith.constant 0 : i32
    %c0_i32_0 = arith.constant 0 : i32
    %c0_i32_1 = arith.constant 0 : i32
    return %arg0, %c0_i32, %c0_i32_0 : i32, i32, i32
  }
}

</mosaic_0001>

<bundles_post_ra>
// kernel: decoder_block_forward.1
= control target key start
LH: loop header
LB: loop body
LE: loop exit
PB: predicated region body
PF: predicated region fallthrough
CT: control target
= control target key end

     0   :  { %s7452_s0 = inlined_call_operand.vmem [shape: f32[2,49], index: 0, kind: input, shape index: {}]   ;;  %s7453_s1 = inlined_call_operand.vmem [shape: f32[1,2], index: 1, kind: input, shape index: {}]   ;;  %s7454_s2 = inlined_call_operand.vmem [shape: f32[2,8,64], index: 2, kind: input, shape index: {}]   ;;  %s7455_s3 = inlined_call_operand.vmem [shape: f32[2,8,256], index: 3, kind: input, shape index: {}]   ;;  %s7456_s4 = inlined_call_operand.vmem [shape: f32[2,8,256], index: 4, kind: input, shape index: {}]   ;;  %s7457_s5 = inlined_call_operand.vmem [shape: f32[64,256], index: 5, kind: input, shape index: {}]   ;;  %s7458_s6 = inlined_call_operand.vmem [shape: f32[49,256], index: 6, kind: input, shape index: {}]   ;;  %s7459_s7 = inlined_call_operand.vmem [shape: f32[8,8], index: 7, kind: input, shape index: {}]   ;;  %s7460_s8 = inlined_call_operand.vmem [shape: f32[8,1], index: 8, kind: input, shape index: {}]   ;;  %s7461_s9 = inlined_call_operand.vmem [shape: f32[8,8], index: 9, kind: input, shape index: {}]   ;;  %s7462_s10 = inlined_call_operand.vmem [shape: f32[8,1], index: 10, kind: input, shape index: {}]   ;;  %s7463_s11 = inlined_call_operand.vmem [shape: f32[8,8], index: 11, kind: input, shape index: {}]   ;;  %s7464_s12 = inlined_call_operand.vmem [shape: f32[8,1], index: 12, kind: input, shape index: {}]   ;;  %s7465_s13 = inlined_call_operand.vmem [shape: f32[8,72], index: 13, kind: input, shape index: {}]   ;;  %s7466_s14 = inlined_call_operand.vmem [shape: f32[8,1], index: 14, kind: input, shape index: {}]   ;;  %s7467_s15 = inlined_call_operand.vmem [shape: f32[8,24], index: 15, kind: input, shape index: {}]   ;;  %s7468_s16 = inlined_call_operand.vmem [shape: f32[8,1], index: 16, kind: input, shape index: {}]   ;;  %s7469_s17 = inlined_call_operand.vmem [shape: f32[8,1], index: 17, kind: input, shape index: {}]   ;;  %s7470_s18 = inlined_call_operand.vmem [shape: f32[16,144], index: 18, kind: input, shape index: {}]   ;;  %s7471_s19 = inlined_call_operand.vmem [shape: f32[16,1], index: 19, kind: input, shape index: {}]   ;;  %s7472_s20 = inlined_call_operand.vmem [shape: f32[16,1], index: 20, kind: input, shape index: {}]   ;;  %s7473_s21 = inlined_call_operand.vmem [shape: f32[16,144], index: 21, kind: input, shape index: {}]   ;;  %s7474_s22 = inlined_call_operand.vmem [shape: f32[16,1], index: 22, kind: input, shape index: {}]   ;;  %s7475_s23 = inlined_call_operand.vmem [shape: f32[16,1], index: 23, kind: input, shape index: {}]   ;;  %s7476_s24 = inlined_call_operand.vmem [shape: f32[2,16,256], index: 24, kind: output, shape index: {}]  }
   0x1   :  { %7544 = sst [smem:[#allocation17_spill]] %s7452_s0 }
   0x2   :  { %7545 = sst [smem:[#allocation18_spill]] %s7453_s1 }
   0x3   :  { %7546 = sst [smem:[#allocation19_spill]] %s7454_s2 }
   0x4   :  { %7547 = sst [smem:[#allocation20_spill]] %s7455_s3 }
   0x5   :  { %7548 = sst [smem:[#allocation21_spill]] %s7456_s4 }
   0x6   :  { %7549 = sst [smem:[#allocation22_spill]] %s7457_s5 }
   0x7   :  { %7550 = sst [smem:[#allocation23_spill]] %s7458_s6 }
   0x8   :  { %7551 = sst [smem:[#allocation24_spill]] %s7459_s7 }
   0x9   :  { %7552 = sst [smem:[#allocation25_spill]] %s7460_s8 }
   0xa   :  { %7553 = sst [smem:[#allocation26_spill]] %s7461_s9 }
   0xb   :  { %7554 = sst [smem:[#allocation27_spill]] %s7462_s10 }
   0xc   :  { %7555 = sst [smem:[#allocation28_spill]] %s7463_s11 }
   0xd   :  { %7556 = sst [smem:[#allocation29_spill]] %s7464_s12 }
   0xe   :  { %7557 = sst [smem:[#allocation30_spill]] %s7465_s13 }
   0xf   :  { %7558 = sst [smem:[#allocation31_spill]] %s7466_s14 }
  0x10   :  { %7559 = sst [smem:[#allocation32_spill]] %s7467_s15 }
  0x11   :  { %7560 = sst [smem:[#allocation33_spill]] %s7468_s16 }
  0x12   :  { %7561 = sst [smem:[#allocation34_spill]] %s7469_s17 }
  0x13   :  { %7562 = sst [smem:[#allocation35_spill]] %s7470_s18 }
  0x14   :  { %7563 = sst [smem:[#allocation36_spill]] %s7471_s19 }
  0x15   :  { %7564 = sst [smem:[#allocation37_spill]] %s7472_s20 }
  0x16   :  { %7565 = sst [smem:[#allocation38_spill]] %s7473_s21 }
  0x17   :  { %7566 = sst [smem:[#allocation39_spill]] %s7474_s22 }
  0x18   :  { %7567 = sst [smem:[#allocation40_spill]] %s7475_s23 }
  0x19   :  { %7568 = sst [smem:[#allocation41_spill]] %s7476_s24 }
  0x1a   :  { %29 = vsyncpa [#allocation4], 0 }
  0x1b   :  { %30 = vsyncpa [#allocation6], 0  ;;  %s4898_s5 = smov 0  }
  0x1c LB: > { %7569 = sst [smem:[#allocation9_spill]] %s4719_s5  ;;  %s4904_s26 = sadd.s32 4294967295, %s4719_s5   ;;  %s4719_s5 = sphi %s4898_s5, %s36_s5  }
  0x1d   : > { %p4259_p0 = scmp.ge.s32.totalorder %s4719_s5, 1  ;;  %p586_p1 = scmp.lt.s32.totalorder %s4719_s5, 3 }
  0x1e   : > { %s7570_s6 = sld [smem:[#allocation17_spill]]  ;;  %p7479_p3 = scmp.eq.s32.totalorder %s4904_s26, 0 }
  0x1f   : > { %p4911_p2 = pnand %p4259_p0, %p586_p1  ;;  %s7572_s30 = sld [smem:[#allocation18_spill]] }
  0x21   : > { %s7571_s29 = scalar_select %p4911_p2, 1, 0 }
  0x22   : > { %p4576_p4 = pneg %p4911_p2 }
  0x24   : > { %s599_s2 = sshll.u32 %s7570_s6, 4  ;;  %p4923_p5 = pnand %p7479_p3, %p4576_p4  ;;  %s600_s2 = int_to_ptr.vmem [resolvable:$true] %s599_s2 }
  0x25   : > { %s610_s3 = sshll.u32 %s7572_s30, 4  ;;  %s4675_s8 = scalar_lea.vmem %s600_s2, 32  ;;  %s611_s3 = int_to_ptr.vmem [resolvable:$true] %s610_s3 }
  0x26   : > { %p4676_p6 = scmp.ne.s32.totalorder %s600_s2, %s4675_s8  ;;  %p4677_p7 = pneg %p4923_p5 }
  0x27   : > { %p4683_p10 = scmp.lt.s32.totalorder %s600_s2, %s600_s2  ;;  %p4684_p11 = scmp.lt.s32.totalorder %s4675_s8, %s4675_s8 }
  0x28   : > { %p4678_p8 = pnand %p4677_p7, %p4676_p6 }
  0x29   : > { %p4685_p12 = por %p4684_p11, %p4683_p10 }
  0x2a   : > { %p4679_p9 = pneg %p4678_p8 }
  0x2c   : > { %p4686_p13 = pnand %p4685_p12, %p4679_p9 }
  0x2e   : > { %4689 = shalt.err (!%p4686_p13)
}
  0x2f   : > { %s4721_s4 = smov [#allocation3]   ;;  %s4690_s1 = scalar_lea.vmem %s611_s3, 16 }
  0x30   : > { %4579 = dma.vmem_to_smem (!%p4923_p5), %s600_s2, 32, %s4721_s4, [#allocation4]  }
  0x31   : > { %p4691_p0 = scmp.ne.s32.totalorder %s611_s3, %s4690_s1  ;;  %p4698_p3 = scmp.lt.s32.totalorder %s611_s3, %s611_s3 }
  0x32   : > { %p4699_p2 = scmp.lt.s32.totalorder %s4690_s1, %s4690_s1 }
  0x33   : > { %p4693_p1 = pnand %p4691_p0, %p4677_p7 }
  0x34   : > { %p4700_p6 = por %p4699_p2, %p4698_p3 }
  0x35   : > { %p4694_p4 = pneg %p4693_p1 }
  0x37   : > { %p4701_p8 = pnand %p4700_p6, %p4694_p4 }
  0x39   : > { %4704 = shalt.err (!%p4701_p8)
}
  0x3a   : > { %s4722_s27 = smov [#allocation5]   ;;  %p7574_p9 = scmp.ne.s32.totalorder %s7571_s29, 0 }
  0x3b   : > { %4582 = dma.vmem_to_smem (!%p4923_p5), %s611_s3, 16, %s4722_s27, [#allocation6]  }
  0x3c   : > { %703 = sbr.rel (%p7574_p9) target bundleno = 1964 (0x7ac), region = 116 }
  0x43   : > { %p7575_p10 = scmp.eq.s32.totalorder %s4904_s26, 0 }
  0x45   : > { %4710 = dma.done.wait (%p7575_p10), [#allocation4], 32   ;;  %p7576_p11 = pmov %p7575_p10 }
  0x46   : > { %p7577_p7 = pmov %p7575_p10 }
  0x47   : > { %4712 = vsyncadd (%p7576_p11), [#allocation4], 4294967264 }
  0x48   : > { %4714 = dma.done.wait (%p7577_p7), [#allocation6], 16   ;;  %p7578_p2 = pmov %p7577_p7 }
  0x4a   : > { %4716 = vsyncadd (%p7578_p2), [#allocation6], 4294967280 }
  0x4b   : > { %713 = sfence }
  0x4c   : > { %p783_p3 = scmp.lt.s32.totalorder %s4904_s26, 1  ;;  %v4723_v0 = vmov 0   ;;  %s7580_s2 = sld [smem:[#allocation22_spill]]  ;;  %vm823_vm0 = vcmask 523264   ;;  %vm910_vm1 = vcmask 64512  }
  0x4d   : > { %4647 = vset.pattern.permute.xlu0 %v4723_v0  ;;  %4648 = vset.pattern.permute.xlu1 %v4723_v0  ;;  %s7581_s27 = sld [smem:[#allocation20_spill]]  ;;  %s7583_s24 = sld [smem:[#allocation21_spill]] }
  0x4e   : > { %s7655_s26 = smov (!%p783_p3, %s4904_s26), 1  ;;  %s4974_s0 = sld [smem:[#allocation3 + $0x80]] }
  0x4f   : > { %7579 = sst [smem:[#allocation10_spill]] %s7655_s26  ;;  %s4457_s7 = sshll.u32 %s7655_s26, 4 }
  0x50   : > { %s4988_s1 = sld [smem:[#allocation3]]  ;;  %s4999_s3 = sld [smem:[#allocation3 + $0x1]] }
  0x51   : > { %s5001_s25 = sld [smem:[#allocation3 + $0x81]]  ;;  %s5009_s6 = sld [smem:[#allocation3 + $0x86]] }
  0x52   : > { %v808_v1 = vld [vmem:[%s7580_s2 + $0x8] sm:$0xff]  ;;  %v810_v2 = vld [vmem:[%s7580_s2 + $0x18] sm:$0xff]  ;;  %v807_v4 = vld [vmem:[%s7580_s2] sm:$0xff]  ;;  %s5021_s30 = sld [smem:[#allocation3 + $0x87]]  ;;  %s5032_s5 = sld [smem:[#allocation3 + $0x82]] }
  0x53   : > { %v4460_v3 = vpack.c.bf16 %v810_v2, %v808_v1  ;;  %v809_v5 = vld [vmem:[%s7580_s2 + $0x10] sm:$0xff]  ;;  %s4963_s28 = scalar_lea.vmem %s7581_s27, %s4457_s7  ;;  %s4968_s29 = scalar_lea.vmem %s7583_s24, %s4457_s7  ;;  %v812_v14 = vld [vmem:[%s7580_s2 + $0x28] sm:$0xff]  ;;  %v814_v15 = vld [vmem:[%s7580_s2 + $0x38] sm:$0xff] }
  0x54   : > { %7582 = sst [smem:[#allocation11_spill]] %s4963_s28  ;;  %v4462_v6 = vpack.c.bf16 %v809_v5, %v807_v4  ;;  %v803_v7 = vld [vmem:[%s4963_s28] sm:$0xff]  ;;  %v804_v8 = vld [vmem:[%s4963_s28 + $0x8] sm:$0xff]  ;;  %v813_v19 = vld [vmem:[%s7580_s2 + $0x30] sm:$0xff]  ;;  %v4464_v22 = vpack.c.bf16 %v814_v15, %v812_v14  ;;  %v1201_v41 = vstv %s4974_s0  ;;  %s5007_s27 = sld [smem:[#allocation3 + $0x6]] }
  0x55   : > { %7584 = sst [smem:[#allocation12_spill]] %s4968_s29  ;;  %v805_v9 = vld [vmem:[%s4968_s29] sm:$0xff]  ;;  %4461 = vmatprep.subr.bf16.mxu0 %v4460_v3  ;;  %v806_v10 = vld [vmem:[%s4968_s29 + $0x8] sm:$0xff]  ;;  %v898_v11 = vadd.f32 %v804_v8, %v803_v7  ;;  %v818_v31 = vld [vmem:[%s7580_s2 + $0x58] sm:$0xff]  ;;  %s5019_s0 = sld [smem:[#allocation3 + $0x7]] }
  0x56   : > { %v1169_v12 = vrot.slane %v805_v9, 4  ;;  %4463 = vmatpush1.bf16.msra.mxu0 %v4462_v6  ;;  %v1175_v13 = vrot.slane %v806_v10, 4  ;;  %v811_v18 = vld [vmem:[%s7580_s2 + $0x20] sm:$0xff]  ;;  %v816_v26 = vld [vmem:[%s7580_s2 + $0x48] sm:$0xff]  ;;  %v817_v36 = vld [vmem:[%s7580_s2 + $0x50] sm:$0xff]  ;;  %v1197_v47 = vstv %s4988_s1  ;;  %s5030_s1 = sld [smem:[#allocation3 + $0x2]] }
  0x57   : > { %899 = vadd.xlane.f32.xlu0 %v898_v11  ;;  %v4466_v23 = vpack.c.bf16 %v813_v19, %v811_v18  ;;  %4465 = vmatprep.subr.bf16.mxu0 %v4464_v22  ;;  %v815_v32 = vld [vmem:[%s7580_s2 + $0x40] sm:$0xff]  ;;  %v4468_v35 = vpack.c.bf16 %v818_v31, %v816_v26  ;;  %v1232_v54 = vstv %s4999_s3  ;;  %v1236_v55 = vstv %s5001_s25  ;;  %s5036_s24 = sld [smem:[#allocation3 + $0x8]]  ;;  %s4724_s8 = smov 51  }
  0x58   : > { %v1170_v16 = vadd.f32 %v1169_v12, %v805_v9  ;;  %v1185_v17 = vmax.f32 %v805_v9, %v1169_v12  ;;  %v1176_v20 = vadd.f32 %v1175_v13, %v806_v10  ;;  %v1191_v21 = vmax.f32 %v806_v10, %v1175_v13  ;;  %s5038_s7 = sld [smem:[#allocation3 + $0x88]]  ;;  %s5050_s3 = sld [smem:[#allocation3 + $0x9]] }
  0x59   : > { %v4470_v42 = vpack.c.bf16 %v817_v36, %v815_v32  ;;  %v1406_v58 = vstv %s5009_s6  ;;  %v1440_v1 = vstv %s5021_s30  ;;  %s5052_s25 = sld [smem:[#allocation3 + $0x89]]  ;;  %s7585_s22 = sld [smem:[#allocation25_spill]]  ;;  %v1270_v7 = vstv %s5032_s5 }
  0x5a   : > { %v1171_v24 = vrot.slane %v1170_v16, 2  ;;  %v1186_v25 = vrot.slane %v1185_v17, 2  ;;  %v1177_v27 = vrot.slane %v1176_v20, 2  ;;  %v1192_v28 = vrot.slane %v1191_v21, 2  ;;  %4467 = vmatpush1.bf16.msra.mxu0 %v4466_v23  ;;  %s5061_s21 = sld [smem:[#allocation3 + $0x3]]  ;;  %s5075_s23 = sld [smem:[#allocation3 + $0x8a]] }
  0x5b   : > { %4469 = vmatprep.subr.bf16.mxu0 %v4468_v35  ;;  %v1402_v57 = vstv %s5007_s27  ;;  %v1436_v0 = vstv %s5019_s0  ;;  %s5063_s18 = sld [smem:[#allocation3 + $0x83]]  ;;  %s7486_s5 = smov 45  }
  0x5c   : > { %v1172_v29 = vadd.f32 %v1171_v24, %v1170_v16  ;;  %v1187_v30 = vmax.f32 %v1185_v17, %v1186_v25  ;;  %v1178_v33 = vadd.f32 %v1177_v27, %v1176_v20  ;;  %v1193_v34 = vmax.f32 %v1191_v21, %v1192_v28  ;;  %s5090_s4 = sld [smem:[#allocation3 + $0x8b]]  ;;  %s5098_s15 = sld [smem:[#allocation3 + $0x84]] }
  0x5d   : > { %v1266_v6 = vstv %s5030_s1  ;;  %v1470_v11 = vstv %s5036_s24  ;;  %s4725_s1 = smov 50   ;;  %s7487_s13 = smov 35  }
  0x5e   : > { %v1173_v37 = vrot.slane %v1172_v29, 1  ;;  %v1188_v38 = vrot.slane %v1187_v30, 1  ;;  %v1179_v39 = vrot.slane %v1178_v33, 1  ;;  %v1194_v40 = vrot.slane %v1193_v34, 1  ;;  %4471 = vmatpush1.bf16.msra.mxu0 %v4470_v42  ;;  %s5124_s11 = sld [smem:[#allocation3 + $0xd]]  ;;  %s7491_s17 = smov 33  }
  0x5f   : > { %v904_v2 = vld [vmem:[%s7585_s22] sm:$0xff]  ;;  %v1474_v12 = vstv %s5038_s7  ;;  %s5073_s22 = sld [smem:[#allocation3 + $0xa]]  ;;  %v1504_v19 = vstv %s5050_s3  ;;  %v1508_v20 = vstv %s5052_s25  ;;  %s5126_s20 = sld [smem:[#allocation3 + $0x8d]] }
  0x60   : > { %v1174_v43 = vadd.f32 %v1173_v37, %v1172_v29  ;;  %v5011_v44 = vmax.f32 %v1187_v30, %v1188_v38  ;;  %v1180_v45 = vadd.f32 %v1179_v39, %v1178_v33  ;;  %v5013_v46 = vmax.f32 %v1193_v34, %v1194_v40  ;;  %s5134_s19 = sld [smem:[#allocation3 + $0x85]]  ;;  %s5160_s12 = sld [smem:[#allocation3 + $0xf]] }
  0x61   : > { %v1300_v24 = vstv %s5061_s21  ;;  %v1304_v25 = vstv %s5063_s18  ;;  %v1542_v30 = vstv %s5075_s23  ;;  %s5109_s18 = sld [smem:[#allocation3 + $0xc]]  ;;  %s5162_s16 = sld [smem:[#allocation3 + $0x8f]] }
  0x62   : > { %v5016_v48 = vmul.f32 0.125, %v1174_v43  ;;  %v1202_v49 = vmul.f32 %v1201_v41, %v5011_v44  ;;  %v5023_v50 = vmul.f32 0.125, %v1180_v45  ;;  %v1203_v52 = vmul.f32 %v1201_v41, %v5013_v46  ;;  %s5111_s21 = sld [smem:[#allocation3 + $0x8c]]  ;;  %s5192_s14 = sld [smem:[#allocation3 + $0x11]] }
  0x63   : > { %v1237_v61 = vmul.f32 %v1236_v55, %v5011_v44  ;;  %v1407_v63 = vmul.f32 %v1406_v58, %v5011_v44  ;;  %v1238_v5 = vmul.f32 %v1236_v55, %v5013_v46  ;;  %v1441_v9 = vmul.f32 %v1440_v1, %v5011_v44  ;;  %s5194_s9 = sld [smem:[#allocation3 + $0x91]]  ;;  %s5216_s10 = sld [smem:[#allocation3 + $0x92]] }
  0x64   : > { %v1198_v51 = vmul.f32 %v1197_v47, %v5016_v48  ;;  %v1199_v53 = vmul.f32 %v1197_v47, %v5023_v50  ;;  %v1233_v60 = vmul.f32 %v1232_v54, %v5016_v48  ;;  %v1403_v62 = vmul.f32 %v1402_v57, %v5016_v48  ;;  %s7590_s29 = sld [smem:[#allocation19_spill]]  ;;  %s4740_s27 = smov 18  }
  0x65   : > { %v1234_v4 = vmul.f32 %v1232_v54, %v5023_v50  ;;  %v1437_v8 = vmul.f32 %v1436_v0, %v5016_v48  ;;  %v1267_v14 = vmul.f32 %v1266_v6, %v5016_v48  ;;  %v1271_v15 = vmul.f32 %v1270_v7, %v5011_v44  ;;  %s5263_s6 = sld [smem:[#allocation3 + $0x14]]  ;;  %s7591_s30 = smov 45  }
  0x66   : > { %v1204_v56 = vadd.f32 %v1202_v49, %v1198_v51  ;;  %v1205_v59 = vadd.f32 %v1203_v52, %v1199_v53  ;;  %v1239_v3 = vadd.f32 %v1237_v61, %v1233_v60  ;;  %v1409_v10 = vadd.f32 %v1407_v63, %v1403_v62  ;;  %7588 = sst [smem:[#allocation15_spill]] %s5160_s12  ;;  %s5265_s0 = sld [smem:[#allocation3 + $0x94]] }
  0x67   : > { %v1240_v13 = vadd.f32 %v1238_v5, %v1234_v4  ;;  %v1443_v16 = vadd.f32 %v1441_v9, %v1437_v8  ;;  %v1471_v17 = vmul.f32 %v1470_v11, %v5016_v48  ;;  %v1475_v18 = vmul.f32 %v1474_v12, %v5011_v44  ;;  %7589 = sst [smem:[#allocation16_spill]] %s5162_s16  ;;  %s5284_s24 = sld [smem:[#allocation3 + $0x15]] }
  0x68   : > { %1206 = vrot.lane.b32.xlu1 %v1204_v56, %s4724_s8  ;;  %v1273_v21 = vadd.f32 %v1271_v15, %v1267_v14  ;;  %v1268_v22 = vmul.f32 %v1266_v6, %v5023_v50  ;;  %v1272_v23 = vmul.f32 %v1270_v7, %v5013_v46  ;;  %v1505_v26 = vmul.f32 %v1504_v19, %v5016_v48  ;;  %s5286_s7 = sld [smem:[#allocation3 + $0x95]]  ;;  %s5304_s3 = sld [smem:[#allocation3 + $0x16]] }
  0x69   : > { %v1509_v27 = vmul.f32 %v1508_v20, %v5011_v44  ;;  %v1477_v28 = vadd.f32 %v1475_v18, %v1471_v17  ;;  %v1538_v29 = vstv %s5073_s22  ;;  %v1301_v32 = vmul.f32 %v1300_v24, %v5016_v48  ;;  %s5306_s25 = sld [smem:[#allocation3 + $0x96]]  ;;  %s7593_s28 = smov 34  }
  0x6a   : > { %v1274_v31 = vadd.f32 %v1272_v23, %v1268_v22  ;;  %v1305_v33 = vmul.f32 %v1304_v25, %v5011_v44  ;;  %v1539_v35 = vmul.f32 %v1538_v29, %v5016_v48  ;;  %v1543_v36 = vmul.f32 %v1542_v30, %v5011_v44  ;;  %s5324_s22 = sld [smem:[#allocation3 + $0x17]] }
  0x6b   : > { %v1511_v34 = vadd.f32 %v1509_v27, %v1505_v26  ;;  %v1576_v38 = vstv %s5090_s4  ;;  %v1302_v40 = vmul.f32 %v1300_v24, %v5023_v50  ;;  %v1306_v41 = vmul.f32 %v1304_v25, %v5013_v46  ;;  %v820_v26 = vld [vmem:[%s7580_s2 + $0x68] sm:$0xff]  ;;  %v822_v27 = vld [vmem:[%s7580_s2 + $0x78] sm:$0xff]  ;;  %s5326_s23 = sld [smem:[#allocation3 + $0x97]]  ;;  %s7505_s4 = smov 13  }
  0x6c   : > { %1208 = vrot.lane.b32.xlu1 %v1205_v59, %s4724_s8  ;;  %s5088_s8 = sld [smem:[#allocation3 + $0xb]]  ;;  %v1307_v39 = vadd.f32 %v1305_v33, %v1301_v32  ;;  %v1338_v43 = vstv %s5098_s15  ;;  %v1577_v47 = vmul.f32 %v1576_v38, %v5011_v44  ;;  %v1545_v49 = vadd.f32 %v1543_v36, %v1539_v35  ;;  %s5145_s15 = sld [smem:[#allocation3 + $0xe]]  ;;  %v819_v36 = vld [vmem:[%s7580_s2 + $0x60] sm:$0xff] }
  0x6d   : > { %907 = vperm.xlu0 %4647, %v904_v2   ;;  %v1606_v51 = vstv %s5109_s18  ;;  %v1610_v52 = vstv %s5111_s21  ;;  %v1308_v53 = vadd.f32 %v1306_v41, %v1302_v40  ;;  %v1339_v55 = vmul.f32 %v1338_v43, %v5011_v44  ;;  %s5360_s18 = sld [smem:[#allocation3 + $0x19]] }
  0x6e   : > { %v1607_v59 = vmul.f32 %v1606_v51, %v5016_v48  ;;  %v1611_v60 = vmul.f32 %v1610_v52, %v5011_v44  ;;  %v1640_v61 = vstv %s5124_s11  ;;  %v1644_v62 = vstv %s5126_s20  ;;  %s5362_s21 = sld [smem:[#allocation3 + $0x99]]  ;;  %s7601_s20 = smov 30  }
  0x6f   : > { %v1372_v5 = vstv %s5134_s19  ;;  %v1641_v6 = vmul.f32 %v1640_v61, %v5016_v48  ;;  %v1645_v7 = vmul.f32 %v1644_v62, %v5011_v44  ;;  %s4734_s19 = smov 47   ;;  %v1712_v22 = vstv %s5162_s16  ;;  %s5242_s16 = sld [smem:[#allocation3 + $0x13]] }
  0x70   : > { %1241 = vrot.lane.b32.xlu1 %v1239_v3, %s4725_s1  ;;  %v1340_v3 = vmul.f32 %v1338_v43, %v5013_v46  ;;  %v1613_v8 = vadd.f32 %v1611_v60, %v1607_v59  ;;  %v1373_v15 = vmul.f32 %v1372_v5, %v5011_v44  ;;  %v1374_v25 = vmul.f32 %v1372_v5, %v5013_v46  ;;  %s5415_s11 = sld [smem:[#allocation3 + $0x1c]] }
  0x71   : > { %1411 = vrot.lane.b32.xlu0 %v1409_v10, %s7486_s5  ;;  %s5096_s5 = sld [smem:[#allocation3 + $0x4]]  ;;  %v4472_v35 = vpack.c.bf16 %v822_v27, %v820_v26  ;;  %v1404_v41 = vmul.f32 %v1402_v57, %v5023_v50  ;;  %v1476_v5 = vmul.f32 %v1474_v12, %v5013_v46 }
  0x72   : > { %v1572_v37 = vstv %s5088_s8  ;;  %7586 = sst [smem:[#allocation13_spill]] %s5145_s15  ;;  %v1674_v9 = vstv %s5145_s15  ;;  %s7595_s8 = smov 32  }
  0x73   : > { %v1573_v45 = vmul.f32 %v1572_v37, %v5016_v48  ;;  %v1675_v17 = vmul.f32 %v1674_v9, %v5016_v48  ;;  %4473 = vmatprep.subr.bf16.mxu0 %v4472_v35  ;;  %v1578_v35 = vmul.f32 %v1576_v38, %v5013_v46  ;;  %v1608_v38 = vmul.f32 %v1606_v51, %v5023_v50 }
  0x74   : > { %1243 = vrot.lane.b32.xlu1 %v1240_v13, %s4725_s1  ;;  %s4728_s1 = smov 49  }
  0x75   : > { %1445 = vrot.lane.b32.xlu0 %v1443_v16, %s7487_s13  ;;  %s7489_s13 = smov 34   ;;  %v1579_v56 = vadd.f32 %v1577_v47, %v1573_v45  ;;  %v1647_v16 = vadd.f32 %v1645_v7, %v1641_v6 }
  0x77   : > { %v1334_v42 = vstv %s5096_s5  ;;  %s5147_s5 = sld [smem:[#allocation3 + $0x8e]] }
  0x78   : > { %1275 = vrot.lane.b32.xlu1 %v1273_v21, %s4728_s1  ;;  %v1335_v54 = vmul.f32 %v1334_v42, %v5016_v48  ;;  %v1336_v2 = vmul.f32 %v1334_v42, %v5023_v50  ;;  %v1708_v21 = vstv %s5160_s12  ;;  %v1408_v42 = vmul.f32 %v1406_v58, %v5013_v46  ;;  %s4738_s12 = smov 19  }
  0x79   : > { %1479 = vrot.lane.b32.xlu0 %v1477_v28, %s7489_s13  ;;  %s5132_s13 = sld [smem:[#allocation3 + $0x5]]  ;;  %v1709_v28 = vmul.f32 %v1708_v21, %v5016_v48  ;;  %v1780_v58 = vstv %s5194_s9  ;;  %s5456_s9 = sld [smem:[#allocation3 + $0x9e]] }
  0x7a   : > { %v1341_v63 = vadd.f32 %v1339_v55, %v1335_v54  ;;  %v1342_v13 = vadd.f32 %v1340_v3, %v1336_v2  ;;  %v1410_v54 = vadd.f32 %v1408_v42, %v1404_v41  ;;  %v1438_v55 = vmul.f32 %v1436_v0, %v5023_v50 }
  0x7b   : > { %v1781_v0 = vmul.f32 %v1780_v58, %v5011_v44  ;;  %v1946_v41 = vstv %s5304_s3  ;;  %v1950_v42 = vstv %s5306_s25  ;;  %s5554_s3 = sld [smem:[#allocation3 + $0x23]] }
  0x7c   : > { %1277 = vrot.lane.b32.xlu1 %v1274_v31, %s4728_s1  ;;  %s4731_s1 = smov 48   ;;  %v1713_v31 = vmul.f32 %v1712_v22, %v5011_v44  ;;  %s5556_s25 = sld [smem:[#allocation3 + $0xa3]] }
  0x7d   : > { %1513 = vrot.lane.b32.xlu0 %v1511_v34, %s7491_s17  ;;  %7587 = sst [smem:[#allocation14_spill]] %s5147_s5  ;;  %s7492_s17 = smov 32   ;;  %v1678_v10 = vstv %s5147_s5 }
  0x7e   : > { %v1679_v18 = vmul.f32 %v1678_v10, %v5011_v44  ;;  %s4266_s5 = sshll.u32 %s7655_s26, 3  ;;  %v1715_v43 = vadd.f32 %v1713_v31, %v1709_v28  ;;  %s5244_s26 = sld [smem:[#allocation3 + $0x93]]  ;;  %v1912_v31 = vstv %s5284_s24 }
  0x7f   : > { %v1368_v4 = vstv %s5132_s13  ;;  %s5179_s13 = sld [smem:[#allocation3 + $0x90]]  ;;  %s786_s15 = scalar_lea.vmem %s7590_s29, %s4266_s5 }
  0x80   : > { %1309 = vrot.lane.b32.xlu1 %v1307_v39, %s4731_s1  ;;  %v1369_v14 = vmul.f32 %v1368_v4, %v5016_v48  ;;  %v1370_v24 = vmul.f32 %v1368_v4, %v5023_v50  ;;  %v1681_v32 = vadd.f32 %v1679_v18, %v1675_v17  ;;  %v821_v39 = vld [vmem:[%s7580_s2 + $0x70] sm:$0xff]  ;;  %v802_v59 = vld [vmem:[%s786_s15] sm:$0xff]  ;;  %v1472_v4 = vmul.f32 %v1470_v11, %v5023_v50  ;;  %s7512_s15 = smov 17   ;;  %s7592_s5 = smov 35  }
  0x81   : > { %1547 = vrot.lane.b32.xlu0 %v1545_v49, %s7492_s17  ;;  %s7493_s17 = smov 31   ;;  %v4474_v47 = vpack.c.bf16 %v821_v39, %v819_v36  ;;  %v1776_v49 = vstv %s5192_s14  ;;  %v1844_v11 = vstv %s5242_s16  ;;  %s7507_s29 = smov 15   ;;  %v1913_v39 = vmul.f32 %v1912_v31, %v5016_v48 }
  0x82   : > { %v1375_v23 = vadd.f32 %v1373_v15, %v1369_v14  ;;  %v1376_v40 = vadd.f32 %v1374_v25, %v1370_v24  ;;  %v1478_v12 = vadd.f32 %v1476_v5, %v1472_v4  ;;  %v1506_v14 = vmul.f32 %v1504_v19, %v5023_v50  ;;  %s5454_s14 = sld [smem:[#allocation3 + $0x1e]]  ;;  %s5494_s16 = sld [smem:[#allocation3 + $0x20]] }
  0x83   : > { %4475 = vmatpush1.bf16.msra.mxu0 %v4474_v47  ;;  %v1510_v15 = vmul.f32 %v1508_v20, %v5013_v46  ;;  %v1845_v17 = vmul.f32 %v1844_v11, %v5016_v48  ;;  %v1882_v24 = vstv %s5265_s0  ;;  %v1540_v20 = vmul.f32 %v1538_v29, %v5023_v50  ;;  %s5516_s0 = sld [smem:[#allocation3 + $0xa1]]  ;;  %s5534_s24 = sld [smem:[#allocation3 + $0x22]] }
  0x84   : > { %1311 = vrot.lane.b32.xlu1 %v1308_v53, %s4731_s1  ;;  %s5177_s1 = sld [smem:[#allocation3 + $0x10]]  ;;  %v7536_v53 = vmov 0.0   ;;  %v1544_v25 = vmul.f32 %v1542_v30, %v5013_v46  ;;  %v1883_v28 = vmul.f32 %v1882_v24, %v5011_v44  ;;  %v1574_v30 = vmul.f32 %v1572_v37, %v5023_v50  ;;  %s7614_s2 = smov 125  }
  0x85   : > { %1581 = vrot.lane.b32.xlu0 %v1579_v56, %s7493_s17  ;;  %s7494_s17 = smov 30   ;;  %v1746_v34 = vstv %s5179_s13  ;;  %891 = vmatprep.mubr.f32.mxu0 %v7536_v53  ;;  %v1442_v56 = vmul.f32 %v1440_v1, %v5013_v46  ;;  %v1814_v1 = vstv %s5216_s10  ;;  %v1512_v19 = vadd.f32 %v1510_v15, %v1506_v14  ;;  %s7517_s13 = smov 127  }
  0x86   : > { %v1747_v57 = vmul.f32 %v1746_v34, %v5011_v44  ;;  %1063 = vmatprep.mubr.f32.mxu1 %v7536_v53  ;;  %4273 = vmatmul.mubr.msk.f32.vlgmr.msra.gmra.mrb[0].mxu0 %vm823_vm0, %v802_v59  ;;  %v1546_v29 = vadd.f32 %v1544_v25, %v1540_v20  ;;  %v1580_v37 = vadd.f32 %v1578_v35, %v1574_v30  ;;  %v2041_v4 = vstv %s5360_s18  ;;  %s5476_s10 = sld [smem:[#allocation3 + $0x9f]]  ;;  %s5596_s18 = sld [smem:[#allocation3 + $0x25]] }
  0x87   : > { %v1444_v3 = vadd.f32 %v1442_v56, %v1438_v55  ;;  %978 = vmatprep.mubr.f32.mxu0 %v7536_v53  ;;  %v1951_v47 = vmul.f32 %v1950_v42, %v5011_v44  ;;  %v1984_v55 = vstv %s5326_s23  ;;  %v1646_v56 = vmul.f32 %v1644_v62, %v5013_v46  ;;  %s5576_s23 = sld [smem:[#allocation3 + $0xa4]] }
  0x88   : > { %1343 = vrot.lane.b32.xlu1 %v1341_v63, %s4734_s19  ;;  %v1777_v63 = vmul.f32 %v1776_v49, %v5016_v48  ;;  %v1676_v62 = vmul.f32 %v1674_v9, %v5023_v50  ;;  %v2045_v5 = vstv %s5362_s21  ;;  %v2143_v30 = vstv %s5415_s11  ;;  %s5598_s21 = sld [smem:[#allocation3 + $0xa5]]  ;;  %s4760_s11 = smov 98  }
  0x89   : > { %1615 = vrot.lane.b32.xlu0 %v1613_v8, %s7494_s17  ;;  %s5214_s17 = sld [smem:[#allocation3 + $0x12]]  ;;  %v1815_v8 = vmul.f32 %v1814_v1, %v5011_v44 }
  0x8a   : > { %v1742_v33 = vstv %s5177_s1  ;;  %v1783_v6 = vadd.f32 %v1781_v0, %v1777_v63  ;;  %v1985_v63 = vmul.f32 %v1984_v55, %v5011_v44  ;;  %v1680_v0 = vmul.f32 %v1678_v10, %v5013_v46  ;;  %s5436_s1 = sld [smem:[#allocation3 + $0x9d]] }
  0x8b   : > { %v1743_v45 = vmul.f32 %v1742_v33, %v5016_v48  ;;  %v1710_v10 = vmul.f32 %v1708_v21, %v5023_v50  ;;  %v1744_v15 = vmul.f32 %v1742_v33, %v5023_v50 }
  0x8c   : > { %1345 = vrot.lane.b32.xlu1 %v1342_v13, %s4734_s19  ;;  %s7502_s19 = smov 29   ;;  %v1848_v13 = vstv %s5244_s26  ;;  %v1682_v9 = vadd.f32 %v1680_v0, %v1676_v62  ;;  %s5496_s26 = sld [smem:[#allocation3 + $0xa0]]  ;;  %v2249_v0 = vstv %s5476_s10 }
  0x8d   : > { %1649 = vrot.lane.b32.xlu0 %v1647_v16, %s7502_s19  ;;  %s4737_s19 = smov 46   ;;  %v1749_v60 = vadd.f32 %v1747_v57, %v1743_v45  ;;  %v1849_v18 = vmul.f32 %v1848_v13, %v5011_v44  ;;  %v1947_v57 = vmul.f32 %v1946_v41, %v5016_v48  ;;  %s7533_s10 = smov 95  }
  0x8f   : > { %v1810_v2 = vstv %s5214_s17  ;;  %v1851_v26 = vadd.f32 %v1849_v18, %v1845_v17  ;;  %v1953_v59 = vadd.f32 %v1951_v47, %v1947_v57  ;;  %s5474_s17 = sld [smem:[#allocation3 + $0x1f]] }
  0x90   : > { %1377 = vrot.lane.b32.xlu1 %v1375_v23, %s4737_s19  ;;  %v1811_v7 = vmul.f32 %v1810_v2, %v5016_v48  ;;  %v1878_v23 = vstv %s5263_s6  ;;  %s5514_s6 = sld [smem:[#allocation3 + $0x21]] }
  0x91   : > { %1683 = vrot.lane.b32.xlu0 %v1681_v32, %s4738_s12  ;;  %v1879_v27 = vmul.f32 %v1878_v23, %v5016_v48  ;;  %v1916_v32 = vstv %s5286_s7  ;;  %s5536_s7 = sld [smem:[#allocation3 + $0xa2]] }
  0x92   : > { %v1817_v16 = vadd.f32 %v1815_v8, %v1811_v7  ;;  %v2043_v7 = vmul.f32 %v2041_v4, %v5023_v50  ;;  %v2047_v8 = vmul.f32 %v2045_v5, %v5013_v46 }
  0x93   : > { %v1885_v36 = vadd.f32 %v1883_v28, %v1879_v27 }
  0x94   : > { %1379 = vrot.lane.b32.xlu1 %v1376_v40, %s4737_s19  ;;  %s7510_s19 = smov 16   ;;  %v1917_v40 = vmul.f32 %v1916_v32, %v5011_v44  ;;  %v2049_v17 = vadd.f32 %v2047_v8, %v2043_v7  ;;  %v2279_v7 = vstv %s5494_s16  ;;  %v2283_v8 = vstv %s5496_s26  ;;  %s7620_s16 = smov 112  }
  0x95   : > { %1717 = vrot.lane.b32.xlu0 %v1715_v43, %s4740_s27  ;;  %v1612_v43 = vmul.f32 %v1610_v52, %v5013_v46  ;;  %v1642_v52 = vmul.f32 %v1640_v61, %v5023_v50  ;;  %v2245_v62 = vstv %s5474_s17  ;;  %s7619_s17 = smov 113   ;;  %s7621_s26 = smov 111  }
  0x96   : > { %v1919_v45 = vadd.f32 %v1917_v40, %v1913_v39  ;;  %v2145_v40 = vmul.f32 %v2143_v30, %v5023_v50 }
  0x97   : > { %v1614_v51 = vadd.f32 %v1612_v43, %v1608_v38  ;;  %v1648_v61 = vadd.f32 %v1646_v56, %v1642_v52  ;;  %v2181_v43 = vstv %s5436_s1  ;;  %v2211_v52 = vstv %s5454_s14  ;;  %s5707_s1 = sld [smem:[#allocation3 + $0x28]] }
  0x98   : > { %1413 = vrot.lane.b32.xlu1 %v1410_v54, %s7591_s30  ;;  %s7594_s30 = smov 33   ;;  %v1980_v54 = vstv %s5324_s22  ;;  %v2215_v56 = vstv %s5456_s9  ;;  %s5574_s22 = sld [smem:[#allocation3 + $0x24]] }
  0x99   : > { %1751 = vrot.lane.b32.xlu0 %v1749_v60, %s7512_s15  ;;  %v1981_v60 = vmul.f32 %v1980_v54, %v5016_v48  ;;  %s7602_s15 = smov 29   ;;  %s5709_s14 = sld [smem:[#allocation3 + $0xa8]] }
  0x9a   : > { %s7616_s9 = smov 114  }
  0x9c   : > { %1447 = vrot.lane.b32.xlu1 %v1444_v3, %s7592_s5  ;;  %s7506_s5 = smov 14   ;;  %v1987_v3 = vadd.f32 %v1985_v63, %v1981_v60  ;;  %v2213_v63 = vmul.f32 %v2211_v52, %v5023_v50 }
  0x9d   : > { %1785 = vrot.lane.b32.xlu0 %v1783_v6, %s7510_s19  ;;  %s5392_s19 = sld [smem:[#allocation3 + $0x1b]]  ;;  %v1714_v6 = vmul.f32 %v1712_v22, %v5013_v46 }
  0x9f   : > { %v1716_v22 = vadd.f32 %v1714_v6, %v1710_v10  ;;  %v2247_v10 = vmul.f32 %v2245_v62, %v5023_v50  ;;  %v2251_v6 = vmul.f32 %v2249_v0, %v5013_v46 }
  0xa0   : > { %1481 = vrot.lane.b32.xlu1 %v1478_v12, %s7593_s28  ;;  %s7525_s28 = smov 1  }
  0xa1   : > { %1819 = vrot.lane.b32.xlu0 %v1817_v16, %s7507_s29  ;;  %s5380_s29 = sld [smem:[#allocation3 + $0x9a]]  ;;  %v1748_v16 = vmul.f32 %v1746_v34, %v5013_v46  ;;  %v1778_v34 = vmul.f32 %v1776_v49, %v5023_v50 }
  0xa3   : > { %v2109_v20 = vstv %s5392_s19  ;;  %v1750_v33 = vadd.f32 %v1748_v16, %v1744_v15  ;;  %v2281_v15 = vmul.f32 %v2279_v7, %v5023_v50  ;;  %v2285_v16 = vmul.f32 %v2283_v8, %v5013_v46  ;;  %s5640_s19 = sld [smem:[#allocation3 + $0x27]] }
  0xa4   : > { %1515 = vrot.lane.b32.xlu1 %v1512_v19, %s7594_s30  ;;  %v2111_v28 = vmul.f32 %v2109_v20, %v5023_v50  ;;  %s7605_s30 = smov 16  }
  0xa5   : > { %1853 = vrot.lane.b32.xlu0 %v1851_v26, %s7506_s5  ;;  %s5378_s5 = sld [smem:[#allocation3 + $0x1a]]  ;;  %v1782_v26 = vmul.f32 %v1780_v58, %v5013_v46  ;;  %v1812_v58 = vmul.f32 %v1810_v2, %v5023_v50 }
  0xa7   : > { %v2079_v14 = vstv %s5380_s29  ;;  %v1784_v49 = vadd.f32 %v1782_v26, %v1778_v34  ;;  %s5618_s29 = sld [smem:[#allocation3 + $0x26]] }
  0xa8   : > { %1549 = vrot.lane.b32.xlu1 %v1546_v29, %s7595_s8  ;;  %s7598_s8 = smov 31   ;;  %v2081_v19 = vmul.f32 %v2079_v14, %v5013_v46 }
  0xa9   : > { %1887 = vrot.lane.b32.xlu0 %v1885_v36, %s7505_s4  ;;  %s7509_s4 = smov 3   ;;  %v1816_v36 = vmul.f32 %v1814_v1, %v5013_v46  ;;  %v1846_v1 = vmul.f32 %v1844_v11, %v5023_v50 }
  0xab   : > { %v2075_v12 = vstv %s5378_s5  ;;  %v1818_v2 = vadd.f32 %v1816_v36, %v1812_v58  ;;  %s5620_s5 = sld [smem:[#allocation3 + $0xa6]] }
  0xac   : > { %1583 = vrot.lane.b32.xlu1 %v1580_v37, %s7598_s8  ;;  %s7603_s8 = sld [smem:[#allocation27_spill]]  ;;  %v2077_v18 = vmul.f32 %v2075_v12, %v5023_v50 }
  0xad   : > { %1921 = vrot.lane.b32.xlu0 %v1919_v45, %s7509_s4  ;;  %s7514_s4 = smov 2   ;;  %v1850_v45 = vmul.f32 %v1848_v13, %v5013_v46  ;;  %v1880_v13 = vmul.f32 %v1878_v23, %v5023_v50 }
  0xae   : > { %v2083_v27 = vadd.f32 %v2081_v19, %v2077_v18  ;;  %v2317_v18 = vstv %s5516_s0  ;;  %v1986_v19 = vmul.f32 %v1984_v55, %v5013_v46  ;;  %v2042_v55 = vmul.f32 %v2041_v4, %v5016_v48  ;;  %s5787_s0 = sld [smem:[#allocation3 + $0xaa]] }
  0xaf   : > { %v1852_v11 = vadd.f32 %v1850_v45, %v1846_v1  ;;  %v2319_v26 = vmul.f32 %v2317_v18, %v5013_v46  ;;  %v2381_v4 = vstv %s5554_s3  ;;  %s7623_s3 = smov 109  }
  0xb0   : > { %1617 = vrot.lane.b32.xlu1 %v1614_v51, %s7601_s20  ;;  %s5394_s20 = sld [smem:[#allocation3 + $0x9b]]  ;;  %v2183_v51 = vmul.f32 %v2181_v43, %v5013_v46 }
  0xb1   : > { %1955 = vrot.lane.b32.xlu0 %v1953_v59, %s7514_s4  ;;  %s5417_s4 = sld [smem:[#allocation3 + $0x9c]]  ;;  %v1884_v59 = vmul.f32 %v1882_v24, %v5013_v46  ;;  %v1914_v24 = vmul.f32 %v1912_v31, %v5023_v50 }
  0xb2   : > { %v990_v21 = vld [vmem:[%s7603_s8] sm:$0xff]  ;;  %s7516_s8 = smov 125  }
  0xb3   : > { %v1886_v23 = vadd.f32 %v1884_v59, %v1880_v13 }
  0xb4   : > { %1651 = vrot.lane.b32.xlu1 %v1648_v61, %s7602_s15  ;;  %s7515_s15 = smov 126   ;;  %v2217_v61 = vmul.f32 %v2215_v56, %v5013_v46 }
  0xb5   : > { %1989 = vrot.lane.b32.xlu0 %v1987_v3, %s7525_s28  ;;  %v1918_v3 = vmul.f32 %v1916_v32, %v5013_v46  ;;  %v1948_v32 = vmul.f32 %v1946_v41, %v5023_v50 }
  0xb6   : > { %v2113_v25 = vstv %s5394_s20  ;;  %s5642_s20 = sld [smem:[#allocation3 + $0xa7]] }
  0xb7   : > { %v2115_v29 = vmul.f32 %v2113_v25, %v5013_v46  ;;  %v2147_v35 = vstv %s5417_s4  ;;  %v1920_v31 = vadd.f32 %v1918_v3, %v1914_v24  ;;  %v2114_v13 = vmul.f32 %v2113_v25, %v5011_v44  ;;  %s7617_s4 = sld [smem:[#allocation11_spill]] }
  0xb8   : > { %1685 = vrot.lane.b32.xlu1 %v1682_v9, %s4738_s12  ;;  %s5434_s12 = sld [smem:[#allocation3 + $0x1d]]  ;;  %v2149_v37 = vmul.f32 %v2147_v35, %v5013_v46  ;;  %v2219_v9 = vadd.f32 %v2217_v61, %v2213_v63  ;;  %v2453_v24 = vstv %s5598_s21  ;;  %v2144_v25 = vmul.f32 %v2143_v30, %v5016_v48 }
  0xb9   : > { %993 = vperm.xlu0 %4647, %v990_v21   ;;  %v2117_v39 = vadd.f32 %v2115_v29, %v2111_v28  ;;  %v1952_v21 = vmul.f32 %v1950_v42, %v5013_v46  ;;  %v1982_v42 = vmul.f32 %v1980_v54, %v5023_v50  ;;  %v2351_v28 = vstv %s5536_s7  ;;  %s7535_s7 = smov 94   ;;  %s5863_s21 = sld [smem:[#allocation3 + $0x2d]] }
  0xba   : > { %v2151_v57 = vadd.f32 %v2149_v37, %v2145_v40  ;;  %v2046_v29 = vmul.f32 %v2045_v5, %v5011_v44  ;;  %v2385_v40 = vstv %s5556_s25  ;;  %v2076_v37 = vmul.f32 %v2075_v12, %v5016_v48  ;;  %s7534_s25 = smov 93  }
  0xbb   : > { %v1954_v41 = vadd.f32 %v1952_v21, %v1948_v32  ;;  %v1988_v54 = vadd.f32 %v1986_v19, %v1982_v42  ;;  %v2415_v12 = vstv %s5574_s22  ;;  %v2148_v3 = vmul.f32 %v2147_v35, %v5011_v44  ;;  %s5838_s22 = sld [smem:[#allocation3 + $0x2c]] }
  0xbc   : > { %1719 = vrot.lane.b32.xlu1 %v1716_v22, %s4740_s27  ;;  %s7604_s27 = smov 17   ;;  %v2253_v22 = vadd.f32 %v2251_v6, %v2247_v10  ;;  %v2048_v5 = vadd.f32 %v2046_v29, %v2042_v55  ;;  %v2417_v63 = vmul.f32 %v2415_v12, %v5023_v50  ;;  %v2455_v30 = vmul.f32 %v2453_v24, %v5013_v46 }
  0xbd   : > { %2052 = vrot.lane.b32.xlu0 %v2049_v17, %s7517_s13  ;;  %s7607_s13 = smov 14   ;;  %v2313_v17 = vstv %s5514_s6  ;;  %v2483_v21 = vstv %s5618_s29  ;;  %v2216_v55 = vmul.f32 %v2215_v56, %v5011_v44  ;;  %v2246_v56 = vmul.f32 %v2245_v62, %v5016_v48  ;;  %s5785_s6 = sld [smem:[#allocation3 + $0x2a]] }
  0xbe   : > { %v2177_v38 = vstv %s5434_s12  ;;  %v2315_v34 = vmul.f32 %v2313_v17, %v5023_v50  ;;  %s7532_s12 = smov 97   ;;  %s7625_s29 = smov 97  }
  0xbf   : > { %v2179_v47 = vmul.f32 %v2177_v38, %v5023_v50 }
  0xc0   : > { %1753 = vrot.lane.b32.xlu1 %v1750_v33, %s7604_s27  ;;  %v2287_v33 = vadd.f32 %v2285_v16, %v2281_v15  ;;  %v2321_v58 = vadd.f32 %v2319_v26, %v2315_v34  ;;  %v2150_v15 = vadd.f32 %v2148_v3, %v2144_v25  ;;  %v2178_v16 = vmul.f32 %v2177_v38, %v5016_v48 }
  0xc1   : > { %2086 = vrot.lane.b32.xlu0 %v2083_v27, %s7515_s15  ;;  %s7606_s15 = smov 15   ;;  %v2185_v60 = vadd.f32 %v2183_v51, %v2179_v47  ;;  %v2347_v27 = vstv %s5534_s24  ;;  %v2387_v47 = vmul.f32 %v2385_v40, %v5013_v46  ;;  %v2419_v51 = vstv %s5576_s23  ;;  %s7622_s24 = smov 110  }
  0xc2   : > { %v2349_v36 = vmul.f32 %v2347_v27, %v5023_v50  ;;  %v2421_v61 = vmul.f32 %v2419_v51, %v5013_v46  ;;  %v2517_v34 = vstv %s5640_s19  ;;  %v2318_v25 = vmul.f32 %v2317_v18, %v5011_v44  ;;  %s5840_s23 = sld [smem:[#allocation3 + $0xac]]  ;;  %s4766_s19 = smov 83  }
  0xc4   : > { %1787 = vrot.lane.b32.xlu1 %v1784_v49, %s7605_s30 }
  0xc5   : > { %2120 = vrot.lane.b32.xlu0 %v2117_v39, %s7516_s8  ;;  %s7519_s8 = smov 115   ;;  %v2353_v39 = vmul.f32 %v2351_v28, %v5013_v46 }
  0xc7   : > { %v2355_v45 = vadd.f32 %v2353_v39, %v2349_v36  ;;  %v2519_v39 = vmul.f32 %v2517_v34, %v5023_v50 }
  0xc8   : > { %1821 = vrot.lane.b32.xlu1 %v1818_v2, %s7606_s15  ;;  %v2080_v2 = vmul.f32 %v2079_v14, %v5011_v44 }
  0xc9   : > { %2154 = vrot.lane.b32.xlu0 %v2151_v57, %s7519_s8  ;;  %s7520_s8 = smov 114   ;;  %v2383_v57 = vmul.f32 %v2381_v4, %v5023_v50 }
  0xca   : > { %v2082_v14 = vadd.f32 %v2080_v2, %v2076_v37  ;;  %v2250_v37 = vmul.f32 %v2249_v0, %v5011_v44  ;;  %v2280_v0 = vmul.f32 %v2279_v7, %v5016_v48  ;;  %v2551_v7 = vstv %s5707_s1  ;;  %s4768_s1 = smov 81  }
  0xcc   : > { %1855 = vrot.lane.b32.xlu1 %v1852_v11, %s7607_s13  ;;  %s7608_s13 = smov 13   ;;  %v2110_v11 = vmul.f32 %v2109_v20, %v5016_v48  ;;  %v2252_v62 = vadd.f32 %v2250_v37, %v2246_v56  ;;  %v2619_v56 = vstv %s5785_s6  ;;  %v2623_v37 = vstv %s5787_s0  ;;  %s7640_s6 = sld [smem:[#allocation29_spill]] }
  0xcd   : > { %2188 = vrot.lane.b32.xlu0 %v2185_v60, %s7520_s8  ;;  %s7521_s8 = smov 113   ;;  %v2389_v60 = vadd.f32 %v2387_v47, %v2383_v57  ;;  %v2284_v47 = vmul.f32 %v2283_v8, %v5011_v44  ;;  %s4422_s0 = sld [smem:[#allocation5 + $0x1]] }
  0xce   : > { %v2116_v20 = vadd.f32 %v2114_v13, %v2110_v11  ;;  %v4667_v11 = vld [vmem:[%s7617_s4 + $0x8] sm:$0xff] }
  0xcf   : > { %v2286_v8 = vadd.f32 %v2284_v47, %v2280_v0 }
  0xd0   : > { %1889 = vrot.lane.b32.xlu1 %v1886_v23, %s7608_s13  ;;  %s7609_s13 = smov 3   ;;  %v2449_v23 = vstv %s5596_s18  ;;  %s7624_s18 = smov 1  }
  0xd1   : > { %2222 = vrot.lane.b32.xlu0 %v2219_v9, %s7521_s8  ;;  %s7523_s8 = smov 112   ;;  %v2451_v32 = vmul.f32 %v2449_v23, %v5023_v50 }
  0xd3   : > { %v2457_v19 = vadd.f32 %v2455_v30, %v2451_v32 }
  0xd4   : > { %1923 = vrot.lane.b32.xlu1 %v1920_v31, %s7609_s13  ;;  %s7610_s13 = smov 2   ;;  %v2423_v31 = vadd.f32 %v2421_v61, %v2417_v63  ;;  %v2555_v61 = vstv %s5709_s14  ;;  %s5992_s14 = sld [smem:[#allocation3 + $0xaf]] }
  0xd5   : > { %2256 = vrot.lane.b32.xlu0 %v2253_v22, %s7523_s8  ;;  %s7528_s8 = smov 111   ;;  %v2487_v22 = vstv %s5620_s5  ;;  %v2557_v32 = vmul.f32 %v2555_v61, %v5013_v46  ;;  %s5947_s5 = sld [smem:[#allocation3 + $0xae]] }
  0xd6   : > { %v2489_v38 = vmul.f32 %v2487_v22, %v5013_v46 }
  0xd8   : > { %1957 = vrot.lane.b32.xlu1 %v1954_v41, %s7610_s13  ;;  %s7527_s13 = smov 110   ;;  %v2182_v41 = vmul.f32 %v2181_v43, %v5011_v44  ;;  %v2521_v43 = vstv %s5642_s20  ;;  %s7628_s20 = smov 94  }
  0xd9   : > { %2290 = vrot.lane.b32.xlu0 %v2287_v33, %s7528_s8  ;;  %s7612_s8 = smov 126   ;;  %v2485_v33 = vmul.f32 %v2483_v21, %v5023_v50 }
  0xda   : > { %v5585_v49 = vpop.permute.xlu1 %1206  ;;  %v2184_v26 = vadd.f32 %v2182_v41, %v2178_v16 }
  0xdb   : > { %v2491_v36 = vadd.f32 %v2489_v38, %v2485_v33 }
  0xdc   : > { %1991 = vrot.lane.b32.xlu1 %v1988_v54, %s7525_s28  ;;  %s7611_s28 = smov 127   ;;  %v2212_v54 = vmul.f32 %v2211_v52, %v5016_v48 }
  0xdd   : > { %2324 = vrot.lane.b32.xlu0 %v2321_v58, %s7527_s13  ;;  %s7530_s13 = smov 109  }
  0xde   : > { %v5607_v1 = vpop.permute.xlu1 %1208  ;;  %v2218_v52 = vadd.f32 %v2216_v55, %v2212_v54 }
  0xe0   : > { %2050 = vrot.lane.b32.xlu1 %v2048_v5, %s7611_s28  ;;  %v2523_v5 = vmul.f32 %v2521_v43, %v5013_v46 }
  0xe1   : > { %2358 = vrot.lane.b32.xlu0 %v2355_v45, %s7530_s13  ;;  %s4759_s13 = smov 99  }
  0xe2   : > { %v5629_v59 = vpop.permute.xlu1 %1241  ;;  %v2525_v57 = vadd.f32 %v2523_v5, %v2519_v39  ;;  %v2420_v39 = vmul.f32 %v2419_v51, %v5011_v44  ;;  %v2450_v51 = vmul.f32 %v2449_v23, %v5016_v48 }
  0xe4   : > { %2084 = vrot.lane.b32.xlu1 %v2082_v14, %s7612_s8  ;;  %v900_v9 = vpop.xlane.xlu0 %899  ;;  %s7613_s8 = sld [smem:[#allocation24_spill]] }
  0xe5   : > { %v5651_v10 = vmul.f32 0.00390625, %v900_v9  ;;  %2392 = vrot.lane.b32.xlu0 %v2389_v60, %s4759_s13 }
  0xe6   : > { %v5653_v6 = vpop.permute.xlu1 %1243 }
  0xe7   : > { %914 = vmatprep.subr.mxu0 %v5651_v10 }
  0xe8   : > { %2118 = vrot.lane.b32.xlu1 %v2116_v20, %s7614_s2  ;;  %915 = vmatpush1.msra.mxu0 %v5651_v10  ;;  %s7615_s2 = smov 115   ;;  %v2314_v20 = vmul.f32 %v2313_v17, %v5016_v48 }
  0xe9   : > { %2426 = vrot.lane.b32.xlu0 %v2423_v31, %s4760_s11  ;;  %v2553_v31 = vmul.f32 %v2551_v7, %v5023_v50 }
  0xea   : > { %v903_v35 = vld [vmem:[%s7613_s8] sm:$0xff]  ;;  %v5676_v42 = vpop.permute.xlu1 %1275  ;;  %s7618_s8 = sld [smem:[#allocation12_spill]]  ;;  %v2320_v18 = vadd.f32 %v2318_v25, %v2314_v20  ;;  %v2484_v25 = vmul.f32 %v2483_v21, %v5016_v48 }
  0xeb   : > { %4274 = vmatmul.mubr.msk.f32.vlgmr.msra.gmra.mrb[2].mxu0 %vm910_vm1, %v903_v35  ;;  %v2348_v35 = vmul.f32 %v2347_v27, %v5016_v48 }
  0xec   : > { %3256 = vmatprep.mubr.f32.mxu0 %v7536_v53  ;;  %2152 = vrot.lane.b32.xlu1 %v2150_v15, %s7615_s2  ;;  %v5696_v29 = vpop.permute.xlu0 %907  ;;  %s4762_s2 = smov 96   ;;  %v2352_v15 = vmul.f32 %v2351_v28, %v5011_v44  ;;  %v2382_v28 = vmul.f32 %v2381_v4, %v5016_v48 }
  0xed   : > { %2460 = vrot.lane.b32.xlu0 %v2457_v19, %s7532_s12  ;;  %s5725_s12 = sld [smem:[#allocation3 + $0xa9]]  ;;  %v2559_v19 = vadd.f32 %v2557_v32, %v2553_v31  ;;  %v2488_v31 = vmul.f32 %v2487_v22, %v5011_v44 }
  0xee   : > { %v5698_v58 = vpop.permute.xlu1 %1277  ;;  %v2354_v27 = vadd.f32 %v2352_v15, %v2348_v35 }
  0xf0   : > { %2186 = vrot.lane.b32.xlu1 %v2184_v26, %s7616_s9  ;;  %v5718_v2 = vpop.permute.xlu0 %1411  ;;  %s5723_s9 = sld [smem:[#allocation3 + $0x29]]  ;;  %v4668_v13 = vld [vmem:[%s7618_s8 + $0x8] sm:$0xff]  ;;  %v2386_v26 = vmul.f32 %v2385_v40, %v5011_v44  ;;  %v2416_v40 = vmul.f32 %v2415_v12, %v5016_v48 }
  0xf1   : > { %2494 = vrot.lane.b32.xlu0 %v2491_v36, %s4762_s2  ;;  %v5738_v60 = vmul.f32 %v4668_v13, %v4667_v11  ;;  %v2621_v11 = vmul.f32 %v2619_v56, %v5023_v50  ;;  %v2625_v13 = vmul.f32 %v2623_v37, %v5013_v46 }
  0xf2   : > { %v5720_v45 = vpop.permute.xlu1 %1309  ;;  %v2388_v4 = vadd.f32 %v2386_v26, %v2382_v28  ;;  %v2422_v12 = vadd.f32 %v2420_v39, %v2416_v40  ;;  %v7538_v39 = vstv %s5840_s23 }
  0xf3   : > { %v2589_v17 = vstv %s5725_s12  ;;  %v2627_v35 = vadd.f32 %v2625_v13, %v2621_v11  ;;  %s7540_s12 = smov 80  }
  0xf4   : > { %2220 = vrot.lane.b32.xlu1 %v2218_v52, %s7619_s17  ;;  %v5734_v14 = vpop.permute.xlu0 %1445  ;;  %v2591_v38 = vmul.f32 %v2589_v17, %v5013_v46 }
  0xf5   : > { %2528 = vrot.lane.b32.xlu0 %v2525_v57, %s7533_s10  ;;  %s5801_s10 = sld [smem:[#allocation3 + $0x2b]]  ;;  %v1210_v57 = vlaneseq }
  0xf6   : > { %v5740_v63 = vpop.permute.xlu1 %1311  ;;  %v2585_v30 = vstv %s5723_s9  ;;  %s6023_s9 = sld [smem:[#allocation3 + $0x30]] }
  0xf7   : > { %v2587_v33 = vmul.f32 %v2585_v30, %v5023_v50  ;;  %v5865_v21 = vand.u32 127, %v1210_v57 }
  0xf8   : > { %2254 = vrot.lane.b32.xlu1 %v2252_v62, %s7620_s16  ;;  %v5752_v3 = vpop.permute.xlu0 %1479  ;;  %v2454_v62 = vmul.f32 %v2453_v24, %v5011_v44 }
  0xf9   : > { %2909 = vrot.lane.b32.xlu0 %v5738_v60, %s7604_s27  ;;  %v2593_v36 = vadd.f32 %v2591_v38, %v2587_v33  ;;  %v2490_v33 = vadd.f32 %v2488_v31, %v2484_v25  ;;  %v2518_v38 = vmul.f32 %v2517_v34, %v5016_v48  ;;  %vm1212_vm2 = vcmp.lt.s32.totalorder %v5865_v21, 51 }
  0xfa   : > { %v5754_v9 = vpop.permute.xlu1 %1343  ;;  %v2456_v20 = vadd.f32 %v2454_v62, %v2450_v51  ;;  %vm1245_vm3 = vcmp.lt.s32.totalorder %v5865_v21, 50  ;;  %v1214_v25 = vsel %vm1212_vm2, %v5607_v1, %v5585_v49  ;;  %vm1279_vm4 = vcmp.lt.s32.totalorder %v5865_v21, 49 }
  0xfb   : > { %v2653_v23 = vstv %s5801_s10  ;;  %vm1313_vm5 = vcmp.lt.s32.totalorder %v5865_v21, 48  ;;  %vm1347_vm6 = vcmp.lt.s32.totalorder %v5865_v21, 47  ;;  %vm1381_vm7 = vcmp.lt.s32.totalorder %v5865_v21, 46  ;;  %s7636_s10 = sld [smem:[#allocation26_spill]] }
  0xfc   : > { %2288 = vrot.lane.b32.xlu1 %v2286_v8, %s7621_s26  ;;  %v5773_v16 = vpop.permute.xlu0 %1513  ;;  %v1218_v8 = vshrl.u32 %v1210_v57, 7  ;;  %v2655_v15 = vmul.f32 %v2653_v23, %v5023_v50  ;;  %vm1415_vm8 = vcmp.lt.s32.totalorder %v5865_v21, 45  ;;  %vm1449_vm9 = vcmp.lt.s32.totalorder %v5865_v21, 35 }
  0xfd   : > { %2919 = vrot.lane.b32.xlu0 %v5738_v60, %s7605_s30  ;;  %vm1483_vm10 = vcmp.lt.s32.totalorder %v5865_v21, 34  ;;  %vm1517_vm11 = vcmp.lt.s32.totalorder %v5865_v21, 33  ;;  %vm1551_vm12 = vcmp.lt.s32.totalorder %v5865_v21, 32  ;;  %vm1585_vm13 = vcmp.lt.s32.totalorder %v5865_v21, 31 }
  0xfe   : > { %v5775_v41 = vpop.permute.xlu1 %1345  ;;  %v5869_v22 = vsub.s32 0, %v1218_v8  ;;  %v5881_v26 = vsub.s32 1, %v1218_v8  ;;  %vm1619_vm14 = vcmp.lt.s32.totalorder %v5865_v21, 30  ;;  %vm1653_vm15 = vcmp.lt.s32.totalorder %v5865_v21, 29 }
  0xff   : > { %vm1687_vm0 = vcmp.lt.s32.totalorder %v5865_v21, 19 }
 0x100   : > { %2322 = vrot.lane.b32.xlu1 %v2320_v18, %s7622_s24  ;;  %v5796_v54 = vpop.permute.xlu0 %1547  ;;  %s5803_s24 = sld [smem:[#allocation3 + $0xab]] }
 0x101   : > { %2562 = vrot.lane.b32.xlu0 %v2559_v19, %s7535_s7  ;;  %s7642_s7 = sld [smem:[#allocation36_spill]] }
 0x102   : > { %v5798_v55 = vpop.permute.xlu1 %1377 }
 0x104   : > { %2356 = vrot.lane.b32.xlu1 %v2354_v27, %s7623_s3  ;;  %v5812_v5 = vpop.permute.xlu0 %1581  ;;  %v2522_v27 = vmul.f32 %v2521_v43, %v5011_v44  ;;  %s7626_s3 = sld [smem:[#allocation23_spill]]  ;;  %v7539_v43 = vstv %s5838_s22 }
 0x105   : > { %2596 = vrot.lane.b32.xlu0 %v2593_v36, %s7534_s25  ;;  %v2689_v8 = vmul.f32 %v7539_v43, %v5023_v50  ;;  %s7627_s25 = smov 95  }
 0x106   : > { %v5814_v52 = vpop.permute.xlu1 %1379  ;;  %v2657_v24 = vstv %s5803_s24  ;;  %s4771_s24 = smov 78  }
 0x107   : > { %v2659_v19 = vmul.f32 %v2657_v24, %v5013_v46 }
 0x108   : > { %2390 = vrot.lane.b32.xlu1 %v2388_v4, %s4759_s13  ;;  %v5826_v0 = vpop.permute.xlu0 %1615  ;;  %s5867_s13 = sld [smem:[#allocation3 + $0xad]] }
 0x109   : > { %2941 = vrot.lane.b32.xlu0 %v5738_v60, %s7606_s15  ;;  %v2661_v34 = vadd.f32 %v2659_v19, %v2655_v15  ;;  %v2721_v19 = vstv %s5863_s21  ;;  %s6381_s21 = sld [smem:[#allocation3 + $0x98]] }
 0x10a   : > { %v5828_v47 = vpop.permute.xlu1 %1413  ;;  %v1215_v28 = vld [vmem:[%s7626_s3] ss:$8 sm:$0x3]  ;;  %v4280_v4 = vld [vmem:[%s7626_s3 + $0x1] ss:$8 sm:$0x3] }
 0x10b   : > { %v1220_v57 = vrot.slane %v1215_v28, %v5869_v22  ;;  %v1224_v51 = vrot.slane %v1215_v28, %v5881_v26  ;;  %v1254_v62 = vrot.slane %v4280_v4, %v5869_v22  ;;  %v4283_v11 = vld [vmem:[%s7626_s3 + $0x2] ss:$8 sm:$0x3]  ;;  %v1258_v31 = vrot.slane %v4280_v4, %v5881_v26 }
 0x10c   : > { %2424 = vrot.lane.b32.xlu1 %v2422_v12, %s4760_s11  ;;  %v5851_v32 = vpop.permute.xlu0 %1649  ;;  %v2524_v12 = vadd.f32 %v2522_v27, %v2518_v38  ;;  %v1246_v38 = vsel %vm1245_vm3, %v5629_v59, %v5653_v6  ;;  %v4669_v28 = vld [vmem:[%s7617_s4] sm:$0xff]  ;;  %s5983_s11 = sld [smem:[#allocation3 + $0x2f]] }
 0x10d   : > { %2963 = vrot.lane.b32.xlu0 %v5738_v60, %s7624_s18  ;;  %v4670_v4 = vld [vmem:[%s7618_s8] sm:$0xff] }
 0x10e   : > { %v5853_v18 = vpop.permute.xlu1 %1447  ;;  %v2725_v27 = vstv %s5867_s13  ;;  %v5935_v53 = vmul.f32 %v4670_v4, %v4669_v28  ;;  %v1262_v4 = vmul.f32 %v1258_v31, %v1246_v38 }
 0x110   : > { %2458 = vrot.lane.b32.xlu1 %v2456_v20, %s7625_s29  ;;  %v5883_v36 = vpop.permute.xlu0 %1683  ;;  %v2693_v20 = vmul.f32 %v7538_v39, %v5013_v46  ;;  %v1292_v39 = vrot.slane %v4283_v11, %v5881_v26  ;;  %s5945_s29 = sld [smem:[#allocation3 + $0x2e]] }
 0x111   : > { %2630 = vrot.lane.b32.xlu0 %v2627_v35, %s4766_s19  ;;  %v1247_v35 = vsel %vm1245_vm3, %v5653_v6, %v5629_v59  ;;  %v2723_v6 = vmul.f32 %v2721_v19, %v5023_v50  ;;  %vm1755_vm3 = vcmp.lt.s32.totalorder %v5865_v21, 17 }
 0x112   : > { %v5888_v40 = vpop.permute.xlu1 %1481  ;;  %v2695_v59 = vadd.f32 %v2693_v20, %v2689_v8  ;;  %v2552_v8 = vmul.f32 %v2551_v7, %v5016_v48  ;;  %v2556_v20 = vmul.f32 %v2555_v61, %v5011_v44  ;;  %v1315_v61 = vsel %vm1313_vm5, %v5740_v63, %v5720_v45 }
 0x114   : > { %2492 = vrot.lane.b32.xlu1 %v2490_v33, %s4762_s2  ;;  %v5902_v13 = vpop.permute.xlu0 %1717  ;;  %s4767_s2 = smov 82   ;;  %v1213_v33 = vsel %vm1212_vm2, %v5585_v49, %v5607_v1  ;;  %v1227_v49 = vmul.f32 %v1220_v57, %v1214_v25  ;;  %v1261_v1 = vmul.f32 %v1254_v62, %v1247_v35  ;;  %v1281_v57 = vsel %vm1279_vm4, %v5698_v58, %v5676_v42 }
 0x115   : > { %2664 = vrot.lane.b32.xlu0 %v2661_v34, %s4767_s2  ;;  %v1288_v34 = vrot.slane %v4283_v11, %v5869_v22  ;;  %v1228_v28 = vmul.f32 %v1224_v51, %v1213_v33  ;;  %v2727_v11 = vmul.f32 %v2725_v27, %v5013_v46  ;;  %v1280_v51 = vsel %vm1279_vm4, %v5676_v42, %v5698_v58  ;;  %v4289_v42 = vld [vmem:[%s7626_s3 + $0x4] ss:$8 sm:$0x3] }
 0x116   : > { %v5919_v15 = vpop.permute.xlu1 %1515  ;;  %v1263_v25 = vadd.f32 %v1261_v1, %v1227_v49  ;;  %v1296_v38 = vmul.f32 %v1292_v39, %v1280_v51  ;;  %v1314_v39 = vsel %vm1313_vm5, %v5720_v45, %v5740_v63  ;;  %v1356_v1 = vrot.slane %v4289_v42, %v5869_v22  ;;  %v4292_v45 = vld [vmem:[%s7626_s3 + $0x5] ss:$8 sm:$0x3] }
 0x117   : > { %v1295_v31 = vmul.f32 %v1288_v34, %v1281_v57  ;;  %v1264_v7 = vadd.f32 %v1262_v4, %v1228_v28  ;;  %v2729_v49 = vadd.f32 %v2727_v11, %v2723_v6  ;;  %v2558_v28 = vadd.f32 %v2556_v20, %v2552_v8 }
 0x118   : > { %2526 = vrot.lane.b32.xlu1 %v2524_v12, %s7627_s25  ;;  %v5940_v43 = vpop.permute.xlu0 %1751  ;;  %v4286_v12 = vld [vmem:[%s7626_s3 + $0x3] ss:$8 sm:$0x3]  ;;  %v2586_v4 = vmul.f32 %v2585_v30, %v5016_v48  ;;  %v7543_v11 = vstv %s5947_s5  ;;  %v1360_v20 = vrot.slane %v4289_v42, %v5881_v26  ;;  %v1349_v30 = vsel %vm1347_vm6, %v5775_v41, %v5754_v9  ;;  %s6030_s25 = sld [smem:[#allocation3 + $0xb0]] }
 0x119   : > { %3001 = vrot.lane.b32.xlu0 %v5738_v60, %s7611_s28  ;;  %v1322_v35 = vrot.slane %v4286_v12, %v5869_v22  ;;  %v1326_v33 = vrot.slane %v4286_v12, %v5881_v26  ;;  %v1297_v6 = vadd.f32 %v1295_v31, %v1263_v25  ;;  %v2755_v12 = vstv %s5945_s29  ;;  %s7647_s29 = sld [smem:[#allocation35_spill]] }
 0x11a   : > { %v5956_v62 = vpop.permute.xlu1 %1549  ;;  %v1298_v51 = vadd.f32 %v1296_v38, %v1264_v7  ;;  %v1348_v25 = vsel %vm1347_vm6, %v5754_v9, %v5775_v41  ;;  %v1390_v31 = vrot.slane %v4292_v45, %v5869_v22  ;;  %v2761_v42 = vmul.f32 %v7543_v11, %v5013_v46  ;;  %v4295_v41 = vld [vmem:[%s7626_s3 + $0x6] ss:$8 sm:$0x3] }
 0x11b   : > { %v1329_v57 = vmul.f32 %v1322_v35, %v1315_v61  ;;  %v1330_v8 = vmul.f32 %v1326_v33, %v1314_v39  ;;  %v2757_v33 = vmul.f32 %v2755_v12, %v5023_v50  ;;  %v1363_v38 = vmul.f32 %v1356_v1, %v1349_v30  ;;  %v4298_v30 = vld [vmem:[%s7626_s3 + $0x7] ss:$8 sm:$0x3] }
 0x11c   : > { %2907 = vrot.lane.b32.xlu1 %v5935_v53, %s7604_s27  ;;  %v5981_v58 = vpop.permute.xlu0 %1785  ;;  %v1394_v9 = vrot.slane %v4292_v45, %v5881_v26  ;;  %v7541_v1 = vstv %s5992_s14  ;;  %v1428_v45 = vrot.slane %v4295_v41, %v5881_v26  ;;  %vm1721_vm2 = vcmp.lt.s32.totalorder %v5865_v21, 18 }
 0x11d   : > { %2698 = vrot.lane.b32.xlu0 %v2695_v59, %s4768_s1  ;;  %v2590_v59 = vmul.f32 %v2589_v17, %v5011_v44  ;;  %v1331_v7 = vadd.f32 %v1329_v57, %v1297_v6  ;;  %v1332_v39 = vadd.f32 %v1330_v8, %v1298_v51  ;;  %v1382_v6 = vsel %vm1381_vm7, %v5798_v55, %v5814_v52 }
 0x11e   : > { %v5989_v34 = vpop.permute.xlu1 %1583  ;;  %v1424_v57 = vrot.slane %v4295_v41, %v5869_v22  ;;  %v2763_v51 = vadd.f32 %v2761_v42, %v2757_v33  ;;  %v2823_v42 = vstv %s6023_s9  ;;  %vm1789_vm4 = vcmp.lt.s32.totalorder %v5865_v21, 16 }
 0x11f   : > { %v2592_v35 = vadd.f32 %v2590_v59, %v2586_v4  ;;  %v1383_v4 = vsel %vm1381_vm7, %v5814_v52, %v5798_v55  ;;  %v1365_v8 = vadd.f32 %v1363_v38, %v1331_v7  ;;  %v2795_v52 = vmul.f32 %v7541_v1, %v5013_v46 }
 0x120   : > { %2917 = vrot.lane.b32.xlu1 %v5935_v53, %s7605_s30  ;;  %v6011_v63 = vpop.permute.xlu0 %1819  ;;  %v1416_v7 = vsel %vm1415_vm8, %v5718_v2, %v5828_v47  ;;  %v2827_v38 = vstv %s6030_s25  ;;  %vm1823_vm5 = vcmp.lt.s32.totalorder %v5865_v21, 15  ;;  %vm1857_vm6 = vcmp.lt.s32.totalorder %v5865_v21, 14  ;;  %s7639_s25 = sld [smem:[#allocation33_spill]] }
 0x121   : > { %2732 = vrot.lane.b32.xlu0 %v2729_v49, %s7540_s12  ;;  %v7542_v49 = vstv %s5983_s11  ;;  %s7629_s12 = smov 93   ;;  %v1432_v11 = vmul.f32 %v1428_v45, %v1416_v7  ;;  %v1450_v45 = vsel %vm1449_vm9, %v5734_v14, %v5853_v18  ;;  %vm1891_vm7 = vcmp.lt.s32.totalorder %v5865_v21, 13 }
 0x122   : > { %v6020_v17 = vpop.permute.xlu1 %1617  ;;  %v2791_v55 = vmul.f32 %v7542_v49, %v5023_v50 }
 0x124   : > { %2560 = vrot.lane.b32.xlu1 %v2558_v28, %s7628_s20  ;;  %v6044_v61 = vpop.permute.xlu0 %1853  ;;  %v1364_v28 = vmul.f32 %v1360_v20, %v1348_v25  ;;  %v1397_v20 = vmul.f32 %v1390_v31, %v1383_v4  ;;  %v1417_v31 = vsel %vm1415_vm8, %v5828_v47, %v5718_v2  ;;  %v2624_v4 = vmul.f32 %v2623_v37, %v5011_v44  ;;  %v4301_v37 = vld [vmem:[%s7626_s3 + $0x10] ss:$8 sm:$0x3] }
 0x125   : > { %3023 = vrot.lane.b32.xlu0 %v5738_v60, %s7619_s17  ;;  %v1431_v1 = vmul.f32 %v1424_v57, %v1417_v31  ;;  %v2797_v47 = vadd.f32 %v2795_v52, %v2791_v55  ;;  %v2654_v55 = vmul.f32 %v2653_v23, %v5016_v48  ;;  %v1496_v31 = vrot.slane %v4301_v37, %v5881_v26  ;;  %v4304_v23 = vld [vmem:[%s7626_s3 + $0x11] ss:$8 sm:$0x3] }
 0x126   : > { %v6051_v59 = vpop.permute.xlu1 %1651  ;;  %v1366_v41 = vadd.f32 %v1364_v28, %v1332_v39  ;;  %v1462_v39 = vrot.slane %v4298_v30, %v5881_v26  ;;  %v2620_v28 = vmul.f32 %v2619_v56, %v5016_v48  ;;  %v1451_v56 = vsel %vm1449_vm9, %v5853_v18, %v5734_v14 }
 0x127   : > { %vm1925_vm8 = vcmp.lt.s32.totalorder %v5865_v21, 3  ;;  %vm1959_vm9 = vcmp.lt.s32.totalorder %v5865_v21, 2 }
 0x128   : > { %2594 = vrot.lane.b32.xlu1 %v2592_v35, %s7629_s12  ;;  %v6067_v25 = vpop.permute.xlu0 %1887  ;;  %v1398_v35 = vmul.f32 %v1394_v9, %v1382_v6  ;;  %v1458_v9 = vrot.slane %v4298_v30, %v5869_v22  ;;  %v1399_v6 = vadd.f32 %v1397_v20, %v1365_v8  ;;  %v2825_v30 = vmul.f32 %v2823_v42, %v5023_v50  ;;  %s4770_s12 = smov 79  }
 0x129   : > { %3045 = vrot.lane.b32.xlu0 %v5738_v60, %s7620_s16  ;;  %v2829_v8 = vmul.f32 %v2827_v38, %v5013_v46  ;;  %v2626_v20 = vadd.f32 %v2624_v4, %v2620_v28  ;;  %v1466_v18 = vmul.f32 %v1462_v39, %v1450_v45  ;;  %v1485_v28 = vsel %vm1483_vm10, %v5888_v40, %v5752_v3 }
 0x12a   : > { %v6079_v33 = vpop.permute.xlu1 %1685  ;;  %v1400_v49 = vadd.f32 %v1398_v35, %v1366_v41  ;;  %v1433_v52 = vadd.f32 %v1431_v1, %v1399_v6  ;;  %v1465_v41 = vmul.f32 %v1458_v9, %v1451_v56  ;;  %v1492_v35 = vrot.slane %v4301_v37, %v5869_v22 }
 0x12b   : > { %v2831_v1 = vadd.f32 %v2829_v8, %v2825_v30  ;;  %v1526_v4 = vrot.slane %v4304_v23, %v5869_v22  ;;  %v1530_v56 = vrot.slane %v4304_v23, %v5881_v26  ;;  %v1518_v8 = vsel %vm1517_vm11, %v5773_v16, %v5919_v15 }
 0x12c   : > { %2939 = vrot.lane.b32.xlu1 %v5935_v53, %s7606_s15  ;;  %v6100_v2 = vpop.permute.xlu0 %1921  ;;  %v1434_v14 = vadd.f32 %v1432_v11, %v1400_v49  ;;  %v1484_v11 = vsel %vm1483_vm10, %v5752_v3, %v5888_v40  ;;  %v1467_v9 = vadd.f32 %v1465_v41, %v1433_v52  ;;  %v1499_v39 = vmul.f32 %v1492_v35, %v1485_v28  ;;  %v4307_v40 = vld [vmem:[%s7626_s3 + $0x12] ss:$8 sm:$0x3]  ;;  %v4310_v28 = vld [vmem:[%s7626_s3 + $0x13] ss:$8 sm:$0x3] }
 0x12d   : > { %2766 = vrot.lane.b32.xlu0 %v2763_v51, %s4770_s12  ;;  %v2658_v51 = vmul.f32 %v2657_v24, %v5011_v44  ;;  %v1500_v30 = vmul.f32 %v1496_v31, %v1484_v11  ;;  %v1519_v3 = vsel %vm1517_vm11, %v5919_v15, %v5773_v16  ;;  %v7630_v45 = vstv %s5838_s22 }
 0x12e   : > { %v6112_v57 = vpop.permute.xlu1 %1719  ;;  %v1501_v52 = vadd.f32 %v1499_v39, %v1467_v9  ;;  %v1533_v41 = vmul.f32 %v1526_v4, %v1519_v3  ;;  %v1560_v35 = vrot.slane %v4307_v40, %v5869_v22  ;;  %v1534_v16 = vmul.f32 %v1530_v56, %v1518_v8 }
 0x12f   : > { %v2660_v49 = vadd.f32 %v2658_v51, %v2654_v55  ;;  %v7631_v55 = vstv %s5840_s23  ;;  %v1564_v15 = vrot.slane %v4307_v40, %v5881_v26  ;;  %v2726_v9 = vmul.f32 %v2725_v27, %v5011_v44  ;;  %s2877_s23 = sld [smem:[#allocation5]] }
 0x130   : > { %2961 = vrot.lane.b32.xlu1 %v5935_v53, %s7624_s18  ;;  %v6133_v7 = vpop.permute.xlu0 %1955  ;;  %v2692_v51 = vmul.f32 %v7631_v55, %v5011_v44  ;;  %v1535_v39 = vadd.f32 %v1533_v41, %v1501_v52  ;;  %v1587_v3 = vsel %vm1585_vm13, %v5989_v34, %v5812_v5  ;;  %v1586_v27 = vsel %vm1585_vm13, %v5812_v5, %v5989_v34  ;;  %v4316_v5 = vld [vmem:[%s7626_s3 + $0x15] ss:$8 sm:$0x3] }
 0x131   : > { %2800 = vrot.lane.b32.xlu0 %v2797_v47, %s4771_s24  ;;  %v1468_v47 = vadd.f32 %v1466_v18, %v1434_v14  ;;  %v1553_v18 = vsel %vm1551_vm12, %v5956_v62, %v5796_v54  ;;  %vm1993_vm10 = vcmp.lt.s32.totalorder %v5865_v21, 1  ;;  %vm2054_vm11 = vcmp.lt.s32.totalorder %v5865_v21, 127 }
 0x132   : > { %v6142_v24 = vpop.permute.xlu1 %1753  ;;  %v1567_v4 = vmul.f32 %v1560_v35, %v1553_v18  ;;  %vm2122_vm13 = vcmp.lt.s32.totalorder %v5865_v21, 125 }
 0x133   : > { %v1502_v14 = vadd.f32 %v1500_v30, %v1468_v47  ;;  %v1594_v47 = vrot.slane %v4310_v28, %v5869_v22 }
 0x134   : > { %2628 = vrot.lane.b32.xlu1 %v2626_v20, %s4766_s19  ;;  %v6152_v6 = vpop.permute.xlu0 %1989  ;;  %s4772_s19 = smov 77   ;;  %v2688_v20 = vmul.f32 %v7630_v45, %v5016_v48  ;;  %v1569_v45 = vadd.f32 %v1567_v4, %v1535_v39  ;;  %v1655_v39 = vsel %vm1653_vm15, %v6051_v59, %v5851_v32  ;;  %v1654_v4 = vsel %vm1653_vm15, %v5851_v32, %v6051_v59 }
 0x135   : > { %2834 = vrot.lane.b32.xlu0 %v2831_v1, %s4772_s19  ;;  %v1552_v1 = vsel %vm1551_vm12, %v5796_v54, %v5956_v62  ;;  %v1536_v56 = vadd.f32 %v1534_v16, %v1502_v14  ;;  %v1598_v62 = vrot.slane %v4310_v28, %v5881_v26  ;;  %v1621_v14 = vsel %vm1619_vm14, %v6020_v17, %v5826_v0 }
 0x136   : > { %v6160_v37 = vpop.permute.xlu1 %1787  ;;  %v2694_v11 = vadd.f32 %v2692_v51, %v2688_v20  ;;  %v1568_v54 = vmul.f32 %v1564_v15, %v1552_v1  ;;  %v1601_v20 = vmul.f32 %v1594_v47, %v1587_v3  ;;  %v1620_v16 = vsel %vm1619_vm14, %v5826_v0, %v6020_v17  ;;  %v4319_v0 = vld [vmem:[%s7626_s3 + $0x16] ss:$8 sm:$0x3] }
 0x137   : > { %v1602_v41 = vmul.f32 %v1598_v62, %v1586_v27  ;;  %v1662_v28 = vrot.slane %v4316_v5, %v5869_v22  ;;  %v2756_v47 = vmul.f32 %v2755_v12, %v5016_v48  ;;  %v4322_v12 = vld [vmem:[%s7626_s3 + $0x17] ss:$8 sm:$0x3]  ;;  %vm2088_vm12 = vcmp.lt.s32.totalorder %v5865_v21, 126 }
 0x138   : > { %2662 = vrot.lane.b32.xlu1 %v2660_v49, %s4767_s2  ;;  %v6174_v31 = vpop.permute.xlu0 %993  ;;  %v2722_v49 = vmul.f32 %v2721_v19, %v5016_v48  ;;  %v4313_v19 = vld [vmem:[%s7626_s3 + $0x14] ss:$8 sm:$0x3]  ;;  %v1570_v52 = vadd.f32 %v1568_v54, %v1536_v56  ;;  %v1603_v15 = vadd.f32 %v1601_v20, %v1569_v45  ;;  %v7633_v56 = vstv %s5947_s5  ;;  %s6371_s2 = sld [smem:[#allocation3 + $0x18]] }
 0x139   : > { %3067 = vrot.lane.b32.xlu0 %v5738_v60, %s7621_s26  ;;  %v1628_v55 = vrot.slane %v4313_v19, %v5869_v22  ;;  %v1632_v35 = vrot.slane %v4313_v19, %v5881_v26  ;;  %v2760_v54 = vmul.f32 %v7633_v56, %v5011_v44  ;;  %v1669_v3 = vmul.f32 %v1662_v28, %v1655_v39 }
 0x13a   : > { %v6182_v23 = vpop.permute.xlu1 %1821  ;;  %v2728_v8 = vadd.f32 %v2726_v9, %v2722_v49  ;;  %v1666_v9 = vrot.slane %v4316_v5, %v5881_v26  ;;  %v1696_v19 = vrot.slane %v4319_v0, %v5869_v22  ;;  %v1689_v45 = vsel %vm1687_vm0, %v6079_v33, %v5883_v36 }
 0x13b   : > { %v1635_v18 = vmul.f32 %v1628_v55, %v1621_v14  ;;  %v1636_v49 = vmul.f32 %v1632_v35, %v1620_v16  ;;  %v1688_v55 = vsel %vm1687_vm0, %v5883_v36, %v6079_v33  ;;  %v7635_v14 = vstv %s5992_s14  ;;  %s7643_s14 = sld [smem:[#allocation37_spill]] }
 0x13c   : > { %2999 = vrot.lane.b32.xlu1 %v5935_v53, %s7611_s28  ;;  %v6198_v30 = vpop.permute.xlu0 %2052  ;;  %v1670_v59 = vmul.f32 %v1666_v9, %v1654_v4  ;;  %v2794_v5 = vmul.f32 %v7635_v14, %v5011_v44  ;;  %v4325_v9 = vld [vmem:[%s7626_s3 + $0x20] ss:$8 sm:$0x3]  ;;  %v2828_v56 = vmul.f32 %v2827_v38, %v5011_v44  ;;  %v4328_v38 = vld [vmem:[%s7626_s3 + $0x21] ss:$8 sm:$0x3] }
 0x13d   : > { %v1637_v62 = vadd.f32 %v1635_v18, %v1603_v15  ;;  %v1703_v15 = vmul.f32 %v1696_v19, %v1689_v45  ;;  %v1730_v18 = vrot.slane %v4322_v12, %v5869_v22  ;;  %vm2156_vm14 = vcmp.lt.s32.totalorder %v5865_v21, 115 }
 0x13e   : > { %v6206_v40 = vpop.permute.xlu1 %1855  ;;  %vm2190_vm15 = vcmp.lt.s32.totalorder %v5865_v21, 114  ;;  %vm2224_vm0 = vcmp.lt.s32.totalorder %v5865_v21, 113 }
 0x13f   : > { %v1671_v16 = vadd.f32 %v1669_v3, %v1637_v62  ;;  %v6293_v3 = vrot.slane %v4325_v9, %v5869_v22 }
 0x140   : > { %2696 = vrot.lane.b32.xlu1 %v2694_v11, %s4768_s1  ;;  %v6213_v51 = vpop.permute.xlu0 %2086  ;;  %s7632_s1 = smov 80   ;;  %v1604_v11 = vadd.f32 %v1602_v41, %v1570_v52  ;;  %v2762_v52 = vadd.f32 %v2760_v54, %v2756_v47  ;;  %v7634_v41 = vstv %s5983_s11  ;;  %v2824_v47 = vmul.f32 %v2823_v42, %v5016_v48  ;;  %s7638_s11 = sld [smem:[#allocation31_spill]] }
 0x141   : > { %v2790_v35 = vmul.f32 %v7634_v41, %v5016_v48  ;;  %v1705_v54 = vadd.f32 %v1703_v15, %v1671_v16  ;;  %v1757_v42 = vsel %vm1755_vm3, %v6142_v24, %v5940_v43  ;;  %v1790_v15 = vsel %vm1789_vm4, %v5981_v58, %v6160_v37 }
 0x142   : > { %v6221_v34 = vpop.permute.xlu1 %1889  ;;  %v1638_v32 = vadd.f32 %v1636_v49, %v1604_v11  ;;  %v1734_v11 = vrot.slane %v4322_v12, %v5881_v26  ;;  %v1723_v49 = vsel %vm1721_vm2, %v6112_v57, %v5902_v13  ;;  %v2830_v45 = vadd.f32 %v2828_v56, %v2824_v47 }
 0x143   : > { %v2796_v4 = vadd.f32 %v2794_v5, %v2790_v35  ;;  %v1737_v62 = vmul.f32 %v1730_v18, %v1723_v49  ;;  %v1802_v5 = vrot.slane %v4328_v38, %v5881_v26  ;;  %v1824_v47 = vsel %vm1823_vm5, %v6011_v63, %v6182_v23 }
 0x144   : > { %2730 = vrot.lane.b32.xlu1 %v2728_v8, %s7632_s1  ;;  %v6228_v1 = vpop.permute.xlu0 %2120  ;;  %v1700_v8 = vrot.slane %v4319_v0, %v5881_v26  ;;  %v1672_v36 = vadd.f32 %v1670_v59, %v1638_v32  ;;  %v1722_v0 = vsel %vm1721_vm2, %v5902_v13, %v6112_v57  ;;  %v6298_v57 = vrot.slane %v4325_v9, %v5881_v26  ;;  %s7646_s1 = sld [smem:[#allocation32_spill]] }
 0x145   : > { %v1738_v13 = vmul.f32 %v1734_v11, %v1722_v0  ;;  %v1739_v12 = vadd.f32 %v1737_v62, %v1705_v54  ;;  %v1806_v9 = vmul.f32 %v1802_v5, %v1790_v15  ;;  %v1892_v15 = vsel %vm1891_vm7, %v6067_v25, %v6221_v34 }
 0x146   : > { %v6236_v17 = vpop.permute.xlu1 %1923  ;;  %v1704_v33 = vmul.f32 %v1700_v8, %v1688_v55  ;;  %v1756_v8 = vsel %vm1755_vm3, %v5940_v43, %v6142_v24  ;;  %v1771_v55 = vmul.f32 %v6293_v3, %v1757_v42  ;;  %v1791_v43 = vsel %vm1789_vm4, %v6160_v37, %v5981_v58  ;;  %v4331_v24 = vld [vmem:[%s7626_s3 + $0x22] ss:$8 sm:$0x3]  ;;  %v4334_v58 = vld [vmem:[%s7626_s3 + $0x23] ss:$8 sm:$0x3] }
 0x147   : > { %v1772_v14 = vmul.f32 %v6298_v57, %v1756_v8  ;;  %v1836_v0 = vrot.slane %v4331_v24, %v5881_v26  ;;  %v1866_v62 = vrot.slane %v4334_v58, %v5869_v22  ;;  %v1859_v8 = vsel %vm1857_vm6, %v6206_v40, %v6044_v61 }
 0x148   : > { %3021 = vrot.lane.b32.xlu1 %v5935_v53, %s7619_s17  ;;  %v6250_v27 = vpop.permute.xlu0 %2154  ;;  %v1706_v32 = vadd.f32 %v1704_v33, %v1672_v36  ;;  %v1773_v18 = vadd.f32 %v1771_v55, %v1739_v12  ;;  %v1832_v33 = vrot.slane %v4331_v24, %v5869_v22  ;;  %v1893_v24 = vsel %vm1891_vm7, %v6221_v34, %v6067_v25 }
 0x149   : > { %v1840_v42 = vmul.f32 %v1836_v0, %v1824_v47  ;;  %v1873_v55 = vmul.f32 %v1866_v62, %v1859_v8  ;;  %v1927_v25 = vsel %vm1925_vm8, %v6236_v17, %v6100_v2  ;;  %v1926_v47 = vsel %vm1925_vm8, %v6100_v2, %v6236_v17 }
 0x14a   : > { %v6258_v20 = vpop.permute.xlu1 %1957  ;;  %v1740_v35 = vadd.f32 %v1738_v13, %v1706_v32  ;;  %v2018_v17 = vstv %s6381_s21  ;;  %vm2258_vm2 = vcmp.lt.s32.totalorder %v5865_v21, 112  ;;  %vm2326_vm7 = vcmp.lt.s32.totalorder %v5865_v21, 110 }
 0x14b   : > { %v1961_v2 = vsel %vm1959_vm9, %v6258_v20, %v6133_v7  ;;  %vm2360_vm8 = vcmp.lt.s32.totalorder %v5865_v21, 109 }
 0x14c   : > { %3043 = vrot.lane.b32.xlu1 %v5935_v53, %s7620_s16  ;;  %v6272_v28 = vpop.permute.xlu0 %2188  ;;  %v1774_v49 = vadd.f32 %v1772_v14, %v1740_v35 }
 0x14e   : > { %v6280_v39 = vpop.permute.xlu1 %1991  ;;  %v1808_v13 = vadd.f32 %v1806_v9, %v1774_v49  ;;  %v4343_v49 = vld [vmem:[%s7626_s3 + $0x26] ss:$8 sm:$0x3] }
 0x150   : > { %2764 = vrot.lane.b32.xlu1 %v2762_v52, %s4770_s12  ;;  %v6295_v19 = vpop.permute.xlu0 %2222  ;;  %v1798_v52 = vrot.slane %v4328_v38, %v5869_v22  ;;  %v1870_v38 = vrot.slane %v4334_v58, %v5881_v26  ;;  %v1842_v14 = vadd.f32 %v1840_v42, %v1808_v13  ;;  %v1972_v13 = vrot.slane %v4343_v49, %v5881_v26  ;;  %v4346_v42 = vld [vmem:[%s7626_s3 + $0x27] ss:$8 sm:$0x3]  ;;  %s7644_s12 = sld [smem:[#allocation28_spill]] }
 0x152   : > { %v6307_v59 = vpop.permute.xlu1 %2050  ;;  %v1805_v36 = vmul.f32 %v1798_v52, %v1791_v43 }
 0x154   : > { %2798 = vrot.lane.b32.xlu1 %v2796_v4, %s4771_s24  ;;  %v6317_v41 = vpop.permute.xlu0 %2256  ;;  %v1825_v4 = vsel %vm1823_vm5, %v6182_v23, %v6011_v63  ;;  %v1807_v56 = vadd.f32 %v1805_v36, %v1773_v18  ;;  %v4337_v63 = vld [vmem:[%s7626_s3 + $0x24] ss:$8 sm:$0x3] }
 0x155   : > { %v1839_v54 = vmul.f32 %v1832_v33, %v1825_v4  ;;  %v1900_v52 = vrot.slane %v4337_v63, %v5869_v22  ;;  %v1904_v43 = vrot.slane %v4337_v63, %v5881_v26 }
 0x156   : > { %v6328_v16 = vpop.permute.xlu1 %2084 }
 0x157   : > { %v1841_v12 = vadd.f32 %v1839_v54, %v1807_v56  ;;  %v1907_v36 = vmul.f32 %v1900_v52, %v1893_v24  ;;  %v1908_v4 = vmul.f32 %v1904_v43, %v1892_v15  ;;  %v1968_v56 = vrot.slane %v4343_v49, %v5869_v22 }
 0x158   : > { %2832 = vrot.lane.b32.xlu1 %v2830_v45, %s4772_s19  ;;  %v6337_v11 = vpop.permute.xlu0 %2290  ;;  %v1858_v45 = vsel %vm1857_vm6, %v6044_v61, %v6206_v40  ;;  %v4340_v61 = vld [vmem:[%s7626_s3 + $0x25] ss:$8 sm:$0x3]  ;;  %v1960_v52 = vsel %vm1959_vm9, %v6133_v7, %v6258_v20  ;;  %v2006_v43 = vrot.slane %v4346_v42, %v5881_v26  ;;  %v1995_v20 = vsel %vm1993_vm10, %v6280_v39, %v6152_v6 }
 0x159   : > { %v1874_v5 = vmul.f32 %v1870_v38, %v1858_v45  ;;  %v1875_v18 = vadd.f32 %v1873_v55, %v1841_v12  ;;  %v1934_v33 = vrot.slane %v4340_v61, %v5869_v22  ;;  %v1938_v58 = vrot.slane %v4340_v61, %v5881_v26  ;;  %v6415_v55 = vpop.f32.mrb[0].mxu0 }
 0x15a   : > { %v6347_v37 = vpop.permute.xlu1 %2118  ;;  %v2014_v38 = vstv %s6371_s2  ;;  %v1975_v15 = vmul.f32 %v1968_v56, %v1961_v2  ;;  %v1976_v7 = vmul.f32 %v1972_v13, %v1960_v52  ;;  %vm2292_vm6 = vcmp.lt.s32.totalorder %v5865_v21, 111  ;;  %s7641_s2 = sld [smem:[#allocation34_spill]] }
 0x15b   : > { %v1876_v0 = vadd.f32 %v1874_v5, %v1842_v14  ;;  %v1909_v54 = vadd.f32 %v1907_v36, %v1875_v18  ;;  %v1941_v62 = vmul.f32 %v1934_v33, %v1927_v25  ;;  %v1942_v45 = vmul.f32 %v1938_v58, %v1926_v47  ;;  %v6420_v14 = vpop.f32.mrb[1].mxu0 }
 0x15c   : > { %3065 = vrot.lane.b32.xlu1 %v5935_v53, %s7621_s26  ;;  %v6357_v32 = vpop.permute.xlu0 %2324  ;;  %v2002_v5 = vrot.slane %v4346_v42, %v5869_v22  ;;  %v2015_v24 = vmul.f32 %v2014_v38, %v5016_v48  ;;  %v2016_v18 = vmul.f32 %v2014_v38, %v5023_v50  ;;  %v2019_v36 = vmul.f32 %v2018_v17, %v5011_v44  ;;  %v4349_v48 = vld [vmem:[%s7626_s3 + $0x30] ss:$8 sm:$0x3]  ;;  %v4352_v42 = vld [vmem:[%s7626_s3 + $0x31] ss:$8 sm:$0x3] }
 0x15d   : > { %v1910_v63 = vadd.f32 %v1908_v4, %v1876_v0  ;;  %v1943_v61 = vadd.f32 %v1941_v62, %v1909_v54  ;;  %v2020_v0 = vmul.f32 %v2018_v17, %v5013_v46  ;;  %v1994_v44 = vsel %vm1993_vm10, %v6152_v6, %v6280_v39 }
 0x15e   : > { %v6365_v23 = vpop.permute.xlu1 %2152  ;;  %v2009_v58 = vmul.f32 %v2002_v5, %v1995_v20  ;;  %v2021_v25 = vadd.f32 %v2019_v36, %v2015_v24  ;;  %v2029_v47 = vrot.slane %v4349_v48, %v5869_v22  ;;  %v2010_v46 = vmul.f32 %v2006_v43, %v1994_v44  ;;  %v4355_v43 = vld [vmem:[%s7626_s3 + $0x32] ss:$8 sm:$0x3]  ;;  %v4358_v44 = vld [vmem:[%s7626_s3 + $0x33] ss:$8 sm:$0x3] }
 0x15f   : > { %v1944_v49 = vadd.f32 %v1942_v45, %v1910_v63  ;;  %v1977_v50 = vadd.f32 %v1975_v15, %v1943_v61  ;;  %v2022_v62 = vadd.f32 %v2020_v0, %v2016_v18  ;;  %v2033_v13 = vrot.slane %v4349_v48, %v5881_v26 }
 0x160   : > { %v6373_v35 = vpop.permute.xlu0 %2358  ;;  %v2036_v39 = vmul.f32 %v2029_v47, %v2021_v25  ;;  %v2063_v63 = vrot.slane %v4352_v42, %v5869_v22  ;;  %v2067_v52 = vrot.slane %v4352_v42, %v5881_v26  ;;  %v2055_v5 = vsel %vm2054_vm11, %v6307_v59, %v6198_v30  ;;  %v4361_v42 = vld [vmem:[%s7626_s3 + $0x34] ss:$8 sm:$0x3] }
 0x161   : > { %v1978_v54 = vadd.f32 %v1976_v7, %v1944_v49  ;;  %v2011_v6 = vadd.f32 %v2009_v58, %v1977_v50  ;;  %v2037_v17 = vmul.f32 %v2033_v13, %v2022_v62  ;;  %v2056_v61 = vsel %vm2054_vm11, %v6198_v30, %v6307_v59 }
 0x162   : > { %v6383_v40 = vpop.permute.xlu1 %2186  ;;  %v2070_v18 = vmul.f32 %v2063_v63, %v2055_v5  ;;  %v2097_v36 = vrot.slane %v4355_v43, %v5869_v22  ;;  %v2071_v20 = vmul.f32 %v2067_v52, %v2056_v61  ;;  %v2101_v0 = vrot.slane %v4355_v43, %v5881_v26  ;;  %v4364_v61 = vld [vmem:[%s7626_s3 + $0x35] ss:$8 sm:$0x3] }
 0x163   : > { %v2012_v2 = vadd.f32 %v2010_v46, %v1978_v54  ;;  %v2038_v15 = vadd.f32 %v2036_v39, %v2011_v6  ;;  %v2089_v48 = vsel %vm2088_vm12, %v6328_v16, %v6213_v51  ;;  %v2090_v59 = vsel %vm2088_vm12, %v6213_v51, %v6328_v16 }
 0x164   : > { %v6392_v9 = vpop.permute.xlu0 %2392  ;;  %v2104_v58 = vmul.f32 %v2097_v36, %v2089_v48  ;;  %v2131_v25 = vrot.slane %v4358_v44, %v5869_v22  ;;  %v2105_v46 = vmul.f32 %v2101_v0, %v2090_v59  ;;  %v2135_v62 = vrot.slane %v4358_v44, %v5881_v26  ;;  %v4367_v59 = vld [vmem:[%s7626_s3 + $0x36] ss:$8 sm:$0x3] }
 0x165   : > { %v2039_v7 = vadd.f32 %v2037_v17, %v2012_v2  ;;  %v2072_v50 = vadd.f32 %v2070_v18, %v2038_v15  ;;  %v2123_v13 = vsel %vm2122_vm13, %v6347_v37, %v6228_v1  ;;  %v2124_v16 = vsel %vm2122_vm13, %v6228_v1, %v6347_v37 }
 0x166   : > { %v6397_v34 = vpop.permute.xlu1 %2220  ;;  %v2138_v39 = vmul.f32 %v2131_v25, %v2123_v13  ;;  %v2165_v63 = vrot.slane %v4361_v42, %v5869_v22  ;;  %v2139_v52 = vmul.f32 %v2135_v62, %v2124_v16  ;;  %v2169_v5 = vrot.slane %v4361_v42, %v5881_v26 }
 0x167   : > { %v2073_v54 = vadd.f32 %v2071_v20, %v2039_v7  ;;  %v2106_v6 = vadd.f32 %v2104_v58, %v2072_v50  ;;  %v2157_v43 = vsel %vm2156_vm14, %v6365_v23, %v6250_v27  ;;  %v2158_v37 = vsel %vm2156_vm14, %v6250_v27, %v6365_v23 }
 0x168   : > { %v6408_v8 = vpop.permute.xlu0 %2426  ;;  %v2172_v18 = vmul.f32 %v2165_v63, %v2157_v43  ;;  %v2199_v36 = vrot.slane %v4364_v61, %v5869_v22  ;;  %v2173_v0 = vmul.f32 %v2169_v5, %v2158_v37  ;;  %v2203_v48 = vrot.slane %v4364_v61, %v5881_v26 }
 0x169   : > { %v2107_v17 = vadd.f32 %v2105_v46, %v2073_v54  ;;  %v2140_v15 = vadd.f32 %v2138_v39, %v2106_v6  ;;  %v2191_v44 = vsel %vm2190_vm15, %v6383_v40, %v6272_v28  ;;  %v2192_v23 = vsel %vm2190_vm15, %v6272_v28, %v6383_v40  ;;  %v4370_v28 = vld [vmem:[%s7626_s3 + $0x37] ss:$8 sm:$0x3] }
 0x16a   : > { %v6413_v12 = vpop.permute.xlu1 %2254  ;;  %v2206_v58 = vmul.f32 %v2199_v36, %v2191_v44  ;;  %v2233_v25 = vrot.slane %v4367_v59, %v5869_v22  ;;  %v2207_v62 = vmul.f32 %v2203_v48, %v2192_v23  ;;  %v2237_v13 = vrot.slane %v4367_v59, %v5881_v26  ;;  %v4376_v59 = vld [vmem:[%s7626_s3 + $0x41] ss:$8 sm:$0x3] }
 0x16b   : > { %v2141_v20 = vadd.f32 %v2139_v52, %v2107_v17  ;;  %v2174_v50 = vadd.f32 %v2172_v18, %v2140_v15  ;;  %v2225_v42 = vsel %vm2224_vm0, %v6397_v34, %v6295_v19  ;;  %v2226_v16 = vsel %vm2224_vm0, %v6295_v19, %v6397_v34  ;;  %v4373_v19 = vld [vmem:[%s7626_s3 + $0x40] ss:$8 sm:$0x3] }
 0x16c   : > { %v6427_v33 = vpop.permute.xlu0 %2460  ;;  %v2240_v39 = vmul.f32 %v2233_v25, %v2225_v42  ;;  %v2267_v63 = vrot.slane %v4370_v28, %v5869_v22  ;;  %v2241_v5 = vmul.f32 %v2237_v13, %v2226_v16  ;;  %v2271_v43 = vrot.slane %v4370_v28, %v5881_v26  ;;  %v4379_v28 = vld [vmem:[%s7626_s3 + $0x42] ss:$8 sm:$0x3] }
 0x16d   : > { %v2175_v46 = vadd.f32 %v2173_v0, %v2141_v20  ;;  %v2208_v6 = vadd.f32 %v2206_v58, %v2174_v50  ;;  %v2259_v61 = vsel %vm2258_vm2, %v6413_v12, %v6317_v41  ;;  %v2260_v37 = vsel %vm2258_vm2, %v6317_v41, %v6413_v12 }
 0x16e   : > { %v6437_v4 = vpop.permute.xlu1 %2288  ;;  %v2274_v18 = vmul.f32 %v2267_v63, %v2259_v61  ;;  %v2301_v36 = vrot.slane %v4373_v19, %v5869_v22  ;;  %v2275_v0 = vmul.f32 %v2271_v43, %v2260_v37  ;;  %v2305_v48 = vrot.slane %v4373_v19, %v5881_v26  ;;  %v4382_v19 = vld [vmem:[%s7626_s3 + $0x43] ss:$8 sm:$0x3] }
 0x16f   : > { %v2209_v52 = vadd.f32 %v2207_v62, %v2175_v46  ;;  %v2242_v15 = vadd.f32 %v2240_v39, %v2208_v6  ;;  %v2293_v44 = vsel %vm2292_vm6, %v6437_v4, %v6337_v11  ;;  %v2294_v23 = vsel %vm2292_vm6, %v6337_v11, %v6437_v4 }
 0x170   : > { %v6444_v56 = vpop.permute.xlu0 %2494  ;;  %v2308_v58 = vmul.f32 %v2301_v36, %v2293_v44  ;;  %v2335_v25 = vrot.slane %v4376_v59, %v5869_v22  ;;  %v2309_v62 = vmul.f32 %v2305_v48, %v2294_v23  ;;  %v2339_v13 = vrot.slane %v4376_v59, %v5881_v26  ;;  %v4385_v44 = vld [vmem:[%s7626_s3 + $0x44] ss:$8 sm:$0x3] }
 0x171   : > { %v2243_v20 = vadd.f32 %v2241_v5, %v2209_v52  ;;  %v2276_v50 = vadd.f32 %v2274_v18, %v2242_v15  ;;  %v2369_v63 = vrot.slane %v4379_v28, %v5869_v22  ;;  %v2373_v43 = vrot.slane %v4379_v28, %v5881_v26 }
 0x172   : > { %v6450_v38 = vpop.permute.xlu1 %2322  ;;  %vm2394_vm9 = vcmp.lt.s32.totalorder %v5865_v21, 99  ;;  %v2403_v18 = vrot.slane %v4382_v19, %v5869_v22  ;;  %vm2428_vm12 = vcmp.lt.s32.totalorder %v5865_v21, 98  ;;  %vm2462_vm13 = vcmp.lt.s32.totalorder %v5865_v21, 97 }
 0x173   : > { %v2277_v46 = vadd.f32 %v2275_v0, %v2243_v20  ;;  %v2327_v42 = vsel %vm2326_vm7, %v6450_v38, %v6357_v32  ;;  %v2328_v11 = vsel %vm2326_vm7, %v6357_v32, %v6450_v38  ;;  %v2310_v6 = vadd.f32 %v2308_v58, %v2276_v50 }
 0x174   : > { %v6454_v45 = vpop.permute.xlu0 %2528  ;;  %v2342_v39 = vmul.f32 %v2335_v25, %v2327_v42  ;;  %v2343_v5 = vmul.f32 %v2339_v13, %v2328_v11  ;;  %v2407_v0 = vrot.slane %v4382_v19, %v5881_v26  ;;  %v2437_v58 = vrot.slane %v4385_v44, %v5869_v22  ;;  %v4388_v42 = vld [vmem:[%s7626_s3 + $0x45] ss:$8 sm:$0x3]  ;;  %v6648_v19 = vld [vmem:[%s7626_s3 + $0x30] ss:$8 sm:$0x3] }
 0x175   : > { %v2311_v52 = vadd.f32 %v2309_v62, %v2277_v46  ;;  %v2441_v62 = vrot.slane %v4385_v44, %v5881_v26  ;;  %vm2496_vm14 = vcmp.lt.s32.totalorder %v5865_v21, 96  ;;  %v2988_v44 = vrot.slane %v6648_v19, %v5869_v22 }
 0x176   : > { %v6464_v24 = vpop.permute.xlu1 %2356  ;;  %v2344_v37 = vadd.f32 %v2342_v39, %v2310_v6  ;;  %v2471_v39 = vrot.slane %v4388_v42, %v5869_v22  ;;  %vm2530_vm15 = vcmp.lt.s32.totalorder %v5865_v21, 95  ;;  %vm2564_vm7 = vcmp.lt.s32.totalorder %v5865_v21, 94 }
 0x177   : > { %v2361_v61 = vsel %vm2360_vm8, %v6464_v24, %v6373_v35  ;;  %v2362_v38 = vsel %vm2360_vm8, %v6373_v35, %v6464_v24  ;;  %v2345_v36 = vadd.f32 %v2343_v5, %v2311_v52  ;;  %v2475_v5 = vrot.slane %v4388_v42, %v5881_v26 }
 0x178   : > { %v6472_v49 = vpop.permute.xlu0 %2909  ;;  %v2376_v15 = vmul.f32 %v2369_v63, %v2361_v61  ;;  %v2377_v20 = vmul.f32 %v2373_v43, %v2362_v38  ;;  %v4391_v61 = vld [vmem:[%s7626_s3 + $0x46] ss:$8 sm:$0x3]  ;;  %vm2598_vm8 = vcmp.lt.s32.totalorder %v5865_v21, 93 }
 0x17a   : > { %v6480_v30 = vpop.permute.xlu1 %2390  ;;  %v2378_v23 = vadd.f32 %v2376_v15, %v2344_v37  ;;  %v2379_v25 = vadd.f32 %v2377_v20, %v2345_v36  ;;  %v2505_v15 = vrot.slane %v4391_v61, %v5869_v22  ;;  %v4394_v36 = vld [vmem:[%s7626_s3 + $0x47] ss:$8 sm:$0x3] }
 0x17b   : > { %v2395_v48 = vsel %vm2394_vm9, %v6480_v30, %v6392_v9  ;;  %v2396_v24 = vsel %vm2394_vm9, %v6392_v9, %v6480_v30  ;;  %vm2632_vm9 = vcmp.lt.s32.totalorder %v5865_v21, 83 }
 0x17c   : > { %v6486_v47 = vpop.permute.xlu0 %2919  ;;  %v2410_v50 = vmul.f32 %v2403_v18, %v2395_v48  ;;  %v2411_v46 = vmul.f32 %v2407_v0, %v2396_v24  ;;  %v2509_v18 = vrot.slane %v4391_v61, %v5881_v26 }
 0x17e   : > { %v6494_v51 = vpop.permute.xlu1 %2424  ;;  %v2412_v11 = vadd.f32 %v2410_v50, %v2378_v23  ;;  %v2413_v63 = vadd.f32 %v2411_v46, %v2379_v25  ;;  %v2539_v50 = vrot.slane %v4394_v36, %v5869_v22 }
 0x17f   : > { %v2429_v13 = vsel %vm2428_vm12, %v6494_v51, %v6408_v8  ;;  %v2430_v9 = vsel %vm2428_vm12, %v6408_v8, %v6494_v51  ;;  %vm2666_vm12 = vcmp.lt.s32.totalorder %v5865_v21, 82 }
 0x180   : > { %v6500_v2 = vpop.permute.xlu0 %2562  ;;  %v2444_v6 = vmul.f32 %v2437_v58, %v2429_v13  ;;  %v2445_v52 = vmul.f32 %v2441_v62, %v2430_v9  ;;  %v4397_v58 = vld [vmem:[%s7626_s3 + $0x50] ss:$8 sm:$0x3]  ;;  %v2543_v13 = vrot.slane %v4394_v36, %v5881_v26 }
 0x182   : > { %v6508_v1 = vpop.permute.xlu1 %2458  ;;  %v2446_v38 = vadd.f32 %v2444_v6, %v2412_v11  ;;  %v6685_v6 = vmul.f32 %v2988_v44, %v5935_v53  ;;  %v6702_v53 = vld [vmem:[%s7626_s3 + $0x52] ss:$8 sm:$0x3] }
 0x183   : > { %v2463_v43 = vsel %vm2462_vm13, %v6508_v1, %v6427_v33  ;;  %v2464_v51 = vsel %vm2462_vm13, %v6427_v33, %v6508_v1  ;;  %v6658_v33 = vld [vmem:[%s7626_s3 + $0x31] ss:$8 sm:$0x3]  ;;  %v2447_v1 = vadd.f32 %v2445_v52, %v2413_v63  ;;  %v2573_v63 = vrot.slane %v4397_v58, %v5869_v22 }
 0x184   : > { %v6514_v7 = vpop.permute.xlu0 %2596  ;;  %v2478_v37 = vmul.f32 %v2471_v39, %v2463_v43  ;;  %v2479_v20 = vmul.f32 %v2475_v5, %v2464_v51  ;;  %v3010_v25 = vrot.slane %v6658_v33, %v5869_v22  ;;  %v2577_v43 = vrot.slane %v4397_v58, %v5881_v26 }
 0x185   : > { %vm2700_vm13 = vcmp.lt.s32.totalorder %v5865_v21, 81 }
 0x186   : > { %v6522_v27 = vpop.permute.xlu1 %2492  ;;  %v2480_v46 = vadd.f32 %v2478_v37, %v2446_v38 }
 0x187   : > { %v2497_v0 = vsel %vm2496_vm14, %v6522_v27, %v6444_v56  ;;  %v2498_v23 = vsel %vm2496_vm14, %v6444_v56, %v6522_v27  ;;  %v4400_v56 = vld [vmem:[%s7626_s3 + $0x51] ss:$8 sm:$0x3]  ;;  %v2481_v27 = vadd.f32 %v2479_v20, %v2447_v1  ;;  %vm2734_vm14 = vcmp.lt.s32.totalorder %v5865_v21, 80 }
 0x188   : > { %v6528_v54 = vpop.permute.xlu0 %2941  ;;  %v2512_v62 = vmul.f32 %v2505_v15, %v2497_v0  ;;  %v2513_v42 = vmul.f32 %v2509_v18, %v2498_v23  ;;  %v2607_v61 = vrot.slane %v4400_v56, %v5869_v22  ;;  %v2611_v37 = vrot.slane %v4400_v56, %v5881_v26  ;;  %v6724_v0 = vld [vmem:[%s7626_s3 + $0x54] ss:$8 sm:$0x3] }
 0x189   : > { %v2641_v23 = vrot.slane %v6702_v53, %v5869_v22  ;;  %v2709_v56 = vrot.slane %v6724_v0, %v5869_v22 }
 0x18a   : > { %v6538_v40 = vpop.permute.xlu1 %2526  ;;  %v2514_v51 = vadd.f32 %v2512_v62, %v2480_v46  ;;  %v2515_v15 = vadd.f32 %v2513_v42, %v2481_v27  ;;  %v4428_v27 = vld [vmem:[%s7626_s3 + $0x36] ss:$8 sm:$0x3]  ;;  %v4429_v42 = vld [vmem:[%s7626_s3 + $0x37] ss:$8 sm:$0x3] }
 0x18b   : > { %v2531_v9 = vsel %vm2530_vm15, %v6538_v40, %v6454_v45  ;;  %v2532_v39 = vsel %vm2530_vm15, %v6454_v45, %v6538_v40  ;;  %vm2768_vm15 = vcmp.lt.s32.totalorder %v5865_v21, 79 }
 0x18c   : > { %v6546_v17 = vpop.permute.xlu0 %2963  ;;  %v2546_v38 = vmul.f32 %v2539_v50, %v2531_v9  ;;  %v2547_v18 = vmul.f32 %v2543_v13, %v2532_v39  ;;  %v2645_v50 = vrot.slane %v6702_v53, %v5881_v26 }
 0x18e   : > { %v6556_v34 = vpop.permute.xlu1 %2907  ;;  %v2549_v9 = vadd.f32 %v2547_v18, %v2515_v15  ;;  %v3036_v15 = vrot.slane %v4428_v27, %v5881_v26 }
 0x190   : > { %v6574_v12 = vpop.permute.xlu0 %2630 }
 0x192   : > { %v6572_v41 = vpop.permute.xlu1 %2917 }
 0x194   : > { %v6593_v4 = vpop.permute.xlu0 %2664 }
 0x196   : > { %v6588_v16 = vpop.permute.xlu1 %2560 }
 0x197   : > { %v2565_v36 = vsel %vm2564_vm7, %v6588_v16, %v6500_v2  ;;  %v2566_v44 = vsel %vm2564_vm7, %v6500_v2, %v6588_v16  ;;  %v6747_v2 = vld [vmem:[%s7626_s3 + $0x55] ss:$8 sm:$0x3]  ;;  %v2548_v16 = vadd.f32 %v2546_v38, %v2514_v51  ;;  %vm2802_vm7 = vcmp.lt.s32.totalorder %v5865_v21, 78 }
 0x198   : > { %v3002_v35 = vpop.permute.xlu0 %3001  ;;  %v2580_v62 = vmul.f32 %v2573_v63, %v2565_v36  ;;  %v2743_v53 = vrot.slane %v6747_v2, %v5869_v22  ;;  %v2747_v51 = vrot.slane %v6747_v2, %v5881_v26 }
 0x19a   : > { %v6602_v32 = vpop.permute.xlu1 %2594  ;;  %v2582_v18 = vadd.f32 %v2580_v62, %v2548_v16 }
 0x19b   : > { %v2599_v58 = vsel %vm2598_vm8, %v6602_v32, %v6514_v7  ;;  %v2600_v13 = vsel %vm2598_vm8, %v6514_v7, %v6602_v32  ;;  %v2713_v7 = vrot.slane %v6724_v0, %v5881_v26  ;;  %v3058_v0 = vrot.slane %v4429_v42, %v5881_v26 }
 0x19c   : > { %v6631_v30 = vpop.permute.xlu0 %2698  ;;  %v2615_v38 = vmul.f32 %v2611_v37, %v2600_v13  ;;  %vm2836_vm8 = vcmp.lt.s32.totalorder %v5865_v21, 77 }
 0x19e   : > { %v6614_v59 = vpop.permute.xlu1 %2939 }
 0x1a0   : > { %v6666_v24 = vpop.permute.xlu0 %2732 }
 0x1a2   : > { %v6626_v28 = vpop.permute.xlu1 %2961 }
 0x1a4   : > { %v3024_v40 = vpop.permute.xlu0 %3023 }
 0x1a6   : > { %v6640_v8 = vpop.permute.xlu1 %2628 }
 0x1a7   : > { %v2633_v39 = vsel %vm2632_vm9, %v6640_v8, %v6574_v12  ;;  %v2634_v37 = vsel %vm2632_vm9, %v6574_v12, %v6640_v8  ;;  %vm2856_vm9 = vcmask 1040384  }
 0x1a8   : > { %v3046_v63 = vpop.permute.xlu0 %3045  ;;  %v2648_v36 = vmul.f32 %v2641_v23, %v2633_v39  ;;  %v2649_v39 = vmul.f32 %v2645_v50, %v2634_v37 }
 0x1aa   : > { %v6662_v48 = vpop.permute.xlu1 %2662 }
 0x1ab   : > { %v2667_v23 = vsel %vm2666_vm12, %v6662_v48, %v6593_v4 }
 0x1ac   : > { %v2767_v8 = vpop.permute.xlu0 %2766 }
 0x1ae   : > { %v3000_v11 = vpop.permute.xlu1 %2999 }
 0x1af   : > { %v3003_v52 = vsel %vm2054_vm11, %v3000_v11, %v3002_v35  ;;  %v6694_v5 = vsel %vm2054_vm11, %v3002_v35, %v3000_v11  ;;  %v6711_v35 = vld [vmem:[%s7626_s3 + $0x53] ss:$8 sm:$0x3]  ;;  %v2581_v11 = vmul.f32 %v2577_v43, %v2566_v44  ;;  %v6775_v43 = vld [vmem:[%s7626_s3 + $0x56] ss:$8 sm:$0x3] }
 0x1b0   : > { %v6704_v45 = vmul.f32 %v3010_v25, %v3003_v52  ;;  %v2675_v25 = vrot.slane %v6711_v35, %v5869_v22  ;;  %v2679_v46 = vrot.slane %v6711_v35, %v5881_v26  ;;  %v2614_v52 = vmul.f32 %v2607_v61, %v2599_v58  ;;  %v6785_v44 = vld [vmem:[%s7626_s3 + $0x57] ss:$8 sm:$0x3] }
 0x1b1   : > { %v3032_v35 = vrot.slane %v4428_v27, %v5869_v22  ;;  %v3054_v61 = vrot.slane %v4429_v42, %v5869_v22  ;;  %v2583_v58 = vadd.f32 %v2581_v11, %v2549_v9  ;;  %v2777_v16 = vrot.slane %v6775_v43, %v5869_v22 }
 0x1b2   : > { %v4486_v1 = vpack.c.bf16 %v6704_v45, %v6685_v6  ;;  %v6719_v20 = vpop.permute.xlu1 %2696  ;;  %v2616_v62 = vadd.f32 %v2614_v52, %v2582_v18  ;;  %v2781_v42 = vrot.slane %v6775_v43, %v5881_v26  ;;  %v2811_v9 = vrot.slane %v6785_v44, %v5869_v22 }
 0x1b3   : > { %v2617_v12 = vadd.f32 %v2615_v38, %v2583_v58  ;;  %v2815_v11 = vrot.slane %v6785_v44, %v5881_v26  ;;  %v2682_v18 = vmul.f32 %v2675_v25, %v2667_v23  ;;  %v2701_v43 = vsel %vm2700_vm13, %v6719_v20, %v6631_v30 }
 0x1b4   : > { %v2650_v52 = vadd.f32 %v2648_v36, %v2616_v62 }
 0x1b6   : > { %v2731_v32 = vpop.permute.xlu1 %2730 }
 0x1ba   : > { %v3022_v2 = vpop.permute.xlu1 %3021 }
 0x1bb   : > { %v3025_v13 = vsel %vm2224_vm0, %v3022_v2, %v3024_v40  ;;  %v3026_v27 = vsel %vm2224_vm0, %v3024_v40, %v3022_v2  ;;  %v2668_v40 = vsel %vm2666_vm12, %v6593_v4, %v6662_v48  ;;  %v2702_v4 = vsel %vm2700_vm13, %v6631_v30, %v6719_v20 }
 0x1bc   : > { %v6816_v38 = vmul.f32 %v3032_v35, %v3025_v13  ;;  %v6818_v58 = vmul.f32 %v3036_v15, %v3026_v27  ;;  %v2683_v37 = vmul.f32 %v2679_v46, %v2668_v40  ;;  %v2651_v13 = vadd.f32 %v2649_v39, %v2617_v12 }
 0x1bd   : > { %v2735_v27 = vsel %vm2734_vm14, %v2731_v32, %v6666_v24  ;;  %v2736_v30 = vsel %vm2734_vm14, %v6666_v24, %v2731_v32  ;;  %v2684_v12 = vadd.f32 %v2682_v18, %v2650_v52  ;;  %v4421_v52 = vld [vmem:[%s7626_s3 + $0x60] ss:$8 sm:$0x3]  ;;  %vm3188_vm12 = vcmask 195584  }
 0x1be   : > { %v980_v2 = vpop.f32.mrb[2].mxu0  ;;  %v3044_v50 = vpop.permute.xlu1 %3043  ;;  %v2685_v32 = vadd.f32 %v2683_v37, %v2651_v13  ;;  %vm3597_vm13 = vcmask 130048  }
 0x1bf   : > { %v981_v44 = vadd.f32 %v980_v2, %v5696_v29  ;;  %v982_v36 = vpop.f32.mrb[3].mxu0  ;;  %v3047_v48 = vsel %vm2258_vm2, %v3044_v50, %v3046_v63  ;;  %v3048_v25 = vsel %vm2258_vm2, %v3046_v63, %v3044_v50  ;;  %v2716_v2 = vmul.f32 %v2709_v56, %v2701_v43 }
 0x1c0   : > { %v983_v35 = vadd.f32 %v982_v36, %v5696_v29  ;;  %v6830_v23 = vmul.f32 %v3054_v61, %v3047_v48  ;;  %v6832_v62 = vmul.f32 %v3058_v0, %v3048_v25  ;;  %v2717_v63 = vmul.f32 %v2713_v7, %v2702_v4  ;;  %v2801_v61 = vpop.permute.xlu0 %2800 }
 0x1c1   : > { %v985_v15 = vmax.f32 %v981_v44, 0.0  ;;  %v2750_v56 = vmul.f32 %v2743_v53, %v2735_v27  ;;  %v2751_v7 = vmul.f32 %v2747_v51, %v2736_v30  ;;  %v989_v44 = vld [vmem:[%s7636_s10] sm:$0xff]  ;;  %v2718_v18 = vadd.f32 %v2716_v2, %v2684_v12  ;;  %s7652_s10 = sld [smem:[#allocation41_spill]] }
 0x1c2   : > { %v986_v20 = vmax.f32 %v983_v35, 0.0  ;;  %v4490_v29 = vpack.c.bf16 %v6830_v23, %v6816_v38  ;;  %v2765_v46 = vpop.permute.xlu1 %2764  ;;  %v4488_v0 = vpack.c.bf16 %v6832_v62, %v6818_v58  ;;  %v2845_v48 = vrot.slane %v4421_v52, %v5869_v22 }
 0x1c3   : > { %v2769_v39 = vsel %vm2768_vm15, %v2765_v46, %v2767_v8  ;;  %v2770_v40 = vsel %vm2768_vm15, %v2767_v8, %v2765_v46  ;;  %v987_v43 = vadd.f32 %v985_v15, %v5651_v10  ;;  %v2719_v8 = vadd.f32 %v2717_v63, %v2685_v32 }
 0x1c4   : > { %v988_v24 = vadd.f32 %v986_v20, %v5651_v10  ;;  %v2784_v50 = vmul.f32 %v2777_v16, %v2769_v39  ;;  %v2785_v36 = vmul.f32 %v2781_v42, %v2770_v40  ;;  %v2849_v25 = vrot.slane %v4421_v52, %v5881_v26  ;;  %v2835_v16 = vpop.permute.xlu0 %2834 }
 0x1c5   : > { %v2752_v35 = vadd.f32 %v2750_v56, %v2718_v18  ;;  %v2753_v37 = vadd.f32 %v2751_v7, %v2719_v8  ;;  %v7637_v42 = vmov 0.0   ;;  %v3106_v56 = vld [vmem:[%s7638_s11] sm:$0xff]  ;;  %v2878_v38 = vstv %s2877_s23  ;;  %s7649_s23 = sld [smem:[#allocation39_spill]] }
 0x1c6   : > { %999 = vmatprep.subr.mxu1 %v988_v24  ;;  %v2799_v4 = vpop.permute.xlu1 %2798  ;;  %v3263_v7 = vld [vmem:[%s7639_s25] sm:$0xff] }
 0x1c7   : > { %1000 = vmatpush1.msra.mxu1 %v987_v43  ;;  %v2803_v53 = vsel %vm2802_vm7, %v2799_v4, %v2801_v61  ;;  %v2804_v51 = vsel %vm2802_vm7, %v2801_v61, %v2799_v4  ;;  %v2786_v27 = vadd.f32 %v2784_v50, %v2752_v35  ;;  %v2787_v30 = vadd.f32 %v2785_v36, %v2753_v37  ;;  %v4423_v35 = vld [vmem:[%s7626_s3 + $0x21] ss:$8 sm:$0x3]  ;;  %v4424_v37 = vld [vmem:[%s7626_s3 + $0x22] ss:$8 sm:$0x3] }
 0x1c8   : > { %4275 = vmatmul.mubr.msk.f32.vlgmr.msra.gmra.mrb[0].mxu1 %vm910_vm1, %v989_v44  ;;  %v2818_v15 = vmul.f32 %v2811_v9, %v2803_v53  ;;  %v2819_v13 = vmul.f32 %v2815_v11, %v2804_v51 }
 0x1c9   : > { %1148 = vmatprep.mubr.f32.mxu1 %v7637_v42 }
 0x1ca   : > { %v2833_v20 = vpop.permute.xlu1 %2832  ;;  %v2820_v46 = vadd.f32 %v2818_v15, %v2786_v27  ;;  %v2821_v61 = vadd.f32 %v2819_v13, %v2787_v30  ;;  %v4425_v15 = vld [vmem:[%s7626_s3 + $0x27] ss:$8 sm:$0x3]  ;;  %v2928_v13 = vrot.slane %v4423_v35, %v5869_v22  ;;  %v2950_v27 = vrot.slane %v4424_v37, %v5869_v22 }
 0x1cb   : > { %v2837_v2 = vsel %vm2836_vm8, %v2833_v20, %v2835_v16  ;;  %v2838_v63 = vsel %vm2836_vm8, %v2835_v16, %v2833_v20  ;;  %v2932_v16 = vrot.slane %v4423_v35, %v5881_v26  ;;  %v2911_v20 = vsel %vm1755_vm3, %v6556_v34, %v6472_v49 }
 0x1cc   : > { %v2852_v12 = vmul.f32 %v2845_v48, %v2837_v2  ;;  %v2853_v39 = vmul.f32 %v2849_v25, %v2838_v63  ;;  %v1075_v48 = vld [vmem:[%s7640_s6] sm:$0xff]  ;;  %v2921_v2 = vsel %vm1789_vm4, %v6572_v41, %v6486_v47  ;;  %v2954_v63 = vrot.slane %v4424_v37, %v5881_v26 }
 0x1cd   : > { %v3271_v25 = vld [vmem:[%s7641_s2] sm:$0xff]  ;;  %s7645_s2 = sld [smem:[#allocation30_spill]] }
 0x1ce   : > { %v2854_v40 = vadd.f32 %v2852_v12, %v2820_v46  ;;  %v2855_v9 = vadd.f32 %v2853_v39, %v2821_v61  ;;  %v6909_v43 = vpop.permute.xlu1 %3065  ;;  %v3681_v12 = vld [vmem:[%s7642_s7] sm:$0xff]  ;;  %v2912_v39 = vsel %vm1755_vm3, %v6472_v49, %v6556_v34  ;;  %v2965_v49 = vsel %vm1993_vm10, %v6626_v28, %v6546_v17 }
 0x1cf   : > { %v4430_v37 = vld [vmem:[%s7626_s3 + $0x40] ss:$8 sm:$0x3] }
 0x1d0   : > { %v2857_v11 = vsel %vm2856_vm9, %v2854_v40, 0.0  ;;  %v2858_v24 = vsel %vm2856_vm9, %v2855_v9, 0.0 }
 0x1d1   : > { %v2859_v32 = vadd.f32 %v2858_v24, %v2857_v11  ;;  %v2943_v24 = vsel %vm1823_vm5, %v6614_v59, %v6528_v54 }
 0x1d3   : > { %2860 = vadd.xlane.f32.xlu1 %v2859_v32  ;;  %v2972_v32 = vrot.slane %v4425_v15, %v5869_v22  ;;  %v3087_v6 = vld [vmem:[%s7645_s2] sm:$0xff]  ;;  %s7648_s2 = sld [smem:[#allocation38_spill]] }
 0x1d9   : > { %v3996_v21 = vld [vmem:[%s7648_s2 + $0x18] sm:$0xff] }
 0x1e4   : > { %3109 = vperm.xlu1 %4648, %v3106_v56  }
 0x1e8   : > { %3266 = vperm.xlu1 %4648, %v3263_v7   ;;  %v3697_v7 = vld [vmem:[%s7643_s14] sm:$0xff] }
 0x1ec   : > { %3281 = vrot.lane.b32.xlu1 %v6415_v55, %s7604_s27 }
 0x1f0   : > { %3285 = vrot.lane.b32.xlu1 %v6420_v14, %s7604_s27 }
 0x1f4   : > { %3313 = vrot.lane.b32.xlu1 %v6415_v55, %s7605_s30 }
 0x1f8   : > { %3317 = vrot.lane.b32.xlu1 %v6420_v14, %s7605_s30 }
 0x1fc   : > { %3345 = vrot.lane.b32.xlu1 %v6415_v55, %s7606_s15 }
 0x200   : > { %3349 = vrot.lane.b32.xlu1 %v6420_v14, %s7606_s15 }
 0x204   : > { %3377 = vrot.lane.b32.xlu1 %v6415_v55, %s7624_s18 }
 0x208   : > { %3381 = vrot.lane.b32.xlu1 %v6420_v14, %s7624_s18 }
 0x20c   : > { %3429 = vrot.lane.b32.xlu1 %v6415_v55, %s7611_s28 }
 0x210   : > { %3433 = vrot.lane.b32.xlu1 %v6420_v14, %s7611_s28 }
 0x214   : > { %3461 = vrot.lane.b32.xlu1 %v6415_v55, %s7619_s17 }
 0x218   : > { %3465 = vrot.lane.b32.xlu1 %v6420_v14, %s7619_s17 }
 0x21c   : > { %3493 = vrot.lane.b32.xlu1 %v6415_v55, %s7620_s16 }
 0x220   : > { %3497 = vrot.lane.b32.xlu1 %v6420_v14, %s7620_s16 }
 0x224   : > { %3525 = vrot.lane.b32.xlu1 %v6415_v55, %s7621_s26 }
 0x228   : > { %3529 = vrot.lane.b32.xlu1 %v6420_v14, %s7621_s26 }
 0x22c   : > { %3685 = vperm.xlu1 %4648, %v3681_v12  }
 0x230   : > { %3701 = vperm.xlu1 %4648, %v3697_v7  }
 0x260   : > { %v2861_v44 = vpop.xlane.xlu1 %2860 }
 0x261   : > { %v2862_v52 = vmul.f32 0.00390625, %v2861_v44  ;;  %v2913_v44 = vmul.f32 %v2912_v39, %v6293_v3 }
 0x263   : > { %v6911_v18 = vsub.f32 %v2854_v40, %v2862_v52  ;;  %v6913_v8 = vsub.f32 %v2855_v9, %v2862_v52  ;;  %v2922_v40 = vsel %vm1789_vm4, %v6486_v47, %v6572_v41  ;;  %v2976_v9 = vrot.slane %v4425_v15, %v5881_v26  ;;  %v3068_v15 = vpop.permute.xlu0 %3067 }
 0x264   : > { %v2914_v47 = vmul.f32 %v2911_v20, %v6298_v57  ;;  %v2936_v41 = vmul.f32 %v2932_v16, %v2921_v2  ;;  %v2935_v52 = vmul.f32 %v2928_v13, %v2922_v40  ;;  %v2992_v57 = vrot.slane %v6648_v19, %v5881_v26 }
 0x265   : > { %v2865_v50 = vmul.f32 %v6911_v18, %v6911_v18  ;;  %v2866_v36 = vmul.f32 %v6913_v8, %v6913_v8  ;;  %v3070_v13 = vsel %vm2292_vm6, %v3068_v15, %v6909_v43 }
 0x267   : > { %v2867_v4 = vsel %vm2856_vm9, %v2865_v50, 0.0  ;;  %v2868_v53 = vsel %vm2856_vm9, %v2866_v36, 0.0  ;;  %v2944_v50 = vsel %vm1823_vm5, %v6528_v54, %v6614_v59  ;;  %v2958_v36 = vmul.f32 %v2954_v63, %v2943_v24 }
 0x268   : > { %v2869_v51 = vadd.f32 %v2868_v53, %v2867_v4  ;;  %v2980_v4 = vmul.f32 %v2976_v9, %v2965_v49  ;;  %v4476_v54 = vpack.c.bf16 %v2936_v41, %v2914_v47  ;;  %v4478_v59 = vpack.c.bf16 %v2935_v52, %v2913_v44 }
 0x269   : > { %v2957_v19 = vmul.f32 %v2950_v27, %v2944_v50 }
 0x26a   : > { %2870 = vadd.xlane.f32.xlu0 %v2869_v51  ;;  %v1074_v51 = vld [vmem:[%s7644_s12] sm:$0xff] }
 0x280   : > { %1078 = vperm.xlu0 %4647, %v1075_v48  }
 0x284   : > { %3274 = vperm.xlu0 %4647, %v3271_v25  }
 0x29b   : > { %v1065_v30 = vpop.f32.mrb[0].mxu1 }
 0x29c   : > { %v1066_v46 = vadd.f32 %v1065_v30, %v6174_v31  ;;  %v1067_v61 = vpop.f32.mrb[1].mxu1 }
 0x29d   : > { %v1068_v11 = vadd.f32 %v1067_v61, %v6174_v31  ;;  %v3014_v31 = vrot.slane %v6658_v33, %v5881_v26  ;;  %v2966_v33 = vsel %vm1993_vm10, %v6546_v17, %v6626_v28  ;;  %v4480_v17 = vpack.c.bf16 %v2980_v4, %v2958_v36 }
 0x29e   : > { %v1070_v34 = vmax.f32 %v1066_v46, 0.0  ;;  %v2979_v48 = vmul.f32 %v2972_v32, %v2966_v33  ;;  %v2996_v28 = vmul.f32 %v2992_v57, %v5738_v60  ;;  %v3076_v60 = vrot.slane %v4430_v37, %v5869_v22 }
 0x29f   : > { %v1071_v56 = vmax.f32 %v1068_v11, 0.0  ;;  %v3018_v25 = vmul.f32 %v3014_v31, %v6694_v5  ;;  %v3080_v5 = vrot.slane %v4430_v37, %v5881_v26  ;;  %v4674_v37 = vld [vmem:[%s7618_s8] sm:$0xff] }
 0x2a0   : > { %v1072_v3 = vadd.f32 %v1070_v34, %v5651_v10 }
 0x2a1   : > { %v1073_v53 = vadd.f32 %v1071_v56, %v5651_v10  ;;  %v4482_v10 = vpack.c.bf16 %v2979_v48, %v2957_v19  ;;  %v4484_v35 = vpack.c.bf16 %v3018_v25, %v2996_v28  ;;  %v3084_v16 = vmul.f32 %v3080_v5, %v3070_v13  ;;  %v4671_v19 = vld [vmem:[%s7617_s4] sm:$0xff]  ;;  %v4672_v25 = vld [vmem:[%s7617_s4 + $0x8] sm:$0xff] }
 0x2a2   : > { %v4673_v28 = vld [vmem:[%s7618_s8 + $0x8] sm:$0xff] }
 0x2a3   : > { %1084 = vmatprep.subr.mxu1 %v1073_v53 }
 0x2a4   : > { %1085 = vmatpush1.msra.mxu1 %v1072_v3 }
 0x2a5   : > { %4276 = vmatmul.mubr.msk.f32.vlgmr.msra.gmra.mrb[2].mxu1 %vm910_vm1, %v1074_v51  ;;  %4477 = vmatprep.subr.bf16.mxu1 %v4476_v54  ;;  %vm3112_vm1 = vcmask 588800  }
 0x2a6   : > { %4479 = vmatpush1.bf16.msra.mxu1 %v4478_v59  ;;  %3180 = vmatprep.mubr.f32.mxu1 %v7637_v42  ;;  %v3069_v42 = vsel %vm2292_vm6, %v6909_v43, %v3068_v15  ;;  %v2882_v43 = vstv %s4422_s0 }
 0x2a7   : > { %4481 = vmatprep.subr.bf16.mxu1 %v4480_v17  ;;  %v3083_v27 = vmul.f32 %v3076_v60, %v3069_v42 }
 0x2aa   : > { %4483 = vmatpush1.bf16.msra.mxu1 %v4482_v10 }
 0x2ab   : > { %4485 = vmatprep.subr.bf16.mxu1 %v4484_v35  ;;  %v3110_v35 = vpop.permute.xlu1 %3109 }
 0x2ae   : > { %4487 = vmatpush1.bf16.msra.mxu1 %v4486_v1 }
 0x2af   : > { %4489 = vmatprep.subr.bf16.mxu1 %v4488_v0 }
 0x2b2   : > { %4491 = vmatpush1.bf16.msra.mxu1 %v4490_v29 }
 0x2b3   : > { %3132 = vmatprep.subr.mxu1 %v3084_v16  ;;  %v3187_v16 = vld [vmem:[%s7646_s1] sm:$0xff] }
 0x2b6   : > { %3133 = vmatpush1.msra.mxu1 %v3083_v27  ;;  %v3267_v27 = vpop.permute.xlu1 %3266 }
 0x2b7   : > { %4431 = vmatmul.mubr.msk.f32.vlgmr.msra.gmra.mrb[4].mxu1 %vm3112_vm1, %v3087_v6 }
 0x2f7   : > { %v2871_v45 = vpop.xlane.xlu0 %2870 }
 0x2f8   : > { %v2872_v1 = vmul.f32 0.00390625, %v2871_v45  ;;  %v4437_v45 = vld [vmem:[%s7626_s3 + $0x30] ss:$8 sm:$0x3] }
 0x2fa   : > { %v2873_v58 = vadd.f32 1e-05, %v2872_v1 }
 0x2fc   : > { %4649 = vrsqrt.f32 %v2873_v58 }
 0x2ff   : > { %v1079_v39 = vpop.permute.xlu0 %1078 }
 0x306   : > { %v4650_v62 = vpop.eup %4649 }
 0x307   : > { %v2876_v0 = vmul.f32 %v4650_v62, %v6913_v8  ;;  %v2875_v23 = vmul.f32 %v4650_v62, %v6911_v18  ;;  %v3275_v62 = vpop.permute.xlu0 %3274 }
 0x309   : > { %v2880_v29 = vmul.f32 %v2878_v38, %v2876_v0  ;;  %v2879_v30 = vmul.f32 %v2878_v38, %v2875_v23  ;;  %v3414_v23 = vrot.slane %v4437_v45, %v5869_v22 }
 0x30b   : > { %v2884_v20 = vadd.f32 %v2882_v43, %v2880_v29  ;;  %v2883_v2 = vadd.f32 %v2882_v43, %v2879_v30  ;;  %v3418_v43 = vrot.slane %v4437_v45, %v5881_v26 }
 0x30d   : > { %v2886_v63 = vsub.f32 0.0, %v2884_v20  ;;  %v2885_v46 = vsub.f32 0.0, %v2883_v2  ;;  %v7038_v2 = vmul.f32 %v3414_v23, %v6415_v55  ;;  %v3558_v55 = vld [vmem:[%s7647_s29 + $0x8] sm:$0xff] }
 0x30f   : > { %v2889_v61 = vmul.f32 1.442695, %v2886_v63  ;;  %v2887_v12 = vmul.f32 1.442695, %v2885_v46  ;;  %v7043_v46 = vmul.f32 %v3418_v43, %v6420_v14  ;;  %v3682_v14 = vld [vmem:[%s7642_s7 + $0x8] sm:$0xff] }
 0x311   : > { %4651 = vpow2.f32 %v2889_v61 }
 0x312   : > { %4653 = vpow2.f32 %v2887_v12 }
 0x31b   : > { %v4652_v41 = vpop.eup %4651 }
 0x31c   : > { %v4654_v31 = vpop.eup %4653  ;;  %v2892_v56 = vadd.f32 1.0, %v4652_v41 }
 0x31d   : > { %v2891_v7 = vadd.f32 1.0, %v4654_v31 }
 0x378   : > { %v1150_v40 = vpop.f32.mrb[2].mxu1 }
 0x379   : > { %v1151_v9 = vadd.f32 %v1150_v40, %v1079_v39  ;;  %v1152_v11 = vpop.f32.mrb[3].mxu1  ;;  %v3698_v40 = vld [vmem:[%s7643_s14 + $0x8] sm:$0xff] }
 0x37a   : > { %v1153_v24 = vadd.f32 %v1152_v11, %v1079_v39 }
 0x37b   : > { %v1155_v8 = vmax.f32 %v1151_v9, 0.0  ;;  %v3282_v9 = vpop.permute.xlu1 %3281 }
 0x37c   : > { %v1156_v32 = vmax.f32 %v1153_v24, 0.0 }
 0x37d   : > { %v1157_v49 = vsub.f32 0.0, %v1155_v8 }
 0x37e   : > { %v1158_v18 = vsub.f32 0.0, %v1156_v32 }
 0x37f   : > { %v1159_v34 = vmul.f32 1.442695, %v1157_v49  ;;  %v3286_v11 = vpop.permute.xlu1 %3285 }
 0x380   : > { %v1161_v47 = vmul.f32 1.442695, %v1158_v18 }
 0x381   : > { %4655 = vpow2.f32 %v1159_v34 }
 0x382   : > { %4657 = vpow2.f32 %v1161_v47 }
 0x383   : > { %4659 = vrcp.f32 %v2892_v56  ;;  %v3314_v24 = vpop.permute.xlu1 %3313 }
 0x384   : > { %4661 = vrcp.f32 %v2891_v7 }
 0x387   : > { %v3318_v8 = vpop.permute.xlu1 %3317 }
 0x38a   : > { %v3182_v44 = vpop.f32.mrb[4].mxu1 }
 0x38b   : > { %v4656_v52 = vpop.eup %4655  ;;  %v3184_v50 = vpop.f32.mrb[5].mxu1  ;;  %v3183_v42 = vadd.f32 %v3182_v44, %v3110_v35 }
 0x38c   : > { %v4658_v57 = vpop.eup %4657  ;;  %v1163_v36 = vadd.f32 1.0, %v4656_v52  ;;  %v3185_v13 = vadd.f32 %v3184_v50, %v3110_v35  ;;  %v3346_v32 = vpop.permute.xlu1 %3345  ;;  %v4435_v35 = vld [vmem:[%s7626_s3 + $0x22] ss:$8 sm:$0x3] }
 0x38d   : > { %v1164_v33 = vadd.f32 1.0, %v4658_v57  ;;  %v4660_v4 = vpop.eup %4659  ;;  %v4433_v57 = vld [vmem:[%s7626_s3 + $0x20] ss:$8 sm:$0x3]  ;;  %v3366_v45 = vrot.slane %v4435_v35, %v5881_v26 }
 0x38e   : > { %4663 = vrcp.f32 %v1163_v36  ;;  %v4662_v53 = vpop.eup %4661  ;;  %v2902_v3 = vrot.slane %v4660_v4, %v5869_v22  ;;  %v3302_v4 = vrot.slane %v4433_v57, %v5881_v26 }
 0x38f   : > { %4665 = vrcp.f32 %v1164_v33  ;;  %v2898_v51 = vrot.slane %v4662_v53, %v5869_v22  ;;  %v3298_v33 = vrot.slane %v4433_v57, %v5869_v22  ;;  %v4434_v53 = vld [vmem:[%s7626_s3 + $0x21] ss:$8 sm:$0x3] }
 0x390   : > { %v2904_v10 = vmul.f32 %v4673_v28, %v2902_v3  ;;  %v3350_v49 = vpop.permute.xlu1 %3349 }
 0x391   : > { %v2903_v15 = vmul.f32 %v4674_v37, %v2898_v51  ;;  %v3289_v51 = vsel %vm1755_vm3, %v3282_v9, %v3286_v11 }
 0x394   : > { %v3378_v34 = vpop.permute.xlu1 %3377 }
 0x398   : > { %v4664_v54 = vpop.eup %4663  ;;  %v3382_v41 = vpop.permute.xlu1 %3381 }
 0x399   : > { %v4666_v59 = vpop.eup %4665  ;;  %v1167_v48 = vmul.f32 %v4671_v19, %v4664_v54  ;;  %v3291_v54 = vsel %vm1755_vm3, %v3286_v11, %v3282_v9  ;;  %v3330_v19 = vrot.slane %v4434_v53, %v5869_v22 }
 0x39a   : > { %v1168_v17 = vmul.f32 %v4672_v25, %v4666_v59  ;;  %v3305_v28 = vmul.f32 %v3298_v33, %v3291_v54 }
 0x39b   : > { %v4494_v60 = vpack.c.bf16 %v2903_v15, %v1167_v48  ;;  %v3334_v48 = vrot.slane %v4434_v53, %v5881_v26 }
 0x39c   : > { %v4492_v5 = vpack.c.bf16 %v2904_v10, %v1168_v17  ;;  %v7078_v7 = vpop.permute.xlu1 %3429  ;;  %v3306_v10 = vmul.f32 %v3302_v4, %v3289_v51 }
 0x39e   : > { %4493 = vmatprep.subr.bf16.mxu0 %v4492_v5  ;;  %v3321_v5 = vsel %vm1789_vm4, %v3314_v24, %v3318_v8 }
 0x39f   : > { %4495 = vmatpush1.bf16.msra.mxu0 %v4494_v60 }
 0x3a0   : > { %3196 = vmatprep.subr.mxu0 %v3185_v13  ;;  %v7082_v52 = vpop.permute.xlu1 %3433  ;;  %v3323_v13 = vsel %vm1789_vm4, %v3318_v8, %v3314_v24 }
 0x3a3   : > { %3197 = vmatpush1.msra.mxu0 %v3183_v42 }
 0x3a4   : > { %4432 = vmatmul.mubr.msk.f32.vlgmr.msra.gmra.mrb[4].mxu0 %vm3188_vm12, %v3187_v16  ;;  %v7096_v3 = vpop.permute.xlu1 %3461 }
 0x3a5   : > { %4442 = vmatprep.mubr.msk.f32.mxu0 %vm3597_vm13, %v3558_v55 }
 0x3a8   : > { %v7115_v60 = vpop.permute.xlu1 %3465 }
 0x477   : > { %v3258_v6 = vpop.f32.mrb[4].mxu0 }
 0x478   : > { %v3269_v1 = vmul.f32 %v3267_v27, %v3258_v6  ;;  %v3260_v58 = vpop.f32.mrb[5].mxu0  ;;  %v3362_v6 = vrot.slane %v4435_v35, %v5869_v22 }
 0x479   : > { %v3270_v0 = vmul.f32 %v3267_v27, %v3260_v58 }
 0x47a   : > { %v3277_v38 = vadd.f32 %v3275_v62, %v3269_v1 }
 0x47b   : > { %v3278_v29 = vadd.f32 %v3275_v62, %v3270_v0  ;;  %v3337_v62 = vmul.f32 %v3330_v19, %v3323_v13  ;;  %v3338_v0 = vmul.f32 %v3334_v48, %v3321_v5  ;;  %v3439_v5 = vsel %vm2054_vm11, %v7082_v52, %v7078_v7 }
 0x47c   : > { %v3279_v30 = vmax.f32 %v3277_v38, 0.0  ;;  %v4436_v38 = vld [vmem:[%s7626_s3 + $0x27] ss:$8 sm:$0x3] }
 0x47d   : > { %v3280_v20 = vmax.f32 %v3278_v29, 0.0  ;;  %v3398_v9 = vrot.slane %v4436_v38, %v5881_v26 }
 0x47e   : > { %3283 = vrot.lane.b32.xlu0 %v3279_v30, %s7604_s27  ;;  %v7040_v63 = vmul.f32 %v3414_v23, %v3279_v30 }
 0x47f   : > { %v7045_v61 = vmul.f32 %v3418_v43, %v3280_v20  ;;  %v3353_v43 = vsel %vm1823_vm5, %v3346_v32, %v3350_v49 }
 0x480   : > { %v4514_v12 = vpack.c.bf16 %v7040_v63, %v7038_v2  ;;  %v4441_v2 = vld [vmem:[%s7626_s3 + $0x40] ss:$8 sm:$0x3] }
 0x481   : > { %v4512_v39 = vpack.c.bf16 %v7045_v61, %v7043_v46 }
 0x482   : > { %3315 = vrot.lane.b32.xlu0 %v3279_v30, %s7605_s30 }
 0x486   : > { %3347 = vrot.lane.b32.xlu0 %v3279_v30, %s7606_s15 }
 0x48a   : > { %3379 = vrot.lane.b32.xlu0 %v3279_v30, %s7624_s18 }
 0x48e   : > { %3431 = vrot.lane.b32.xlu0 %v3279_v30, %s7611_s28 }
 0x492   : > { %3463 = vrot.lane.b32.xlu0 %v3279_v30, %s7619_s17 }
 0x496   : > { %3495 = vrot.lane.b32.xlu0 %v3279_v30, %s7620_s16 }
 0x49a   : > { %3287 = vrot.lane.b32.xlu0 %v3280_v20, %s7604_s27 }
 0x49e   : > { %3319 = vrot.lane.b32.xlu0 %v3280_v20, %s7605_s30 }
 0x4a2   : > { %3351 = vrot.lane.b32.xlu0 %v3280_v20, %s7606_s15 }
 0x4a6   : > { %3383 = vrot.lane.b32.xlu0 %v3280_v20, %s7624_s18 }
 0x4aa   : > { %3527 = vrot.lane.b32.xlu0 %v3279_v30, %s7621_s26  ;;  %v3355_v30 = vsel %vm1823_vm5, %v3350_v49, %v3346_v32  ;;  %v3385_v32 = vsel %vm1993_vm10, %v3378_v34, %v3382_v41  ;;  %v3387_v49 = vsel %vm1993_vm10, %v3382_v41, %v3378_v34  ;;  %v4438_v34 = vld [vmem:[%s7626_s3 + $0x31] ss:$8 sm:$0x3] }
 0x4ab   : > { %v3369_v8 = vmul.f32 %v3362_v6, %v3355_v30  ;;  %v3446_v35 = vrot.slane %v4438_v34, %v5869_v22 }
 0x4ae   : > { %3435 = vrot.lane.b32.xlu0 %v3280_v20, %s7611_s28 }
 0x4b2   : > { %3467 = vrot.lane.b32.xlu0 %v3280_v20, %s7619_s17 }
 0x4b6   : > { %3499 = vrot.lane.b32.xlu0 %v3280_v20, %s7620_s16 }
 0x4ba   : > { %3531 = vrot.lane.b32.xlu0 %v3280_v20, %s7621_s26 }
 0x4be   : > { %3690 = vperm.xlu0 %4647, %v3682_v14  }
 0x4c2   : > { %3706 = vperm.xlu0 %4647, %v3698_v40   ;;  %v3394_v40 = vrot.slane %v4436_v38, %v5869_v22 }
 0x4f0   : > { %v3284_v18 = vpop.permute.xlu0 %3283 }
 0x4f4   : > { %v3316_v47 = vpop.permute.xlu0 %3315 }
 0x4f8   : > { %v3348_v31 = vpop.permute.xlu0 %3347 }
 0x4fc   : > { %v7076_v56 = vpop.permute.xlu0 %3379 }
 0x500   : > { %v7080_v44 = vpop.permute.xlu0 %3431 }
 0x504   : > { %v7084_v50 = vpop.permute.xlu0 %3463 }
 0x508   : > { %v7089_v36 = vpop.permute.xlu0 %3495 }
 0x50c   : > { %v3288_v59 = vpop.permute.xlu0 %3287 }
 0x50d   : > { %v3290_v25 = vsel %vm1755_vm3, %v3284_v18, %v3288_v59  ;;  %v3292_v17 = vsel %vm1755_vm3, %v3288_v59, %v3284_v18  ;;  %v3370_v18 = vmul.f32 %v3366_v45, %v3353_v43  ;;  %v3401_v59 = vmul.f32 %v3394_v40, %v3387_v49 }
 0x50e   : > { %v3307_v37 = vmul.f32 %v3298_v33, %v3292_v17  ;;  %v3308_v15 = vmul.f32 %v3302_v4, %v3290_v25 }
 0x510   : > { %v4498_v42 = vpack.c.bf16 %v3307_v37, %v3305_v28  ;;  %v3320_v16 = vpop.permute.xlu0 %3319  ;;  %v4496_v27 = vpack.c.bf16 %v3308_v15, %v3306_v10  ;;  %v3450_v37 = vrot.slane %v4438_v34, %v5881_v26  ;;  %v3437_v15 = vsel %vm2054_vm11, %v7078_v7, %v7082_v52  ;;  %v4440_v52 = vld [vmem:[%s7626_s3 + $0x37] ss:$8 sm:$0x3] }
 0x511   : > { %v3322_v1 = vsel %vm1789_vm4, %v3316_v47, %v3320_v16  ;;  %v3324_v58 = vsel %vm1789_vm4, %v3320_v16, %v3316_v47  ;;  %v3494_v47 = vpop.permute.xlu1 %3493  ;;  %v3510_v38 = vrot.slane %v4440_v52, %v5869_v22 }
 0x512   : > { %v3339_v23 = vmul.f32 %v3330_v19, %v3324_v58  ;;  %v3340_v29 = vmul.f32 %v3334_v48, %v3322_v1  ;;  %4497 = vmatprep.subr.bf16.mxu0 %v4496_v27  ;;  %v3402_v19 = vmul.f32 %v3398_v9, %v3385_v32  ;;  %v3454_v7 = vmul.f32 %v3450_v37, %v3439_v5 }
 0x513   : > { %4499 = vmatpush1.bf16.msra.mxu0 %v4498_v42  ;;  %v3469_v1 = vsel %vm2224_vm0, %v7096_v3, %v7115_v60  ;;  %v3471_v58 = vsel %vm2224_vm0, %v7115_v60, %v7096_v3 }
 0x514   : > { %v4502_v20 = vpack.c.bf16 %v3339_v23, %v3337_v62  ;;  %v3352_v55 = vpop.permute.xlu0 %3351  ;;  %v4500_v14 = vpack.c.bf16 %v3340_v29, %v3338_v0  ;;  %v3514_v23 = vrot.slane %v4440_v52, %v5881_v26 }
 0x515   : > { %v3354_v11 = vsel %vm1823_vm5, %v3348_v31, %v3352_v55  ;;  %v3356_v24 = vsel %vm1823_vm5, %v3352_v55, %v3348_v31  ;;  %v3498_v41 = vpop.permute.xlu1 %3497 }
 0x516   : > { %v3371_v57 = vmul.f32 %v3362_v6, %v3356_v24  ;;  %v3372_v33 = vmul.f32 %v3366_v45, %v3354_v11  ;;  %4501 = vmatprep.subr.bf16.mxu0 %v4500_v14  ;;  %v3453_v45 = vmul.f32 %v3446_v35, %v3437_v15  ;;  %v3501_v30 = vsel %vm2258_vm2, %v3494_v47, %v3498_v41 }
 0x517   : > { %4503 = vmatpush1.bf16.msra.mxu0 %v4502_v20  ;;  %v3503_v20 = vsel %vm2258_vm2, %v3498_v41, %v3494_v47  ;;  %v3546_v11 = vrot.slane %v4441_v2, %v5881_v26  ;;  %v3557_v41 = vld [vmem:[%s7647_s29] sm:$0xff] }
 0x518   : > { %v4506_v4 = vpack.c.bf16 %v3371_v57, %v3369_v8  ;;  %v3384_v53 = vpop.permute.xlu0 %3383  ;;  %v4504_v51 = vpack.c.bf16 %v3372_v33, %v3370_v18  ;;  %v3517_v18 = vmul.f32 %v3510_v38, %v3501_v30  ;;  %v3518_v57 = vmul.f32 %v3514_v23, %v3503_v20  ;;  %v4117_v20 = vld [vmem:[%s7649_s23 + $0x8] sm:$0xff] }
 0x519   : > { %v3386_v31 = vsel %vm1993_vm10, %v7076_v56, %v3384_v53  ;;  %v3388_v54 = vsel %vm1993_vm10, %v3384_v53, %v7076_v56  ;;  %v4439_v56 = vld [vmem:[%s7626_s3 + $0x36] ss:$8 sm:$0x3]  ;;  %v3526_v46 = vpop.permute.xlu1 %3525 }
 0x51a   : > { %v3403_v48 = vmul.f32 %v3394_v40, %v3388_v54  ;;  %v3404_v25 = vmul.f32 %v3398_v9, %v3386_v31  ;;  %4505 = vmatprep.subr.bf16.mxu0 %v4504_v51  ;;  %v3478_v42 = vrot.slane %v4439_v56, %v5869_v22  ;;  %v3482_v16 = vrot.slane %v4439_v56, %v5881_v26 }
 0x51b   : > { %4507 = vmatpush1.bf16.msra.mxu0 %v4506_v4  ;;  %v3542_v9 = vrot.slane %v4441_v2, %v5869_v22 }
 0x51c   : > { %v4510_v17 = vpack.c.bf16 %v3403_v48, %v3401_v59  ;;  %v3528_v28 = vpop.permute.xlu0 %3527  ;;  %v4508_v10 = vpack.c.bf16 %v3404_v25, %v3402_v19  ;;  %v3485_v3 = vmul.f32 %v3478_v42, %v3469_v1  ;;  %v3486_v60 = vmul.f32 %v3482_v16, %v3471_v58 }
 0x51d   : > { %v3530_v55 = vpop.permute.xlu1 %3529 }
 0x51e   : > { %4509 = vmatprep.subr.bf16.mxu0 %v4508_v10  ;;  %v3533_v32 = vsel %vm2292_vm6, %v3526_v46, %v3530_v55  ;;  %v3535_v49 = vsel %vm2292_vm6, %v3530_v55, %v3526_v46 }
 0x51f   : > { %4511 = vmatpush1.bf16.msra.mxu0 %v4510_v17  ;;  %v3549_v54 = vmul.f32 %v3542_v9, %v3533_v32  ;;  %v3550_v59 = vmul.f32 %v3546_v11, %v3535_v49  ;;  %v3560_v17 = vld [vmem:[%s7647_s29 + $0x18] sm:$0xff] }
 0x520   : > { %v3436_v13 = vpop.permute.xlu0 %3435  ;;  %4513 = vmatprep.subr.bf16.mxu0 %v4512_v39 }
 0x521   : > { %v3438_v27 = vsel %vm2054_vm11, %v7080_v44, %v3436_v13  ;;  %v3440_v6 = vsel %vm2054_vm11, %v3436_v13, %v7080_v44  ;;  %v3686_v10 = vpop.permute.xlu1 %3685 }
 0x522   : > { %v3455_v61 = vmul.f32 %v3446_v35, %v3438_v27  ;;  %v3456_v39 = vmul.f32 %v3450_v37, %v3440_v6  ;;  %v4448_v6 = vld [vmem:[%s7626_s3 + $0x30] ss:$8 sm:$0x3] }
 0x523   : > { %4515 = vmatpush1.bf16.msra.mxu0 %v4514_v12  ;;  %v3850_v1 = vrot.slane %v4448_v6, %v5869_v22 }
 0x524   : > { %v4518_v44 = vpack.c.bf16 %v3455_v61, %v3453_v45  ;;  %v3468_v62 = vpop.permute.xlu0 %3467  ;;  %v4516_v0 = vpack.c.bf16 %v3456_v39, %v3454_v7 }
 0x525   : > { %v3470_v29 = vsel %vm2224_vm0, %v7084_v50, %v3468_v62  ;;  %v3472_v43 = vsel %vm2224_vm0, %v3468_v62, %v7084_v50  ;;  %v3702_v5 = vpop.permute.xlu1 %3701  ;;  %v3854_v62 = vrot.slane %v4448_v6, %v5881_v26 }
 0x526   : > { %v3487_v63 = vmul.f32 %v3478_v42, %v3470_v29  ;;  %v3488_v12 = vmul.f32 %v3482_v16, %v3472_v43  ;;  %4517 = vmatprep.subr.bf16.mxu0 %v4516_v0 }
 0x527   : > { %4519 = vmatpush1.bf16.msra.mxu0 %v4518_v44 }
 0x528   : > { %v4522_v14 = vpack.c.bf16 %v3487_v63, %v3485_v3  ;;  %v3500_v40 = vpop.permute.xlu0 %3499  ;;  %v4520_v50 = vpack.c.bf16 %v3488_v12, %v3486_v60  ;;  %v3994_v63 = vld [vmem:[%s7648_s2 + $0x8] sm:$0xff]  ;;  %v4116_v12 = vld [vmem:[%s7649_s23] sm:$0xff] }
 0x529   : > { %v3502_v24 = vsel %vm2258_vm2, %v7089_v36, %v3500_v40  ;;  %v3504_v8 = vsel %vm2258_vm2, %v3500_v40, %v7089_v36  ;;  %4453 = vmatprep.mubr.msk.f32.mxu1 %vm3597_vm13, %v3994_v63 }
 0x52a   : > { %v3519_v47 = vmul.f32 %v3510_v38, %v3502_v24  ;;  %v3520_v33 = vmul.f32 %v3514_v23, %v3504_v8  ;;  %4521 = vmatprep.subr.bf16.mxu0 %v4520_v50 }
 0x52b   : > { %4523 = vmatpush1.bf16.msra.mxu0 %v4522_v14 }
 0x52c   : > { %v4526_v4 = vpack.c.bf16 %v3519_v47, %v3517_v18  ;;  %v3532_v53 = vpop.permute.xlu0 %3531  ;;  %v4524_v51 = vpack.c.bf16 %v3520_v33, %v3518_v57 }
 0x52d   : > { %v3534_v31 = vsel %vm2292_vm6, %v3528_v28, %v3532_v53  ;;  %v3536_v36 = vsel %vm2292_vm6, %v3532_v53, %v3528_v28  ;;  %v3559_v28 = vld [vmem:[%s7647_s29 + $0x10] sm:$0xff] }
 0x52e   : > { %v3551_v19 = vmul.f32 %v3542_v9, %v3534_v31  ;;  %v3552_v48 = vmul.f32 %v3546_v11, %v3536_v36  ;;  %4525 = vmatprep.subr.bf16.mxu0 %v4524_v51 }
 0x52f   : > { %4527 = vmatpush1.bf16.msra.mxu0 %v4526_v4  ;;  %v4444_v4 = vld [vmem:[%s7626_s3 + $0x20] ss:$8 sm:$0x3] }
 0x530   : > { %v4530_v25 = vpack.c.bf16 %v3551_v19, %v3549_v54  ;;  %v4528_v34 = vpack.c.bf16 %v3552_v48, %v3550_v59  ;;  %v3734_v31 = vrot.slane %v4444_v4, %v5869_v22  ;;  %v3738_v36 = vrot.slane %v4444_v4, %v5881_v26  ;;  %v4445_v54 = vld [vmem:[%s7626_s3 + $0x21] ss:$8 sm:$0x3] }
 0x532   : > { %4529 = vmatprep.subr.bf16.mxu0 %v4528_v34  ;;  %v3766_v34 = vrot.slane %v4445_v54, %v5869_v22 }
 0x533   : > { %4531 = vmatpush1.bf16.msra.mxu0 %v4530_v25 }
 0x536   : > { %3669 = vmatmul.mubr.f32.vlgmr.msra.gmra.mrb[6].mxu0 %v3557_v41  ;;  %v3770_v41 = vrot.slane %v4445_v54, %v5881_v26 }
 0x537   : > { %4443 = vmatprep.mubr.msk.f32.mxu0 %vm3597_vm13, %v3560_v17 }
 0x53a   : > { %3675 = vmatmul.mubr.f32.gmra.mrb[8].mxu0 %v3559_v28 }
 0x53d   : > { %v3691_v35 = vpop.permute.xlu0 %3690 }
 0x541   : > { %v3707_v46 = vpop.permute.xlu0 %3706 }
 0x609   : > { %v3670_v37 = vpop.f32.mrb[6].mxu0 }
 0x60a   : > { %v3693_v56 = vmul.f32 %v3686_v10, %v3670_v37  ;;  %v3672_v15 = vpop.f32.mrb[7].mxu0 }
 0x60b   : > { %v3694_v13 = vmul.f32 %v3686_v10, %v3672_v15  ;;  %v4446_v15 = vld [vmem:[%s7626_s3 + $0x22] ss:$8 sm:$0x3] }
 0x60c   : > { %v3709_v42 = vadd.f32 %v3702_v5, %v3693_v56 }
 0x60d   : > { %v3710_v16 = vadd.f32 %v3702_v5, %v3694_v13  ;;  %v3676_v27 = vpop.f32.mrb[8].mxu0 }
 0x60e   : > { %v3713_v45 = vmax.f32 %v3709_v42, 0.0  ;;  %v3695_v7 = vmul.f32 %v3691_v35, %v3676_v27  ;;  %v3678_v52 = vpop.f32.mrb[9].mxu0 }
 0x60f   : > { %v3696_v61 = vmul.f32 %v3691_v35, %v3678_v52  ;;  %v3714_v58 = vmax.f32 %v3710_v16, 0.0 }
 0x610   : > { %v3711_v39 = vadd.f32 %v3707_v46, %v3695_v7  ;;  %3717 = vrot.lane.b32.xlu1 %v3713_v45, %s7604_s27  ;;  %v7236_v23 = vmul.f32 %v3850_v1, %v3713_v45  ;;  %v3802_v7 = vrot.slane %v4446_v15, %v5881_v26 }
 0x611   : > { %v3712_v44 = vadd.f32 %v3707_v46, %v3696_v61  ;;  %v7240_v43 = vmul.f32 %v3854_v62, %v3714_v58 }
 0x612   : > { %v3715_v0 = vmax.f32 %v3711_v39, 0.0 }
 0x613   : > { %v3716_v38 = vmax.f32 %v3712_v44, 0.0  ;;  %v4447_v44 = vld [vmem:[%s7626_s3 + $0x27] ss:$8 sm:$0x3] }
 0x614   : > { %3749 = vrot.lane.b32.xlu1 %v3713_v45, %s7605_s30  ;;  %3719 = vrot.lane.b32.xlu0 %v3715_v0, %s7604_s27  ;;  %v7238_v29 = vmul.f32 %v3850_v1, %v3715_v0 }
 0x615   : > { %v7242_v3 = vmul.f32 %v3854_v62, %v3716_v38 }
 0x616   : > { %v4550_v60 = vpack.c.bf16 %v7238_v29, %v7236_v23 }
 0x617   : > { %v4548_v2 = vpack.c.bf16 %v7242_v3, %v7240_v43  ;;  %v4451_v43 = vld [vmem:[%s7626_s3 + $0x37] ss:$8 sm:$0x3] }
 0x618   : > { %3781 = vrot.lane.b32.xlu1 %v3713_v45, %s7606_s15  ;;  %3751 = vrot.lane.b32.xlu0 %v3715_v0, %s7605_s30 }
 0x61c   : > { %3813 = vrot.lane.b32.xlu1 %v3713_v45, %s7624_s18  ;;  %3783 = vrot.lane.b32.xlu0 %v3715_v0, %s7606_s15 }
 0x620   : > { %3865 = vrot.lane.b32.xlu1 %v3713_v45, %s7611_s28  ;;  %3815 = vrot.lane.b32.xlu0 %v3715_v0, %s7624_s18 }
 0x624   : > { %3897 = vrot.lane.b32.xlu1 %v3713_v45, %s7619_s17  ;;  %3867 = vrot.lane.b32.xlu0 %v3715_v0, %s7611_s28 }
 0x628   : > { %3929 = vrot.lane.b32.xlu1 %v3713_v45, %s7620_s16  ;;  %3899 = vrot.lane.b32.xlu0 %v3715_v0, %s7619_s17 }
 0x62c   : > { %3721 = vrot.lane.b32.xlu1 %v3714_v58, %s7604_s27  ;;  %3931 = vrot.lane.b32.xlu0 %v3715_v0, %s7620_s16 }
 0x630   : > { %3753 = vrot.lane.b32.xlu1 %v3714_v58, %s7605_s30  ;;  %3723 = vrot.lane.b32.xlu0 %v3716_v38, %s7604_s27 }
 0x634   : > { %3785 = vrot.lane.b32.xlu1 %v3714_v58, %s7606_s15  ;;  %3755 = vrot.lane.b32.xlu0 %v3716_v38, %s7605_s30 }
 0x638   : > { %3817 = vrot.lane.b32.xlu1 %v3714_v58, %s7624_s18  ;;  %3787 = vrot.lane.b32.xlu0 %v3716_v38, %s7606_s15  ;;  %s7651_s15 = sld [smem:[#allocation10_spill]] }
 0x63c   : > { %3961 = vrot.lane.b32.xlu1 %v3713_v45, %s7621_s26  ;;  %3819 = vrot.lane.b32.xlu0 %v3716_v38, %s7624_s18  ;;  %v3798_v45 = vrot.slane %v4446_v15, %v5869_v22 }
 0x63e   : > { %s4459_s4 = sshll.u32 %s7651_s15, 5 }
 0x63f   : > { %s801_s8 = scalar_lea.vmem %s7652_s10, %s4459_s4 }
 0x640   : > { %3869 = vrot.lane.b32.xlu1 %v3714_v58, %s7611_s28  ;;  %3963 = vrot.lane.b32.xlu0 %v3715_v0, %s7621_s26 }
 0x644   : > { %3901 = vrot.lane.b32.xlu1 %v3714_v58, %s7619_s17  ;;  %3871 = vrot.lane.b32.xlu0 %v3716_v38, %s7611_s28 }
 0x648   : > { %3933 = vrot.lane.b32.xlu1 %v3714_v58, %s7620_s16  ;;  %3903 = vrot.lane.b32.xlu0 %v3716_v38, %s7619_s17  ;;  %s7650_s17 = sld [smem:[#allocation40_spill]] }
 0x64c   : > { %3965 = vrot.lane.b32.xlu1 %v3714_v58, %s7621_s26  ;;  %3935 = vrot.lane.b32.xlu0 %v3716_v38, %s7620_s16 }
 0x64e   : > { %v4132_v30 = vld [vmem:[%s7650_s17] sm:$0xff]  ;;  %v4133_v55 = vld [vmem:[%s7650_s17 + $0x8] sm:$0xff] }
 0x650   : > { %4120 = vperm.xlu1 %4648, %v4116_v12   ;;  %3967 = vrot.lane.b32.xlu0 %v3716_v38, %s7621_s26 }
 0x654   : > { %4136 = vperm.xlu1 %4648, %v4132_v30   ;;  %4125 = vperm.xlu0 %4647, %v4117_v20   ;;  %v3830_v20 = vrot.slane %v4447_v44, %v5869_v22 }
 0x658   : > { %4141 = vperm.xlu0 %4647, %v4133_v55   ;;  %v3834_v55 = vrot.slane %v4447_v44, %v5881_v26  ;;  %v3946_v44 = vrot.slane %v4451_v43, %v5869_v22 }
 0x682   : > { %v3718_v14 = vpop.permute.xlu1 %3717 }
 0x686   : > { %v3750_v40 = vpop.permute.xlu1 %3749  ;;  %v3720_v50 = vpop.permute.xlu0 %3719 }
 0x68a   : > { %v3782_v9 = vpop.permute.xlu1 %3781  ;;  %v3752_v11 = vpop.permute.xlu0 %3751 }
 0x68e   : > { %v3814_v24 = vpop.permute.xlu1 %3813  ;;  %v3784_v8 = vpop.permute.xlu0 %3783 }
 0x692   : > { %v7293_v18 = vpop.permute.xlu1 %3865  ;;  %v7295_v57 = vpop.permute.xlu0 %3815 }
 0x696   : > { %v7297_v47 = vpop.permute.xlu1 %3897  ;;  %v7299_v33 = vpop.permute.xlu0 %3867 }
 0x69a   : > { %v7301_v32 = vpop.permute.xlu1 %3929  ;;  %v7303_v49 = vpop.permute.xlu0 %3899 }
 0x69e   : > { %v3722_v53 = vpop.permute.xlu1 %3721  ;;  %v7308_v51 = vpop.permute.xlu0 %3931 }
 0x69f   : > { %v3725_v59 = vsel %vm1755_vm3, %v3718_v14, %v3722_v53  ;;  %v3727_v19 = vsel %vm1755_vm3, %v3722_v53, %v3718_v14 }
 0x6a0   : > { %v3741_v10 = vmul.f32 %v3734_v31, %v3727_v19  ;;  %v3742_v35 = vmul.f32 %v3738_v36, %v3725_v59 }
 0x6a2   : > { %v3754_v48 = vpop.permute.xlu1 %3753  ;;  %v3724_v25 = vpop.permute.xlu0 %3723 }
 0x6a3   : > { %v3726_v17 = vsel %vm1755_vm3, %v3720_v50, %v3724_v25  ;;  %v3728_v28 = vsel %vm1755_vm3, %v3724_v25, %v3720_v50  ;;  %v3757_v5 = vsel %vm1789_vm4, %v3750_v40, %v3754_v48  ;;  %v3759_v13 = vsel %vm1789_vm4, %v3754_v48, %v3750_v40 }
 0x6a4   : > { %v3743_v37 = vmul.f32 %v3734_v31, %v3728_v28  ;;  %v3744_v56 = vmul.f32 %v3738_v36, %v3726_v17  ;;  %v3773_v61 = vmul.f32 %v3766_v34, %v3759_v13  ;;  %v3774_v39 = vmul.f32 %v3770_v41, %v3757_v5 }
 0x6a6   : > { %v4534_v42 = vpack.c.bf16 %v3743_v37, %v3741_v10  ;;  %v3786_v16 = vpop.permute.xlu1 %3785  ;;  %v3756_v27 = vpop.permute.xlu0 %3755  ;;  %v4532_v6 = vpack.c.bf16 %v3744_v56, %v3742_v35 }
 0x6a7   : > { %v3758_v52 = vsel %vm1789_vm4, %v3752_v11, %v3756_v27  ;;  %v3760_v46 = vsel %vm1789_vm4, %v3756_v27, %v3752_v11  ;;  %v3789_v62 = vsel %vm1823_vm5, %v3782_v9, %v3786_v16  ;;  %v3791_v0 = vsel %vm1823_vm5, %v3786_v16, %v3782_v9 }
 0x6a8   : > { %v3775_v1 = vmul.f32 %v3766_v34, %v3760_v46  ;;  %v3776_v58 = vmul.f32 %v3770_v41, %v3758_v52  ;;  %4533 = vmatprep.subr.bf16.mxu1 %v4532_v6  ;;  %v3805_v50 = vmul.f32 %v3798_v45, %v3791_v0  ;;  %v3806_v11 = vmul.f32 %v3802_v7, %v3789_v62 }
 0x6a9   : > { %4535 = vmatpush1.bf16.msra.mxu1 %v4534_v42  ;;  %v3950_v62 = vrot.slane %v4451_v43, %v5881_v26 }
 0x6aa   : > { %v4538_v38 = vpack.c.bf16 %v3775_v1, %v3773_v61  ;;  %v3818_v63 = vpop.permute.xlu1 %3817  ;;  %v3788_v12 = vpop.permute.xlu0 %3787  ;;  %v4536_v30 = vpack.c.bf16 %v3776_v58, %v3774_v39 }
 0x6ab   : > { %v3790_v14 = vsel %vm1823_vm5, %v3784_v8, %v3788_v12  ;;  %v3792_v40 = vsel %vm1823_vm5, %v3788_v12, %v3784_v8  ;;  %v3821_v9 = vsel %vm1993_vm10, %v3814_v24, %v3818_v63  ;;  %v3823_v31 = vsel %vm1993_vm10, %v3818_v63, %v3814_v24  ;;  %v4449_v24 = vld [vmem:[%s7626_s3 + $0x31] ss:$8 sm:$0x3] }
 0x6ac   : > { %v3807_v4 = vmul.f32 %v3798_v45, %v3792_v40  ;;  %v3808_v53 = vmul.f32 %v3802_v7, %v3790_v14  ;;  %4537 = vmatprep.subr.bf16.mxu1 %v4536_v30  ;;  %v3837_v25 = vmul.f32 %v3830_v20, %v3823_v31  ;;  %v3838_v34 = vmul.f32 %v3834_v55, %v3821_v9 }
 0x6ad   : > { %4539 = vmatpush1.bf16.msra.mxu1 %v4538_v38  ;;  %v3882_v56 = vrot.slane %v4449_v24, %v5869_v22  ;;  %v3886_v15 = vrot.slane %v4449_v24, %v5881_v26 }
 0x6ae   : > { %v4542_v36 = vpack.c.bf16 %v3807_v4, %v3805_v50  ;;  %v7355_v54 = vpop.permute.xlu1 %3961  ;;  %v3820_v59 = vpop.permute.xlu0 %3819  ;;  %v4540_v19 = vpack.c.bf16 %v3808_v53, %v3806_v11 }
 0x6af   : > { %v3822_v8 = vsel %vm1993_vm10, %v7295_v57, %v3820_v59  ;;  %v3824_v48 = vsel %vm1993_vm10, %v3820_v59, %v7295_v57  ;;  %v4450_v57 = vld [vmem:[%s7626_s3 + $0x36] ss:$8 sm:$0x3] }
 0x6b0   : > { %v3839_v41 = vmul.f32 %v3830_v20, %v3824_v48  ;;  %v3840_v17 = vmul.f32 %v3834_v55, %v3822_v8  ;;  %4541 = vmatprep.subr.bf16.mxu1 %v4540_v19  ;;  %v3914_v27 = vrot.slane %v4450_v57, %v5869_v22  ;;  %v3918_v6 = vrot.slane %v4450_v57, %v5881_v26 }
 0x6b1   : > { %4543 = vmatpush1.bf16.msra.mxu1 %v4542_v36 }
 0x6b2   : > { %v4546_v28 = vpack.c.bf16 %v3839_v41, %v3837_v25  ;;  %v3870_v10 = vpop.permute.xlu1 %3869  ;;  %v3964_v35 = vpop.permute.xlu0 %3963  ;;  %v4544_v37 = vpack.c.bf16 %v3840_v17, %v3838_v34 }
 0x6b3   : > { %v3873_v5 = vsel %vm2054_vm11, %v7293_v18, %v3870_v10  ;;  %v3875_v13 = vsel %vm2054_vm11, %v3870_v10, %v7293_v18 }
 0x6b4   : > { %4545 = vmatprep.subr.bf16.mxu1 %v4544_v37  ;;  %v3889_v18 = vmul.f32 %v3882_v56, %v3873_v5  ;;  %v3890_v52 = vmul.f32 %v3886_v15, %v3875_v13 }
 0x6b5   : > { %4547 = vmatpush1.bf16.msra.mxu1 %v4546_v28  ;;  %v3995_v28 = vld [vmem:[%s7648_s2 + $0x10] sm:$0xff] }
 0x6b6   : > { %v3902_v42 = vpop.permute.xlu1 %3901  ;;  %v3872_v16 = vpop.permute.xlu0 %3871  ;;  %4549 = vmatprep.subr.bf16.mxu1 %v4548_v2 }
 0x6b7   : > { %v3874_v45 = vsel %vm2054_vm11, %v7299_v33, %v3872_v16  ;;  %v3876_v7 = vsel %vm2054_vm11, %v3872_v16, %v7299_v33  ;;  %v3905_v3 = vsel %vm2224_vm0, %v7297_v47, %v3902_v42  ;;  %v3907_v2 = vsel %vm2224_vm0, %v3902_v42, %v7297_v47 }
 0x6b8   : > { %v3891_v46 = vmul.f32 %v3882_v56, %v3874_v45  ;;  %v3892_v61 = vmul.f32 %v3886_v15, %v3876_v7  ;;  %v3921_v38 = vmul.f32 %v3914_v27, %v3905_v3  ;;  %v3922_v63 = vmul.f32 %v3918_v6, %v3907_v2 }
 0x6b9   : > { %4551 = vmatpush1.bf16.msra.mxu1 %v4550_v60  ;;  %v4452_v60 = vld [vmem:[%s7626_s3 + $0x40] ss:$8 sm:$0x3] }
 0x6ba   : > { %v4554_v33 = vpack.c.bf16 %v3891_v46, %v3889_v18  ;;  %v3934_v39 = vpop.permute.xlu1 %3933  ;;  %v3904_v1 = vpop.permute.xlu0 %3903  ;;  %v4552_v58 = vpack.c.bf16 %v3892_v61, %v3890_v52  ;;  %v3978_v40 = vrot.slane %v4452_v60, %v5869_v22  ;;  %v3982_v50 = vrot.slane %v4452_v60, %v5881_v26 }
 0x6bb   : > { %v3906_v0 = vsel %vm2224_vm0, %v7303_v49, %v3904_v1  ;;  %v3908_v47 = vsel %vm2224_vm0, %v3904_v1, %v7303_v49  ;;  %v3937_v12 = vsel %vm2258_vm2, %v7301_v32, %v3934_v39  ;;  %v3939_v30 = vsel %vm2258_vm2, %v3934_v39, %v7301_v32 }
 0x6bc   : > { %v3923_v23 = vmul.f32 %v3914_v27, %v3906_v0  ;;  %v3924_v29 = vmul.f32 %v3918_v6, %v3908_v47  ;;  %4553 = vmatprep.subr.bf16.mxu1 %v4552_v58  ;;  %v3953_v53 = vmul.f32 %v3946_v44, %v3937_v12  ;;  %v3954_v9 = vmul.f32 %v3950_v62, %v3939_v30 }
 0x6bd   : > { %4555 = vmatpush1.bf16.msra.mxu1 %v4554_v33 }
 0x6be   : > { %v4558_v20 = vpack.c.bf16 %v3923_v23, %v3921_v38  ;;  %v3966_v49 = vpop.permute.xlu1 %3965  ;;  %v3936_v55 = vpop.permute.xlu0 %3935  ;;  %v4556_v14 = vpack.c.bf16 %v3924_v29, %v3922_v63 }
 0x6bf   : > { %v3938_v11 = vsel %vm2258_vm2, %v7308_v51, %v3936_v55  ;;  %v3940_v4 = vsel %vm2258_vm2, %v3936_v55, %v7308_v51  ;;  %v3969_v36 = vsel %vm2292_vm6, %v7355_v54, %v3966_v49  ;;  %v3971_v22 = vsel %vm2292_vm6, %v3966_v49, %v7355_v54  ;;  %v3993_v54 = vld [vmem:[%s7648_s2] sm:$0xff] }
 0x6c0   : > { %v3955_v32 = vmul.f32 %v3946_v44, %v3938_v11  ;;  %v3956_v31 = vmul.f32 %v3950_v62, %v3940_v4  ;;  %4557 = vmatprep.subr.bf16.mxu1 %v4556_v14  ;;  %v3985_v48 = vmul.f32 %v3978_v40, %v3969_v36  ;;  %v3986_v25 = vmul.f32 %v3982_v50, %v3971_v22 }
 0x6c1   : > { %4559 = vmatpush1.bf16.msra.mxu1 %v4558_v20 }
 0x6c2   : > { %v4562_v26 = vpack.c.bf16 %v3955_v32, %v3953_v53  ;;  %v3968_v59 = vpop.permute.xlu0 %3967  ;;  %v4560_v19 = vpack.c.bf16 %v3956_v31, %v3954_v9 }
 0x6c3   : > { %v3970_v51 = vsel %vm2292_vm6, %v3964_v35, %v3968_v59  ;;  %v3972_v8 = vsel %vm2292_vm6, %v3968_v59, %v3964_v35 }
 0x6c4   : > { %v3987_v34 = vmul.f32 %v3978_v40, %v3970_v51  ;;  %v3988_v41 = vmul.f32 %v3982_v50, %v3972_v8  ;;  %4561 = vmatprep.subr.bf16.mxu1 %v4560_v19 }
 0x6c5   : > { %4563 = vmatpush1.bf16.msra.mxu1 %v4562_v26 }
 0x6c6   : > { %v4566_v17 = vpack.c.bf16 %v3987_v34, %v3985_v48  ;;  %v4564_v24 = vpack.c.bf16 %v3988_v41, %v3986_v25 }
 0x6c8   : > { %4565 = vmatprep.subr.bf16.mxu1 %v4564_v24 }
 0x6c9   : > { %4567 = vmatpush1.bf16.msra.mxu1 %v4566_v17 }
 0x6cc   : > { %4104 = vmatmul.mubr.f32.vlgmr.msra.gmra.mrb[6].mxu1 %v3993_v54 }
 0x6cd   : > { %4454 = vmatprep.mubr.msk.f32.mxu1 %vm3597_vm13, %v3996_v21 }
 0x6cf   : > { %v4121_v10 = vpop.permute.xlu1 %4120 }
 0x6d0   : > { %4110 = vmatmul.mubr.f32.gmra.mrb[8].mxu1 %v3995_v28 }
 0x6d3   : > { %v4126_v35 = vpop.permute.xlu0 %4125  ;;  %v4137_v57 = vpop.permute.xlu1 %4136 }
 0x6d7   : > { %v4142_v7 = vpop.permute.xlu0 %4141 }
 0x79f   : > { %v4105_v37 = vpop.f32.mrb[6].mxu1 }
 0x7a0   : > { %v4128_v56 = vmul.f32 %v4121_v10, %v4105_v37  ;;  %v4107_v15 = vpop.f32.mrb[7].mxu1 }
 0x7a1   : > { %v4129_v5 = vmul.f32 %v4121_v10, %v4107_v15 }
 0x7a2   : > { %v4144_v13 = vadd.f32 %v4137_v57, %v4128_v56 }
 0x7a3   : > { %v4145_v42 = vadd.f32 %v4137_v57, %v4129_v5  ;;  %v4111_v16 = vpop.f32.mrb[8].mxu1 }
 0x7a4   : > { %v4148_v27 = vmax.f32 %v4144_v13, 0.0  ;;  %v4130_v6 = vmul.f32 %v4126_v35, %v4111_v16  ;;  %v4113_v45 = vpop.f32.mrb[9].mxu1 }
 0x7a5   : > { %v4149_v18 = vmax.f32 %v4145_v42, 0.0  ;;  %v4131_v52 = vmul.f32 %v4126_v35, %v4113_v45 }
 0x7a6   : > { %4152 = vst [vmem:[%s801_s8] sm:$0xff] %v4148_v27  ;;  %v4146_v46 = vadd.f32 %v4142_v7, %v4130_v6 }
 0x7a7   : > { %4153 = vst [vmem:[%s801_s8 + $0x8] sm:$0xff] %v4149_v18  ;;  %v4147_v61 = vadd.f32 %v4142_v7, %v4131_v52 }
 0x7a8   : > { %v4150_v43 = vmax.f32 %v4146_v46, 0.0 }
 0x7a9   : > { %v4151_v3 = vmax.f32 %v4147_v61, 0.0 }
 0x7aa   : > { %4154 = vst [vmem:[%s801_s8 + $0x10] sm:$0xff] %v4150_v43 }
 0x7ab   : > { %4155 = vst [vmem:[%s801_s8 + $0x18] sm:$0xff] %v4151_v3 }
 0x7ac PF: > { %s7653_s20 = sld [smem:[#allocation9_spill]] }
 0x7b2   : > { %s36_s5 = sadd.s32 1, %s7653_s20  }
 0x7b3   : > { %p33_p5 = scmp.ge.s32.totalorder %s36_s5, 4  }
 0x7b5   :  { %35 = sbr.rel (!%p33_p5) target bundleno = 28 (0x1c), region = 209 }
 0x7bc   :  { %4177 = vsyncpa [#allocation4], 1 }
 0x7bd   :  { %4179 = vsyncpa [#allocation4 + $0x1], 1 }
 0x7be   :  { %4180 = vsyncpa [#allocation6], 1 }

</bundles_post_ra>
